<compile_context>
chip_gen: v7x
topology: tpu7x:2x2x1
jax: 0.10.0
libtpu: 0.0.40
codegen_flags: <defaults>
</compile_context>

<pallas_src>
import functools

import jax
import jax.numpy as jnp
from jax import lax
from jax.experimental import pallas as pl
from jax.experimental.pallas import tpu as pltpu

LEAKY = 0.15
BF16 = jnp.bfloat16


# ---------------------------------------------------------------- small helpers

def _vmem():
    return pl.BlockSpec(memory_space=pltpu.MemorySpace.VMEM)


def _smem():
    return pl.BlockSpec(memory_space=pltpu.MemorySpace.SMEM)


def _leaky(y, slope=LEAKY):
    return jnp.where(y >= 0, y, slope * y)


def _layernorm(x, g, b):
    mu = jnp.mean(x, axis=-1, keepdims=True)
    xc = x - mu
    var = jnp.mean(xc * xc, axis=-1, keepdims=True)
    return xc * lax.rsqrt(var + 1e-5) * g + b


def _dotf(a, b):
    return jnp.dot(a, b, preferred_element_type=jnp.float32)


def _dot_onehot(op_bf16, feats):
    # one-hot operand exact in bf16; features rounded to bf16; f32 accumulation on MXU.
    return jnp.dot(op_bf16, feats.astype(BF16), preferred_element_type=jnp.float32)


def _fold_bn(bn):
    g, b, m, v = bn
    scale = g / jnp.sqrt(v + 1e-5)
    shift = b - m * scale
    return scale.reshape(1, -1), shift.reshape(1, -1)


# ---------------------------------------------------------------- fused forward kernel

def _fused_kernel(*refs, heads, ch):
    (x_ref, inw_ref, inb_ref, ea_ref, s_ref, m_ref, psum_ref, invc_ref, eps_ref,
     g_ee_w1, g_ee_b1, g_ee_ln_g, g_ee_ln_b, g_ee_w2, g_ee_b2, g_ee_w3, g_ee_b3,
     g_mlp_w1, g_mlp_b1, g_mlp_ln1_g, g_mlp_ln1_b, g_mlp_w2, g_mlp_b2,
     g_mlp_ln2_g, g_mlp_ln2_b,
     bn1_s, bn1_sh, tew1, teb1, tew2, teb2, w4_ref, b4_ref, we_ref, wb3_ref,
     bnt_s, bnt_sh,
     bn2_s, bn2_sh, cw1, cb1, cw2, cb2,
     logits_ref, gemb_ref, out_sc) = refs

    hc = heads * ch

    # Load graph-level operands once; they stay resident for all 4 GIN layers + attention.
    ea = ea_ref[...]                                   # [E, edge_dim]  f32
    S = s_ref[...]                                     # [E, N]         bf16 gather(src)
    M = m_ref[...]                                     # [N, E]         bf16 scatter(dst)

    # ---------------- EdgeGatedGIN layer (layer index l is a static Python int) -----
    def gin(h, l):
        # edge_encoder: Lin -> LN -> LeakyReLU -> (Dropout) -> Lin -> LeakyReLU -> Lin
        e = _dotf(ea, g_ee_w1[l]) + g_ee_b1[l]
        e = _leaky(_layernorm(e, g_ee_ln_g[l], g_ee_ln_b[l]))
        e = _leaky(_dotf(e, g_ee_w2[l]) + g_ee_b2[l])
        e = _dotf(e, g_ee_w3[l]) + g_ee_b3[l]
        # propagate (aggr='add'): msg = sigmoid(e)*x_j + (1-sigmoid(e))*e, summed at dst
        x_j = _dot_onehot(S, h)                        # [E, emb]
        gate = jax.nn.sigmoid(e)
        msg = gate * x_j + (1.0 - gate) * e
        agg = _dot_onehot(M, msg)                      # [N, emb]
        t = (1.0 + eps_ref[l]) * h + agg
        # mlp: Lin -> LN -> LeakyReLU -> (Dropout) -> Lin -> LN
        u = _dotf(t, g_mlp_w1[l]) + g_mlp_b1[l]
        u = _leaky(_layernorm(u, g_mlp_ln1_g[l], g_mlp_ln1_b[l]))
        u = _dotf(u, g_mlp_w2[l]) + g_mlp_b2[l]
        u = _layernorm(u, g_mlp_ln2_g[l], g_mlp_ln2_b[l])
        return h + u                                   # residual (dropout = identity)

    # ---------------- input_proj + gin_1 ---------------------------------------------
    h = x_ref[...] * inw_ref[...] + inb_ref[...]       # Linear(1, emb) as broadcast
    for l in range(2):
        h = gin(h, l)

    # ---------------- transformer block ----------------------------------------------
    xb = _leaky(h * bn1_s[...] + bn1_sh[...])          # bn1 (folded) + LeakyReLU; residual

    # edge_encoder: Lin -> LeakyReLU -> Lin -> (Dropout)
    e = _leaky(_dotf(ea, tew1[...]) + teb1[...])
    e = _dotf(e, tew2[...]) + teb2[...]

    # fused q|k|v|skip projections: single lane-dense [N, 4*hc]=128-wide matmul
    proj = _dotf(xb, w4_ref[...]) + b4_ref[...]
    q = proj[:, 0 * hc:1 * hc]
    k = proj[:, 1 * hc:2 * hc]
    v = proj[:, 2 * hc:3 * hc]
    xr = proj[:, 3 * hc:4 * hc]                        # lin_skip(x) (root_weight)

    ee = _dotf(e, we_ref[...])                         # lin_edge (no bias), [E, hc]
    k_j = _dot_onehot(S, k) + ee                       # key_j  + edge embedding
    v_j = _dot_onehot(S, v) + ee                       # value_j + edge embedding

    # additive mask derived once from the bf16 dst operator already in VMEM
    bias = (M.astype(jnp.float32) - 1.0) * 1e30        # 0 where dst(e)==n, -1e30 elsewhere
    scale = 1.0 / (float(ch) ** 0.5)

    for hh in range(heads):                            # heads=2, static; no concatenate
        lo = hh * ch
        qh = q[:, lo:lo + ch]                          # [N, C]
        kh = k_j[:, lo:lo + ch]                        # [E, C]
        vh = v_j[:, lo:lo + ch]                        # [E, C]
        score = lax.dot_general(qh, kh, (((1,), (1,)), ((), ())),
                                preferred_element_type=jnp.float32) * scale
        logits = score + bias
        # clamp row_max so fully-masked (zero in-degree) rows give exp(...)=0 -> output 0
        row_max = jnp.maximum(jnp.max(logits, axis=-1, keepdims=True), -1e20)
        p = jnp.exp(logits - row_max)                  # masked entries underflow to 0
        denom = jnp.sum(p, axis=-1, keepdims=True) + 1e-16
        # normalize AFTER the aggregation matmul: [N,C] multiply instead of [N,E] divide
        out_sc[:, lo:lo + ch] = _dotf(p, vh) * pl.reciprocal(denom, approx=True)

    out = out_sc[...]                                  # [N, hc]

    # beta gate: sigmoid(W_beta @ [out, x_r, out - x_r]) as VPU mul + lane reduction
    wb = wb3_ref[...]                                  # [3, hc] rows: (w_out, w_xr, w_diff)
    beta_logit = jnp.sum(out * wb[0:1, :] + xr * wb[1:2, :] + (out - xr) * wb[2:3, :],
                         axis=-1, keepdims=True)
    beta = jax.nn.sigmoid(beta_logit)
    t = beta * xr + (1.0 - beta) * out

    # bnT (folded) + LeakyReLU + residual (dropout = identity)
    h = _leaky(t * bnt_s[...] + bnt_sh[...]) + xb

    # ---------------- gin_2 ------------------------------------------------------------
    for l in range(2, 4):
        h = gin(h, l)

    # ---------------- head: bn2 + LeakyReLU -> mean-pool -> classifier MLP -------------
    xb2 = _leaky(h * bn2_s[...] + bn2_sh[...])
    gemb = _dotf(psum_ref[...], xb2) * invc_ref[...]   # global mean pool, [G, emb]
    gemb_ref[...] = gemb
    z = _leaky(_dotf(gemb, cw1[...]) + cb1[...])
    logits_ref[...] = _dotf(z, cw2[...]) + cb2[...]


# ------------------------------------------------------ parameter construction

def init_linear(key, din, dout, bias=True, scale=0.1):
    kw, kb = jax.random.split(key)
    w = jax.random.normal(kw, (din, dout), jnp.float32) * scale
    if bias:
        b = jax.random.normal(kb, (dout,), jnp.float32) * scale
    else:
        b = jnp.zeros((dout,), jnp.float32)
    return w, b


def init_gin(key, emb, edge_dim):
    ks = jax.random.split(key, 6)
    p = {}
    p['ee_w1'], p['ee_b1'] = init_linear(ks[0], edge_dim, emb)
    p['ee_ln_g'] = jnp.ones((emb,), jnp.float32)
    p['ee_ln_b'] = jnp.zeros((emb,), jnp.float32)
    p['ee_w2'], p['ee_b2'] = init_linear(ks[1], emb, emb)
    p['ee_w3'], p['ee_b3'] = init_linear(ks[2], emb, emb)
    p['mlp_w1'], p['mlp_b1'] = init_linear(ks[3], emb, 2 * emb)
    p['mlp_ln1_g'] = jnp.ones((2 * emb,), jnp.float32)
    p['mlp_ln1_b'] = jnp.zeros((2 * emb,), jnp.float32)
    p['mlp_w2'], p['mlp_b2'] = init_linear(ks[4], 2 * emb, emb)
    p['mlp_ln2_g'] = jnp.ones((emb,), jnp.float32)
    p['mlp_ln2_b'] = jnp.zeros((emb,), jnp.float32)
    p['eps'] = jnp.full((1,), 1e-6, jnp.float32)
    return p


def init_edgetrans(key, emb, edge_dim, heads):
    ch = emb // heads
    hc = heads * ch
    ks = jax.random.split(key, 8)
    p = {'heads': heads, 'ch': ch}
    p['ee_w1'], p['ee_b1'] = init_linear(ks[0], edge_dim, emb)
    p['ee_w2'], p['ee_b2'] = init_linear(ks[1], emb, emb)
    p['wq'], p['bq'] = init_linear(ks[2], emb, hc)
    p['wk'], p['bk'] = init_linear(ks[3], emb, hc)
    p['wv'], p['bv'] = init_linear(ks[4], emb, hc)
    p['we'], _ = init_linear(ks[5], emb, hc, bias=False)       # lin_edge (no bias)
    p['wskip'], p['bskip'] = init_linear(ks[6], emb, hc)       # lin_skip (root_weight)
    p['wbeta'] = jax.random.normal(ks[7], (3 * hc, 1), jnp.float32) * 0.1  # lin_beta
    return p


def init_gintrans(key, emb, edge_dim, num_classes):
    ks = jax.random.split(key, 10)
    params = {}
    params['in_w'], params['in_b'] = init_linear(ks[0], 1, emb)
    params['gin1'] = [init_gin(ks[1], emb, edge_dim), init_gin(ks[2], emb, edge_dim)]
    params['gin2'] = [init_gin(ks[3], emb, edge_dim), init_gin(ks[4], emb, edge_dim)]
    params['trans'] = init_edgetrans(ks[5], emb, edge_dim, heads=2)

    def bn(d):  # (gamma, beta, running_mean, running_var) — PyTorch init values
        return (jnp.ones((d,), jnp.float32), jnp.zeros((d,), jnp.float32),
                jnp.zeros((d,), jnp.float32), jnp.ones((d,), jnp.float32))

    params['bn1'] = bn(emb)
    params['bnT'] = bn(emb)
    params['bn2'] = bn(emb)
    params['cla_w1'], params['cla_b1'] = init_linear(ks[6], emb, emb // 2)
    params['cla_w2'], params['cla_b2'] = init_linear(ks[7], emb // 2, num_classes)
    return params


# ------------------------------------------------------------ forward pass (1 pallas_call)

def gintrans_forward(params, x, edge_attr, S_bf, M_bf, Psum, inv_cnt):
    t = params['trans']
    heads, ch = t['heads'], t['ch']
    hc = heads * ch
    emb = params['in_w'].shape[1]
    N, E, G = x.shape[0], edge_attr.shape[0], Psum.shape[0]
    ed = edge_attr.shape[1]
    nc = params['cla_w2'].shape[1]
    row = lambda a: a.reshape(1, -1)

    # ---- stacked GIN params (leading layer axis of size 4) ----
    gins = params['gin1'] + params['gin2']
    stack_w = lambda name: jnp.stack([g[name] for g in gins], 0)
    stack_r = lambda name: jnp.stack([g[name].reshape(1, -1) for g in gins], 0)
    gin_args = [
        stack_w('ee_w1'), stack_r('ee_b1'), stack_r('ee_ln_g'), stack_r('ee_ln_b'),
        stack_w('ee_w2'), stack_r('ee_b2'), stack_w('ee_w3'), stack_r('ee_b3'),
        stack_w('mlp_w1'), stack_r('mlp_b1'), stack_r('mlp_ln1_g'), stack_r('mlp_ln1_b'),
        stack_w('mlp_w2'), stack_r('mlp_b2'), stack_r('mlp_ln2_g'), stack_r('mlp_ln2_b'),
    ]
    eps_vec = jnp.concatenate([g['eps'] for g in gins])            # [4] -> SMEM

    # ---- transformer params (fused QKV/skip, folded BNs) ----
    w4 = jnp.concatenate([t['wq'], t['wk'], t['wv'], t['wskip']], axis=1)  # [emb, 4*hc]
    b4 = jnp.concatenate([t['bq'], t['bk'], t['bv'], t['bskip']]).reshape(1, -1)
    wb3 = t['wbeta'].reshape(3, hc)
    bn1_s, bn1_sh = _fold_bn(params['bn1'])
    bnt_s, bnt_sh = _fold_bn(params['bnT'])
    bn2_s, bn2_sh = _fold_bn(params['bn2'])
    trans_args = [bn1_s, bn1_sh, t['ee_w1'], row(t['ee_b1']), t['ee_w2'], row(t['ee_b2']),
                  w4, b4, t['we'], wb3, bnt_s, bnt_sh]
    head_args = [bn2_s, bn2_sh, params['cla_w1'], row(params['cla_b1']),
                 params['cla_w2'], row(params['cla_b2'])]

    graph_args = [x, params['in_w'], row(params['in_b']),
                  edge_attr, S_bf, M_bf, Psum, inv_cnt]
    args = graph_args + [eps_vec] + gin_args + trans_args + head_args
    in_specs = ([_vmem()] * len(graph_args) + [_smem()]
                + [_vmem()] * (len(gin_args) + len(trans_args) + len(head_args)))

    # ---- explicit VMEM budget + advisory cost estimate ----
    in_bytes = sum(int(a.size) * a.dtype.itemsize for a in args)
    out_bytes = 4 * (G * nc + G * emb)
    inter_bytes = 4 * (6 * N * E + 16 * N * emb + 8 * E * emb + N * 4 * hc + N * hc)
    vmem_limit = int(min(max(2 * (in_bytes + out_bytes + inter_bytes), 16 * 2**20),
                         64 * 2**20))
    flops = (2 * 4 * (E * ed * emb + 2 * E * emb * emb + 2 * E * N * emb
                      + 2 * N * emb * 2 * emb)
             + 2 * (E * ed * emb + E * emb * emb + N * emb * 4 * hc + E * emb * hc
                    + 2 * E * N * hc + heads * 2 * 2 * N * E * ch)
             + 2 * (G * N * emb + G * emb * (emb // 2) + G * (emb // 2) * nc))
    transcendentals = 4 * E * emb + heads * N * E + N + 6 * N * emb

    logits, gemb = pl.pallas_call(
        functools.partial(_fused_kernel, heads=heads, ch=ch),
        out_shape=(jax.ShapeDtypeStruct((G, nc), jnp.float32),
                   jax.ShapeDtypeStruct((G, emb), jnp.float32)),
        in_specs=in_specs,
        out_specs=(_vmem(), _vmem()),
        scratch_shapes=[pltpu.VMEM((N, hc), jnp.float32)],
        compiler_params=pltpu.CompilerParams(vmem_limit_bytes=vmem_limit),
        cost_estimate=pl.CostEstimate(flops=int(flops),
                                      transcendentals=int(transcendentals),
                                      bytes_accessed=int(in_bytes + out_bytes)),
    )(*args)
    return logits, gemb


# ------------------------------------------------------------------- main

if __name__ == "__main__":
    emb_dim, edge_input_dim, num_classes = 32, 7, 3
    nodes_per_graph, num_graphs = 8, 2
    N = nodes_per_graph * num_graphs

    # Deterministic graph: bidirectional ring inside each of the 2 graphs.
    src_l, dst_l = [], []
    for g in range(num_graphs):
        base = g * nodes_per_graph
        for i in range(nodes_per_graph):
            j = (i + 1) % nodes_per_graph
            src_l += [base + i, base + j]
            dst_l += [base + j, base + i]
    src = jnp.array(src_l, jnp.int32)
    dst = jnp.array(dst_l, jnp.int32)
    E = int(src.shape[0])
    batch = jnp.repeat(jnp.arange(num_graphs, dtype=jnp.int32), nodes_per_graph)

    key = jax.random.PRNGKey(0)
    kx, ke, kp = jax.random.split(key, 3)
    x = jax.random.normal(kx, (N, 1), jnp.float32)                 # data.x (1 feature)
    edge_attr = jax.random.normal(ke, (E, edge_input_dim), jnp.float32)

    # Dense one-hot gather/scatter operators, built once (glue); passed ONCE, in bf16.
    S_bf = jax.nn.one_hot(src, N, dtype=BF16)                      # [E, N] gather x[src]
    M_bf = jax.nn.one_hot(dst, N, dtype=BF16).T                    # [N, E] scatter to dst
    Psum = jax.nn.one_hot(batch, num_graphs, dtype=jnp.float32).T  # [G, N] sum-pool
    inv_cnt = 1.0 / jnp.maximum(jnp.sum(Psum, axis=1, keepdims=True), 1.0)  # [G, 1]

    params = init_gintrans(kp, emb_dim, edge_input_dim, num_classes)

    logits, graph_emb = gintrans_forward(params, x, edge_attr, S_bf, M_bf, Psum, inv_cnt)
    logits, graph_emb = jax.block_until_ready((logits, graph_emb))

    assert logits.shape == (num_graphs, num_classes)
    assert graph_emb.shape == (num_graphs, emb_dim)
    assert bool(jnp.all(jnp.isfinite(logits))) and bool(jnp.all(jnp.isfinite(graph_emb)))
    print("KERNEL_OK")
</pallas_src>

<mosaic_0001>
module attributes {stable_mosaic.version = 11 : i64} {
  func.func @_fused_kernel(%arg0: memref<16x1xf32, #tpu.memory_space<vmem>>, %arg1: memref<1x32xf32, #tpu.memory_space<vmem>>, %arg2: memref<1x32xf32, #tpu.memory_space<vmem>>, %arg3: memref<32x7xf32, #tpu.memory_space<vmem>>, %arg4: memref<32x16xbf16, #tpu.memory_space<vmem>>, %arg5: memref<16x32xbf16, #tpu.memory_space<vmem>>, %arg6: memref<2x16xf32, #tpu.memory_space<vmem>>, %arg7: memref<2x1xf32, #tpu.memory_space<vmem>>, %arg8: memref<4xf32, #tpu.memory_space<smem>>, %arg9: memref<4x7x32xf32, #tpu.memory_space<vmem>>, %arg10: memref<4x1x32xf32, #tpu.memory_space<vmem>>, %arg11: memref<4x1x32xf32, #tpu.memory_space<vmem>>, %arg12: memref<4x1x32xf32, #tpu.memory_space<vmem>>, %arg13: memref<4x32x32xf32, #tpu.memory_space<vmem>>, %arg14: memref<4x1x32xf32, #tpu.memory_space<vmem>>, %arg15: memref<4x32x32xf32, #tpu.memory_space<vmem>>, %arg16: memref<4x1x32xf32, #tpu.memory_space<vmem>>, %arg17: memref<4x32x64xf32, #tpu.memory_space<vmem>>, %arg18: memref<4x1x64xf32, #tpu.memory_space<vmem>>, %arg19: memref<4x1x64xf32, #tpu.memory_space<vmem>>, %arg20: memref<4x1x64xf32, #tpu.memory_space<vmem>>, %arg21: memref<4x64x32xf32, #tpu.memory_space<vmem>>, %arg22: memref<4x1x32xf32, #tpu.memory_space<vmem>>, %arg23: memref<4x1x32xf32, #tpu.memory_space<vmem>>, %arg24: memref<4x1x32xf32, #tpu.memory_space<vmem>>, %arg25: memref<1x32xf32, #tpu.memory_space<vmem>>, %arg26: memref<1x32xf32, #tpu.memory_space<vmem>>, %arg27: memref<7x32xf32, #tpu.memory_space<vmem>>, %arg28: memref<1x32xf32, #tpu.memory_space<vmem>>, %arg29: memref<32x32xf32, #tpu.memory_space<vmem>>, %arg30: memref<1x32xf32, #tpu.memory_space<vmem>>, %arg31: memref<32x128xf32, #tpu.memory_space<vmem>>, %arg32: memref<1x128xf32, #tpu.memory_space<vmem>>, %arg33: memref<32x32xf32, #tpu.memory_space<vmem>>, %arg34: memref<3x32xf32, #tpu.memory_space<vmem>>, %arg35: memref<1x32xf32, #tpu.memory_space<vmem>>, %arg36: memref<1x32xf32, #tpu.memory_space<vmem>>, %arg37: memref<1x32xf32, #tpu.memory_space<vmem>>, %arg38: memref<1x32xf32, #tpu.memory_space<vmem>>, %arg39: memref<32x16xf32, #tpu.memory_space<vmem>>, %arg40: memref<1x16xf32, #tpu.memory_space<vmem>>, %arg41: memref<16x3xf32, #tpu.memory_space<vmem>>, %arg42: memref<1x3xf32, #tpu.memory_space<vmem>>, %arg43: memref<2x3xf32, #tpu.memory_space<vmem>>, %arg44: memref<2x32xf32, #tpu.memory_space<vmem>>, %arg45: memref<16x32xf32, #tpu.memory_space<vmem>>) attributes {dimension_semantics = [], scalar_prefetch = 0 : i64, scratch_operands = 1 : i64, tpu.core_type = #tpu.core_type<tc>} {
    %c0 = arith.constant 0 : index
    %c0_0 = arith.constant 0 : index
    %0 = vector.load %arg3[%c0, %c0_0] : memref<32x7xf32, #tpu.memory_space<vmem>>, vector<32x7xf32>
    %c0_1 = arith.constant 0 : index
    %c0_2 = arith.constant 0 : index
    %1 = vector.load %arg4[%c0_1, %c0_2] : memref<32x16xbf16, #tpu.memory_space<vmem>>, vector<32x16xbf16>
    %c0_3 = arith.constant 0 : index
    %c0_4 = arith.constant 0 : index
    %2 = vector.load %arg5[%c0_3, %c0_4] : memref<16x32xbf16, #tpu.memory_space<vmem>>, vector<16x32xbf16>
    %c0_5 = arith.constant 0 : index
    %c0_6 = arith.constant 0 : index
    %3 = vector.load %arg0[%c0_5, %c0_6] : memref<16x1xf32, #tpu.memory_space<vmem>>, vector<16x1xf32>
    %c0_7 = arith.constant 0 : index
    %c0_8 = arith.constant 0 : index
    %4 = vector.load %arg1[%c0_7, %c0_8] : memref<1x32xf32, #tpu.memory_space<vmem>>, vector<1x32xf32>
    %5 = vector.broadcast %3 : vector<16x1xf32> to vector<16x32xf32>
    %6 = vector.broadcast %4 : vector<1x32xf32> to vector<16x32xf32>
    %7 = arith.mulf %5, %6 : vector<16x32xf32>
    %c0_9 = arith.constant 0 : index
    %c0_10 = arith.constant 0 : index
    %8 = vector.load %arg2[%c0_9, %c0_10] : memref<1x32xf32, #tpu.memory_space<vmem>>, vector<1x32xf32>
    %9 = vector.broadcast %8 : vector<1x32xf32> to vector<16x32xf32>
    %10 = arith.addf %7, %9 : vector<16x32xf32>
    %c0_11 = arith.constant 0 : index
    %c0_12 = arith.constant 0 : index
    %c0_13 = arith.constant 0 : index
    %11 = vector.load %arg9[%c0_11, %c0_12, %c0_13] : memref<4x7x32xf32, #tpu.memory_space<vmem>>, vector<1x7x32xf32>
    %12 = vector.shape_cast %11 : vector<1x7x32xf32> to vector<7x32xf32>
    %cst = arith.constant dense<0.000000e+00> : vector<32x32xf32>
    %13 = tpu.matmul %0, %12, %cst {dimension_numbers = #tpu.dot_dimension_numbers<[1], [0], [0], [1], [0, 0, 1, 1], [], []>} : vector<32x7xf32>, vector<7x32xf32>, vector<32x32xf32> -> vector<32x32xf32>
    %c0_14 = arith.constant 0 : index
    %c0_15 = arith.constant 0 : index
    %c0_16 = arith.constant 0 : index
    %14 = vector.load %arg10[%c0_14, %c0_15, %c0_16] : memref<4x1x32xf32, #tpu.memory_space<vmem>>, vector<1x1x32xf32>
    %15 = vector.shape_cast %14 : vector<1x1x32xf32> to vector<1x32xf32>
    %16 = vector.broadcast %15 : vector<1x32xf32> to vector<32x32xf32>
    %17 = arith.addf %13, %16 : vector<32x32xf32>
    %c0_17 = arith.constant 0 : index
    %c0_18 = arith.constant 0 : index
    %c0_19 = arith.constant 0 : index
    %18 = vector.load %arg11[%c0_17, %c0_18, %c0_19] : memref<4x1x32xf32, #tpu.memory_space<vmem>>, vector<1x1x32xf32>
    %19 = vector.shape_cast %18 : vector<1x1x32xf32> to vector<1x32xf32>
    %c0_20 = arith.constant 0 : index
    %c0_21 = arith.constant 0 : index
    %c0_22 = arith.constant 0 : index
    %20 = vector.load %arg12[%c0_20, %c0_21, %c0_22] : memref<4x1x32xf32, #tpu.memory_space<vmem>>, vector<1x1x32xf32>
    %21 = vector.shape_cast %20 : vector<1x1x32xf32> to vector<1x32xf32>
    %cst_23 = arith.constant dense<0.000000e+00> : vector<32xf32>
    %22 = vector.multi_reduction <add>, %17, %cst_23 [1] : vector<32x32xf32> to vector<32xf32>
    %23 = vector.shape_cast %22 : vector<32xf32> to vector<32x1xf32>
    %cst_24 = arith.constant 3.200000e+01 : f32
    %24 = vector.broadcast %cst_24 : f32 to vector<32x1xf32>
    %25 = arith.divf %23, %24 : vector<32x1xf32>
    %26 = vector.broadcast %25 : vector<32x1xf32> to vector<32x32xf32>
    %27 = arith.subf %17, %26 : vector<32x32xf32>
    %28 = arith.mulf %27, %27 : vector<32x32xf32>
    %cst_25 = arith.constant dense<0.000000e+00> : vector<32xf32>
    %29 = vector.multi_reduction <add>, %28, %cst_25 [1] : vector<32x32xf32> to vector<32xf32>
    %30 = vector.shape_cast %29 : vector<32xf32> to vector<32x1xf32>
    %cst_26 = arith.constant 3.200000e+01 : f32
    %31 = vector.broadcast %cst_26 : f32 to vector<32x1xf32>
    %32 = arith.divf %30, %31 : vector<32x1xf32>
    %cst_27 = arith.constant 9.99999974E-6 : f32
    %33 = vector.broadcast %cst_27 : f32 to vector<32x1xf32>
    %34 = arith.addf %32, %33 : vector<32x1xf32>
    %35 = math.rsqrt %34 : vector<32x1xf32>
    %36 = vector.broadcast %35 : vector<32x1xf32> to vector<32x32xf32>
    %37 = arith.mulf %27, %36 : vector<32x32xf32>
    %38 = vector.broadcast %19 : vector<1x32xf32> to vector<32x32xf32>
    %39 = arith.mulf %37, %38 : vector<32x32xf32>
    %40 = vector.broadcast %21 : vector<1x32xf32> to vector<32x32xf32>
    %41 = arith.addf %39, %40 : vector<32x32xf32>
    %cst_28 = arith.constant 0.000000e+00 : f32
    %42 = vector.broadcast %cst_28 : f32 to vector<32x32xf32>
    %43 = arith.cmpf oge, %41, %42 : vector<32x32xf32>
    %cst_29 = arith.constant 1.500000e-01 : f32
    %44 = vector.broadcast %cst_29 : f32 to vector<32x32xf32>
    %45 = arith.mulf %44, %41 : vector<32x32xf32>
    %46 = arith.select %43, %41, %45 : vector<32x32xi1>, vector<32x32xf32>
    %c0_30 = arith.constant 0 : index
    %c0_31 = arith.constant 0 : index
    %c0_32 = arith.constant 0 : index
    %47 = vector.load %arg13[%c0_30, %c0_31, %c0_32] : memref<4x32x32xf32, #tpu.memory_space<vmem>>, vector<1x32x32xf32>
    %48 = vector.shape_cast %47 : vector<1x32x32xf32> to vector<32x32xf32>
    %cst_33 = arith.constant dense<0.000000e+00> : vector<32x32xf32>
    %49 = tpu.matmul %46, %48, %cst_33 {dimension_numbers = #tpu.dot_dimension_numbers<[1], [0], [0], [1], [0, 0, 1, 1], [], []>} : vector<32x32xf32>, vector<32x32xf32>, vector<32x32xf32> -> vector<32x32xf32>
    %c0_34 = arith.constant 0 : index
    %c0_35 = arith.constant 0 : index
    %c0_36 = arith.constant 0 : index
    %50 = vector.load %arg14[%c0_34, %c0_35, %c0_36] : memref<4x1x32xf32, #tpu.memory_space<vmem>>, vector<1x1x32xf32>
    %51 = vector.shape_cast %50 : vector<1x1x32xf32> to vector<1x32xf32>
    %52 = vector.broadcast %51 : vector<1x32xf32> to vector<32x32xf32>
    %53 = arith.addf %49, %52 : vector<32x32xf32>
    %cst_37 = arith.constant 0.000000e+00 : f32
    %54 = vector.broadcast %cst_37 : f32 to vector<32x32xf32>
    %55 = arith.cmpf oge, %53, %54 : vector<32x32xf32>
    %cst_38 = arith.constant 1.500000e-01 : f32
    %56 = vector.broadcast %cst_38 : f32 to vector<32x32xf32>
    %57 = arith.mulf %56, %53 : vector<32x32xf32>
    %58 = arith.select %55, %53, %57 : vector<32x32xi1>, vector<32x32xf32>
    %c0_39 = arith.constant 0 : index
    %c0_40 = arith.constant 0 : index
    %c0_41 = arith.constant 0 : index
    %59 = vector.load %arg15[%c0_39, %c0_40, %c0_41] : memref<4x32x32xf32, #tpu.memory_space<vmem>>, vector<1x32x32xf32>
    %60 = vector.shape_cast %59 : vector<1x32x32xf32> to vector<32x32xf32>
    %cst_42 = arith.constant dense<0.000000e+00> : vector<32x32xf32>
    %61 = tpu.matmul %58, %60, %cst_42 {dimension_numbers = #tpu.dot_dimension_numbers<[1], [0], [0], [1], [0, 0, 1, 1], [], []>} : vector<32x32xf32>, vector<32x32xf32>, vector<32x32xf32> -> vector<32x32xf32>
    %c0_43 = arith.constant 0 : index
    %c0_44 = arith.constant 0 : index
    %c0_45 = arith.constant 0 : index
    %62 = vector.load %arg16[%c0_43, %c0_44, %c0_45] : memref<4x1x32xf32, #tpu.memory_space<vmem>>, vector<1x1x32xf32>
    %63 = vector.shape_cast %62 : vector<1x1x32xf32> to vector<1x32xf32>
    %64 = vector.broadcast %63 : vector<1x32xf32> to vector<32x32xf32>
    %65 = arith.addf %61, %64 : vector<32x32xf32>
    %66 = arith.truncf %10 : vector<16x32xf32> to vector<16x32xbf16>
    %cst_46 = arith.constant dense<0.000000e+00> : vector<32x32xf32>
    %67 = tpu.matmul %1, %66, %cst_46 {dimension_numbers = #tpu.dot_dimension_numbers<[1], [0], [0], [1], [0, 0, 1, 1], [], []>} : vector<32x16xbf16>, vector<16x32xbf16>, vector<32x32xf32> -> vector<32x32xf32>
    %68 = arith.negf %65 : vector<32x32xf32>
    %69 = math.exp %68 : vector<32x32xf32>
    %cst_47 = arith.constant 1.000000e+00 : f32
    %70 = vector.broadcast %cst_47 : f32 to vector<32x32xf32>
    %71 = arith.addf %70, %69 : vector<32x32xf32>
    %72 = arith.divf %70, %71 : vector<32x32xf32>
    %73 = arith.mulf %72, %67 : vector<32x32xf32>
    %cst_48 = arith.constant 1.000000e+00 : f32
    %74 = vector.broadcast %cst_48 : f32 to vector<32x32xf32>
    %75 = arith.subf %74, %72 : vector<32x32xf32>
    %76 = arith.mulf %75, %65 : vector<32x32xf32>
    %77 = arith.addf %73, %76 : vector<32x32xf32>
    %78 = arith.truncf %77 : vector<32x32xf32> to vector<32x32xbf16>
    %cst_49 = arith.constant dense<0.000000e+00> : vector<16x32xf32>
    %79 = tpu.matmul %2, %78, %cst_49 {dimension_numbers = #tpu.dot_dimension_numbers<[1], [0], [0], [1], [0, 0, 1, 1], [], []>} : vector<16x32xbf16>, vector<32x32xbf16>, vector<16x32xf32> -> vector<16x32xf32>
    %c0_50 = arith.constant 0 : index
    %80 = memref.load %arg8[%c0_50] : memref<4xf32, #tpu.memory_space<smem>>
    %cst_51 = arith.constant 1.000000e+00 : f32
    %81 = arith.addf %cst_51, %80 : f32
    %82 = vector.broadcast %81 : f32 to vector<16x32xf32>
    %83 = arith.mulf %82, %10 : vector<16x32xf32>
    %84 = arith.addf %83, %79 : vector<16x32xf32>
    %c0_52 = arith.constant 0 : index
    %c0_53 = arith.constant 0 : index
    %c0_54 = arith.constant 0 : index
    %85 = vector.load %arg17[%c0_52, %c0_53, %c0_54] : memref<4x32x64xf32, #tpu.memory_space<vmem>>, vector<1x32x64xf32>
    %86 = vector.shape_cast %85 : vector<1x32x64xf32> to vector<32x64xf32>
    %cst_55 = arith.constant dense<0.000000e+00> : vector<16x64xf32>
    %87 = tpu.matmul %84, %86, %cst_55 {dimension_numbers = #tpu.dot_dimension_numbers<[1], [0], [0], [1], [0, 0, 1, 1], [], []>} : vector<16x32xf32>, vector<32x64xf32>, vector<16x64xf32> -> vector<16x64xf32>
    %c0_56 = arith.constant 0 : index
    %c0_57 = arith.constant 0 : index
    %c0_58 = arith.constant 0 : index
    %88 = vector.load %arg18[%c0_56, %c0_57, %c0_58] : memref<4x1x64xf32, #tpu.memory_space<vmem>>, vector<1x1x64xf32>
    %89 = vector.shape_cast %88 : vector<1x1x64xf32> to vector<1x64xf32>
    %90 = vector.broadcast %89 : vector<1x64xf32> to vector<16x64xf32>
    %91 = arith.addf %87, %90 : vector<16x64xf32>
    %c0_59 = arith.constant 0 : index
    %c0_60 = arith.constant 0 : index
    %c0_61 = arith.constant 0 : index
    %92 = vector.load %arg19[%c0_59, %c0_60, %c0_61] : memref<4x1x64xf32, #tpu.memory_space<vmem>>, vector<1x1x64xf32>
    %93 = vector.shape_cast %92 : vector<1x1x64xf32> to vector<1x64xf32>
    %c0_62 = arith.constant 0 : index
    %c0_63 = arith.constant 0 : index
    %c0_64 = arith.constant 0 : index
    %94 = vector.load %arg20[%c0_62, %c0_63, %c0_64] : memref<4x1x64xf32, #tpu.memory_space<vmem>>, vector<1x1x64xf32>
    %95 = vector.shape_cast %94 : vector<1x1x64xf32> to vector<1x64xf32>
    %cst_65 = arith.constant dense<0.000000e+00> : vector<16xf32>
    %96 = vector.multi_reduction <add>, %91, %cst_65 [1] : vector<16x64xf32> to vector<16xf32>
    %97 = vector.shape_cast %96 : vector<16xf32> to vector<16x1xf32>
    %cst_66 = arith.constant 6.400000e+01 : f32
    %98 = vector.broadcast %cst_66 : f32 to vector<16x1xf32>
    %99 = arith.divf %97, %98 : vector<16x1xf32>
    %100 = vector.broadcast %99 : vector<16x1xf32> to vector<16x64xf32>
    %101 = arith.subf %91, %100 : vector<16x64xf32>
    %102 = arith.mulf %101, %101 : vector<16x64xf32>
    %cst_67 = arith.constant dense<0.000000e+00> : vector<16xf32>
    %103 = vector.multi_reduction <add>, %102, %cst_67 [1] : vector<16x64xf32> to vector<16xf32>
    %104 = vector.shape_cast %103 : vector<16xf32> to vector<16x1xf32>
    %cst_68 = arith.constant 6.400000e+01 : f32
    %105 = vector.broadcast %cst_68 : f32 to vector<16x1xf32>
    %106 = arith.divf %104, %105 : vector<16x1xf32>
    %cst_69 = arith.constant 9.99999974E-6 : f32
    %107 = vector.broadcast %cst_69 : f32 to vector<16x1xf32>
    %108 = arith.addf %106, %107 : vector<16x1xf32>
    %109 = math.rsqrt %108 : vector<16x1xf32>
    %110 = vector.broadcast %109 : vector<16x1xf32> to vector<16x64xf32>
    %111 = arith.mulf %101, %110 : vector<16x64xf32>
    %112 = vector.broadcast %93 : vector<1x64xf32> to vector<16x64xf32>
    %113 = arith.mulf %111, %112 : vector<16x64xf32>
    %114 = vector.broadcast %95 : vector<1x64xf32> to vector<16x64xf32>
    %115 = arith.addf %113, %114 : vector<16x64xf32>
    %cst_70 = arith.constant 0.000000e+00 : f32
    %116 = vector.broadcast %cst_70 : f32 to vector<16x64xf32>
    %117 = arith.cmpf oge, %115, %116 : vector<16x64xf32>
    %cst_71 = arith.constant 1.500000e-01 : f32
    %118 = vector.broadcast %cst_71 : f32 to vector<16x64xf32>
    %119 = arith.mulf %118, %115 : vector<16x64xf32>
    %120 = arith.select %117, %115, %119 : vector<16x64xi1>, vector<16x64xf32>
    %c0_72 = arith.constant 0 : index
    %c0_73 = arith.constant 0 : index
    %c0_74 = arith.constant 0 : index
    %121 = vector.load %arg21[%c0_72, %c0_73, %c0_74] : memref<4x64x32xf32, #tpu.memory_space<vmem>>, vector<1x64x32xf32>
    %122 = vector.shape_cast %121 : vector<1x64x32xf32> to vector<64x32xf32>
    %cst_75 = arith.constant dense<0.000000e+00> : vector<16x32xf32>
    %123 = tpu.matmul %120, %122, %cst_75 {dimension_numbers = #tpu.dot_dimension_numbers<[1], [0], [0], [1], [0, 0, 1, 1], [], []>} : vector<16x64xf32>, vector<64x32xf32>, vector<16x32xf32> -> vector<16x32xf32>
    %c0_76 = arith.constant 0 : index
    %c0_77 = arith.constant 0 : index
    %c0_78 = arith.constant 0 : index
    %124 = vector.load %arg22[%c0_76, %c0_77, %c0_78] : memref<4x1x32xf32, #tpu.memory_space<vmem>>, vector<1x1x32xf32>
    %125 = vector.shape_cast %124 : vector<1x1x32xf32> to vector<1x32xf32>
    %126 = vector.broadcast %125 : vector<1x32xf32> to vector<16x32xf32>
    %127 = arith.addf %123, %126 : vector<16x32xf32>
    %c0_79 = arith.constant 0 : index
    %c0_80 = arith.constant 0 : index
    %c0_81 = arith.constant 0 : index
    %128 = vector.load %arg23[%c0_79, %c0_80, %c0_81] : memref<4x1x32xf32, #tpu.memory_space<vmem>>, vector<1x1x32xf32>
    %129 = vector.shape_cast %128 : vector<1x1x32xf32> to vector<1x32xf32>
    %c0_82 = arith.constant 0 : index
    %c0_83 = arith.constant 0 : index
    %c0_84 = arith.constant 0 : index
    %130 = vector.load %arg24[%c0_82, %c0_83, %c0_84] : memref<4x1x32xf32, #tpu.memory_space<vmem>>, vector<1x1x32xf32>
    %131 = vector.shape_cast %130 : vector<1x1x32xf32> to vector<1x32xf32>
    %cst_85 = arith.constant dense<0.000000e+00> : vector<16xf32>
    %132 = vector.multi_reduction <add>, %127, %cst_85 [1] : vector<16x32xf32> to vector<16xf32>
    %133 = vector.shape_cast %132 : vector<16xf32> to vector<16x1xf32>
    %cst_86 = arith.constant 3.200000e+01 : f32
    %134 = vector.broadcast %cst_86 : f32 to vector<16x1xf32>
    %135 = arith.divf %133, %134 : vector<16x1xf32>
    %136 = vector.broadcast %135 : vector<16x1xf32> to vector<16x32xf32>
    %137 = arith.subf %127, %136 : vector<16x32xf32>
    %138 = arith.mulf %137, %137 : vector<16x32xf32>
    %cst_87 = arith.constant dense<0.000000e+00> : vector<16xf32>
    %139 = vector.multi_reduction <add>, %138, %cst_87 [1] : vector<16x32xf32> to vector<16xf32>
    %140 = vector.shape_cast %139 : vector<16xf32> to vector<16x1xf32>
    %cst_88 = arith.constant 3.200000e+01 : f32
    %141 = vector.broadcast %cst_88 : f32 to vector<16x1xf32>
    %142 = arith.divf %140, %141 : vector<16x1xf32>
    %cst_89 = arith.constant 9.99999974E-6 : f32
    %143 = vector.broadcast %cst_89 : f32 to vector<16x1xf32>
    %144 = arith.addf %142, %143 : vector<16x1xf32>
    %145 = math.rsqrt %144 : vector<16x1xf32>
    %146 = vector.broadcast %145 : vector<16x1xf32> to vector<16x32xf32>
    %147 = arith.mulf %137, %146 : vector<16x32xf32>
    %148 = vector.broadcast %129 : vector<1x32xf32> to vector<16x32xf32>
    %149 = arith.mulf %147, %148 : vector<16x32xf32>
    %150 = vector.broadcast %131 : vector<1x32xf32> to vector<16x32xf32>
    %151 = arith.addf %149, %150 : vector<16x32xf32>
    %152 = arith.addf %10, %151 : vector<16x32xf32>
    %c1 = arith.constant 1 : index
    %c0_90 = arith.constant 0 : index
    %c0_91 = arith.constant 0 : index
    %153 = vector.load %arg9[%c1, %c0_90, %c0_91] : memref<4x7x32xf32, #tpu.memory_space<vmem>>, vector<1x7x32xf32>
    %154 = vector.shape_cast %153 : vector<1x7x32xf32> to vector<7x32xf32>
    %cst_92 = arith.constant dense<0.000000e+00> : vector<32x32xf32>
    %155 = tpu.matmul %0, %154, %cst_92 {dimension_numbers = #tpu.dot_dimension_numbers<[1], [0], [0], [1], [0, 0, 1, 1], [], []>} : vector<32x7xf32>, vector<7x32xf32>, vector<32x32xf32> -> vector<32x32xf32>
    %c1_93 = arith.constant 1 : index
    %c0_94 = arith.constant 0 : index
    %c0_95 = arith.constant 0 : index
    %156 = vector.load %arg10[%c1_93, %c0_94, %c0_95] : memref<4x1x32xf32, #tpu.memory_space<vmem>>, vector<1x1x32xf32>
    %157 = vector.shape_cast %156 : vector<1x1x32xf32> to vector<1x32xf32>
    %158 = vector.broadcast %157 : vector<1x32xf32> to vector<32x32xf32>
    %159 = arith.addf %155, %158 : vector<32x32xf32>
    %c1_96 = arith.constant 1 : index
    %c0_97 = arith.constant 0 : index
    %c0_98 = arith.constant 0 : index
    %160 = vector.load %arg11[%c1_96, %c0_97, %c0_98] : memref<4x1x32xf32, #tpu.memory_space<vmem>>, vector<1x1x32xf32>
    %161 = vector.shape_cast %160 : vector<1x1x32xf32> to vector<1x32xf32>
    %c1_99 = arith.constant 1 : index
    %c0_100 = arith.constant 0 : index
    %c0_101 = arith.constant 0 : index
    %162 = vector.load %arg12[%c1_99, %c0_100, %c0_101] : memref<4x1x32xf32, #tpu.memory_space<vmem>>, vector<1x1x32xf32>
    %163 = vector.shape_cast %162 : vector<1x1x32xf32> to vector<1x32xf32>
    %cst_102 = arith.constant dense<0.000000e+00> : vector<32xf32>
    %164 = vector.multi_reduction <add>, %159, %cst_102 [1] : vector<32x32xf32> to vector<32xf32>
    %165 = vector.shape_cast %164 : vector<32xf32> to vector<32x1xf32>
    %cst_103 = arith.constant 3.200000e+01 : f32
    %166 = vector.broadcast %cst_103 : f32 to vector<32x1xf32>
    %167 = arith.divf %165, %166 : vector<32x1xf32>
    %168 = vector.broadcast %167 : vector<32x1xf32> to vector<32x32xf32>
    %169 = arith.subf %159, %168 : vector<32x32xf32>
    %170 = arith.mulf %169, %169 : vector<32x32xf32>
    %cst_104 = arith.constant dense<0.000000e+00> : vector<32xf32>
    %171 = vector.multi_reduction <add>, %170, %cst_104 [1] : vector<32x32xf32> to vector<32xf32>
    %172 = vector.shape_cast %171 : vector<32xf32> to vector<32x1xf32>
    %cst_105 = arith.constant 3.200000e+01 : f32
    %173 = vector.broadcast %cst_105 : f32 to vector<32x1xf32>
    %174 = arith.divf %172, %173 : vector<32x1xf32>
    %cst_106 = arith.constant 9.99999974E-6 : f32
    %175 = vector.broadcast %cst_106 : f32 to vector<32x1xf32>
    %176 = arith.addf %174, %175 : vector<32x1xf32>
    %177 = math.rsqrt %176 : vector<32x1xf32>
    %178 = vector.broadcast %177 : vector<32x1xf32> to vector<32x32xf32>
    %179 = arith.mulf %169, %178 : vector<32x32xf32>
    %180 = vector.broadcast %161 : vector<1x32xf32> to vector<32x32xf32>
    %181 = arith.mulf %179, %180 : vector<32x32xf32>
    %182 = vector.broadcast %163 : vector<1x32xf32> to vector<32x32xf32>
    %183 = arith.addf %181, %182 : vector<32x32xf32>
    %cst_107 = arith.constant 0.000000e+00 : f32
    %184 = vector.broadcast %cst_107 : f32 to vector<32x32xf32>
    %185 = arith.cmpf oge, %183, %184 : vector<32x32xf32>
    %cst_108 = arith.constant 1.500000e-01 : f32
    %186 = vector.broadcast %cst_108 : f32 to vector<32x32xf32>
    %187 = arith.mulf %186, %183 : vector<32x32xf32>
    %188 = arith.select %185, %183, %187 : vector<32x32xi1>, vector<32x32xf32>
    %c1_109 = arith.constant 1 : index
    %c0_110 = arith.constant 0 : index
    %c0_111 = arith.constant 0 : index
    %189 = vector.load %arg13[%c1_109, %c0_110, %c0_111] : memref<4x32x32xf32, #tpu.memory_space<vmem>>, vector<1x32x32xf32>
    %190 = vector.shape_cast %189 : vector<1x32x32xf32> to vector<32x32xf32>
    %cst_112 = arith.constant dense<0.000000e+00> : vector<32x32xf32>
    %191 = tpu.matmul %188, %190, %cst_112 {dimension_numbers = #tpu.dot_dimension_numbers<[1], [0], [0], [1], [0, 0, 1, 1], [], []>} : vector<32x32xf32>, vector<32x32xf32>, vector<32x32xf32> -> vector<32x32xf32>
    %c1_113 = arith.constant 1 : index
    %c0_114 = arith.constant 0 : index
    %c0_115 = arith.constant 0 : index
    %192 = vector.load %arg14[%c1_113, %c0_114, %c0_115] : memref<4x1x32xf32, #tpu.memory_space<vmem>>, vector<1x1x32xf32>
    %193 = vector.shape_cast %192 : vector<1x1x32xf32> to vector<1x32xf32>
    %194 = vector.broadcast %193 : vector<1x32xf32> to vector<32x32xf32>
    %195 = arith.addf %191, %194 : vector<32x32xf32>
    %cst_116 = arith.constant 0.000000e+00 : f32
    %196 = vector.broadcast %cst_116 : f32 to vector<32x32xf32>
    %197 = arith.cmpf oge, %195, %196 : vector<32x32xf32>
    %cst_117 = arith.constant 1.500000e-01 : f32
    %198 = vector.broadcast %cst_117 : f32 to vector<32x32xf32>
    %199 = arith.mulf %198, %195 : vector<32x32xf32>
    %200 = arith.select %197, %195, %199 : vector<32x32xi1>, vector<32x32xf32>
    %c1_118 = arith.constant 1 : index
    %c0_119 = arith.constant 0 : index
    %c0_120 = arith.constant 0 : index
    %201 = vector.load %arg15[%c1_118, %c0_119, %c0_120] : memref<4x32x32xf32, #tpu.memory_space<vmem>>, vector<1x32x32xf32>
    %202 = vector.shape_cast %201 : vector<1x32x32xf32> to vector<32x32xf32>
    %cst_121 = arith.constant dense<0.000000e+00> : vector<32x32xf32>
    %203 = tpu.matmul %200, %202, %cst_121 {dimension_numbers = #tpu.dot_dimension_numbers<[1], [0], [0], [1], [0, 0, 1, 1], [], []>} : vector<32x32xf32>, vector<32x32xf32>, vector<32x32xf32> -> vector<32x32xf32>
    %c1_122 = arith.constant 1 : index
    %c0_123 = arith.constant 0 : index
    %c0_124 = arith.constant 0 : index
    %204 = vector.load %arg16[%c1_122, %c0_123, %c0_124] : memref<4x1x32xf32, #tpu.memory_space<vmem>>, vector<1x1x32xf32>
    %205 = vector.shape_cast %204 : vector<1x1x32xf32> to vector<1x32xf32>
    %206 = vector.broadcast %205 : vector<1x32xf32> to vector<32x32xf32>
    %207 = arith.addf %203, %206 : vector<32x32xf32>
    %208 = arith.truncf %152 : vector<16x32xf32> to vector<16x32xbf16>
    %cst_125 = arith.constant dense<0.000000e+00> : vector<32x32xf32>
    %209 = tpu.matmul %1, %208, %cst_125 {dimension_numbers = #tpu.dot_dimension_numbers<[1], [0], [0], [1], [0, 0, 1, 1], [], []>} : vector<32x16xbf16>, vector<16x32xbf16>, vector<32x32xf32> -> vector<32x32xf32>
    %210 = arith.negf %207 : vector<32x32xf32>
    %211 = math.exp %210 : vector<32x32xf32>
    %cst_126 = arith.constant 1.000000e+00 : f32
    %212 = vector.broadcast %cst_126 : f32 to vector<32x32xf32>
    %213 = arith.addf %212, %211 : vector<32x32xf32>
    %214 = arith.divf %212, %213 : vector<32x32xf32>
    %215 = arith.mulf %214, %209 : vector<32x32xf32>
    %cst_127 = arith.constant 1.000000e+00 : f32
    %216 = vector.broadcast %cst_127 : f32 to vector<32x32xf32>
    %217 = arith.subf %216, %214 : vector<32x32xf32>
    %218 = arith.mulf %217, %207 : vector<32x32xf32>
    %219 = arith.addf %215, %218 : vector<32x32xf32>
    %220 = arith.truncf %219 : vector<32x32xf32> to vector<32x32xbf16>
    %cst_128 = arith.constant dense<0.000000e+00> : vector<16x32xf32>
    %221 = tpu.matmul %2, %220, %cst_128 {dimension_numbers = #tpu.dot_dimension_numbers<[1], [0], [0], [1], [0, 0, 1, 1], [], []>} : vector<16x32xbf16>, vector<32x32xbf16>, vector<16x32xf32> -> vector<16x32xf32>
    %c1_129 = arith.constant 1 : index
    %222 = memref.load %arg8[%c1_129] : memref<4xf32, #tpu.memory_space<smem>>
    %cst_130 = arith.constant 1.000000e+00 : f32
    %223 = arith.addf %cst_130, %222 : f32
    %224 = vector.broadcast %223 : f32 to vector<16x32xf32>
    %225 = arith.mulf %224, %152 : vector<16x32xf32>
    %226 = arith.addf %225, %221 : vector<16x32xf32>
    %c1_131 = arith.constant 1 : index
    %c0_132 = arith.constant 0 : index
    %c0_133 = arith.constant 0 : index
    %227 = vector.load %arg17[%c1_131, %c0_132, %c0_133] : memref<4x32x64xf32, #tpu.memory_space<vmem>>, vector<1x32x64xf32>
    %228 = vector.shape_cast %227 : vector<1x32x64xf32> to vector<32x64xf32>
    %cst_134 = arith.constant dense<0.000000e+00> : vector<16x64xf32>
    %229 = tpu.matmul %226, %228, %cst_134 {dimension_numbers = #tpu.dot_dimension_numbers<[1], [0], [0], [1], [0, 0, 1, 1], [], []>} : vector<16x32xf32>, vector<32x64xf32>, vector<16x64xf32> -> vector<16x64xf32>
    %c1_135 = arith.constant 1 : index
    %c0_136 = arith.constant 0 : index
    %c0_137 = arith.constant 0 : index
    %230 = vector.load %arg18[%c1_135, %c0_136, %c0_137] : memref<4x1x64xf32, #tpu.memory_space<vmem>>, vector<1x1x64xf32>
    %231 = vector.shape_cast %230 : vector<1x1x64xf32> to vector<1x64xf32>
    %232 = vector.broadcast %231 : vector<1x64xf32> to vector<16x64xf32>
    %233 = arith.addf %229, %232 : vector<16x64xf32>
    %c1_138 = arith.constant 1 : index
    %c0_139 = arith.constant 0 : index
    %c0_140 = arith.constant 0 : index
    %234 = vector.load %arg19[%c1_138, %c0_139, %c0_140] : memref<4x1x64xf32, #tpu.memory_space<vmem>>, vector<1x1x64xf32>
    %235 = vector.shape_cast %234 : vector<1x1x64xf32> to vector<1x64xf32>
    %c1_141 = arith.constant 1 : index
    %c0_142 = arith.constant 0 : index
    %c0_143 = arith.constant 0 : index
    %236 = vector.load %arg20[%c1_141, %c0_142, %c0_143] : memref<4x1x64xf32, #tpu.memory_space<vmem>>, vector<1x1x64xf32>
    %237 = vector.shape_cast %236 : vector<1x1x64xf32> to vector<1x64xf32>
    %cst_144 = arith.constant dense<0.000000e+00> : vector<16xf32>
    %238 = vector.multi_reduction <add>, %233, %cst_144 [1] : vector<16x64xf32> to vector<16xf32>
    %239 = vector.shape_cast %238 : vector<16xf32> to vector<16x1xf32>
    %cst_145 = arith.constant 6.400000e+01 : f32
    %240 = vector.broadcast %cst_145 : f32 to vector<16x1xf32>
    %241 = arith.divf %239, %240 : vector<16x1xf32>
    %242 = vector.broadcast %241 : vector<16x1xf32> to vector<16x64xf32>
    %243 = arith.subf %233, %242 : vector<16x64xf32>
    %244 = arith.mulf %243, %243 : vector<16x64xf32>
    %cst_146 = arith.constant dense<0.000000e+00> : vector<16xf32>
    %245 = vector.multi_reduction <add>, %244, %cst_146 [1] : vector<16x64xf32> to vector<16xf32>
    %246 = vector.shape_cast %245 : vector<16xf32> to vector<16x1xf32>
    %cst_147 = arith.constant 6.400000e+01 : f32
    %247 = vector.broadcast %cst_147 : f32 to vector<16x1xf32>
    %248 = arith.divf %246, %247 : vector<16x1xf32>
    %cst_148 = arith.constant 9.99999974E-6 : f32
    %249 = vector.broadcast %cst_148 : f32 to vector<16x1xf32>
    %250 = arith.addf %248, %249 : vector<16x1xf32>
    %251 = math.rsqrt %250 : vector<16x1xf32>
    %252 = vector.broadcast %251 : vector<16x1xf32> to vector<16x64xf32>
    %253 = arith.mulf %243, %252 : vector<16x64xf32>
    %254 = vector.broadcast %235 : vector<1x64xf32> to vector<16x64xf32>
    %255 = arith.mulf %253, %254 : vector<16x64xf32>
    %256 = vector.broadcast %237 : vector<1x64xf32> to vector<16x64xf32>
    %257 = arith.addf %255, %256 : vector<16x64xf32>
    %cst_149 = arith.constant 0.000000e+00 : f32
    %258 = vector.broadcast %cst_149 : f32 to vector<16x64xf32>
    %259 = arith.cmpf oge, %257, %258 : vector<16x64xf32>
    %cst_150 = arith.constant 1.500000e-01 : f32
    %260 = vector.broadcast %cst_150 : f32 to vector<16x64xf32>
    %261 = arith.mulf %260, %257 : vector<16x64xf32>
    %262 = arith.select %259, %257, %261 : vector<16x64xi1>, vector<16x64xf32>
    %c1_151 = arith.constant 1 : index
    %c0_152 = arith.constant 0 : index
    %c0_153 = arith.constant 0 : index
    %263 = vector.load %arg21[%c1_151, %c0_152, %c0_153] : memref<4x64x32xf32, #tpu.memory_space<vmem>>, vector<1x64x32xf32>
    %264 = vector.shape_cast %263 : vector<1x64x32xf32> to vector<64x32xf32>
    %cst_154 = arith.constant dense<0.000000e+00> : vector<16x32xf32>
    %265 = tpu.matmul %262, %264, %cst_154 {dimension_numbers = #tpu.dot_dimension_numbers<[1], [0], [0], [1], [0, 0, 1, 1], [], []>} : vector<16x64xf32>, vector<64x32xf32>, vector<16x32xf32> -> vector<16x32xf32>
    %c1_155 = arith.constant 1 : index
    %c0_156 = arith.constant 0 : index
    %c0_157 = arith.constant 0 : index
    %266 = vector.load %arg22[%c1_155, %c0_156, %c0_157] : memref<4x1x32xf32, #tpu.memory_space<vmem>>, vector<1x1x32xf32>
    %267 = vector.shape_cast %266 : vector<1x1x32xf32> to vector<1x32xf32>
    %268 = vector.broadcast %267 : vector<1x32xf32> to vector<16x32xf32>
    %269 = arith.addf %265, %268 : vector<16x32xf32>
    %c1_158 = arith.constant 1 : index
    %c0_159 = arith.constant 0 : index
    %c0_160 = arith.constant 0 : index
    %270 = vector.load %arg23[%c1_158, %c0_159, %c0_160] : memref<4x1x32xf32, #tpu.memory_space<vmem>>, vector<1x1x32xf32>
    %271 = vector.shape_cast %270 : vector<1x1x32xf32> to vector<1x32xf32>
    %c1_161 = arith.constant 1 : index
    %c0_162 = arith.constant 0 : index
    %c0_163 = arith.constant 0 : index
    %272 = vector.load %arg24[%c1_161, %c0_162, %c0_163] : memref<4x1x32xf32, #tpu.memory_space<vmem>>, vector<1x1x32xf32>
    %273 = vector.shape_cast %272 : vector<1x1x32xf32> to vector<1x32xf32>
    %cst_164 = arith.constant dense<0.000000e+00> : vector<16xf32>
    %274 = vector.multi_reduction <add>, %269, %cst_164 [1] : vector<16x32xf32> to vector<16xf32>
    %275 = vector.shape_cast %274 : vector<16xf32> to vector<16x1xf32>
    %cst_165 = arith.constant 3.200000e+01 : f32
    %276 = vector.broadcast %cst_165 : f32 to vector<16x1xf32>
    %277 = arith.divf %275, %276 : vector<16x1xf32>
    %278 = vector.broadcast %277 : vector<16x1xf32> to vector<16x32xf32>
    %279 = arith.subf %269, %278 : vector<16x32xf32>
    %280 = arith.mulf %279, %279 : vector<16x32xf32>
    %cst_166 = arith.constant dense<0.000000e+00> : vector<16xf32>
    %281 = vector.multi_reduction <add>, %280, %cst_166 [1] : vector<16x32xf32> to vector<16xf32>
    %282 = vector.shape_cast %281 : vector<16xf32> to vector<16x1xf32>
    %cst_167 = arith.constant 3.200000e+01 : f32
    %283 = vector.broadcast %cst_167 : f32 to vector<16x1xf32>
    %284 = arith.divf %282, %283 : vector<16x1xf32>
    %cst_168 = arith.constant 9.99999974E-6 : f32
    %285 = vector.broadcast %cst_168 : f32 to vector<16x1xf32>
    %286 = arith.addf %284, %285 : vector<16x1xf32>
    %287 = math.rsqrt %286 : vector<16x1xf32>
    %288 = vector.broadcast %287 : vector<16x1xf32> to vector<16x32xf32>
    %289 = arith.mulf %279, %288 : vector<16x32xf32>
    %290 = vector.broadcast %271 : vector<1x32xf32> to vector<16x32xf32>
    %291 = arith.mulf %289, %290 : vector<16x32xf32>
    %292 = vector.broadcast %273 : vector<1x32xf32> to vector<16x32xf32>
    %293 = arith.addf %291, %292 : vector<16x32xf32>
    %294 = arith.addf %152, %293 : vector<16x32xf32>
    %c0_169 = arith.constant 0 : index
    %c0_170 = arith.constant 0 : index
    %295 = vector.load %arg25[%c0_169, %c0_170] : memref<1x32xf32, #tpu.memory_space<vmem>>, vector<1x32xf32>
    %296 = vector.broadcast %295 : vector<1x32xf32> to vector<16x32xf32>
    %297 = arith.mulf %294, %296 : vector<16x32xf32>
    %c0_171 = arith.constant 0 : index
    %c0_172 = arith.constant 0 : index
    %298 = vector.load %arg26[%c0_171, %c0_172] : memref<1x32xf32, #tpu.memory_space<vmem>>, vector<1x32xf32>
    %299 = vector.broadcast %298 : vector<1x32xf32> to vector<16x32xf32>
    %300 = arith.addf %297, %299 : vector<16x32xf32>
    %cst_173 = arith.constant 0.000000e+00 : f32
    %301 = vector.broadcast %cst_173 : f32 to vector<16x32xf32>
    %302 = arith.cmpf oge, %300, %301 : vector<16x32xf32>
    %cst_174 = arith.constant 1.500000e-01 : f32
    %303 = vector.broadcast %cst_174 : f32 to vector<16x32xf32>
    %304 = arith.mulf %303, %300 : vector<16x32xf32>
    %305 = arith.select %302, %300, %304 : vector<16x32xi1>, vector<16x32xf32>
    %c0_175 = arith.constant 0 : index
    %c0_176 = arith.constant 0 : index
    %306 = vector.load %arg27[%c0_175, %c0_176] : memref<7x32xf32, #tpu.memory_space<vmem>>, vector<7x32xf32>
    %cst_177 = arith.constant dense<0.000000e+00> : vector<32x32xf32>
    %307 = tpu.matmul %0, %306, %cst_177 {dimension_numbers = #tpu.dot_dimension_numbers<[1], [0], [0], [1], [0, 0, 1, 1], [], []>} : vector<32x7xf32>, vector<7x32xf32>, vector<32x32xf32> -> vector<32x32xf32>
    %c0_178 = arith.constant 0 : index
    %c0_179 = arith.constant 0 : index
    %308 = vector.load %arg28[%c0_178, %c0_179] : memref<1x32xf32, #tpu.memory_space<vmem>>, vector<1x32xf32>
    %309 = vector.broadcast %308 : vector<1x32xf32> to vector<32x32xf32>
    %310 = arith.addf %307, %309 : vector<32x32xf32>
    %cst_180 = arith.constant 0.000000e+00 : f32
    %311 = vector.broadcast %cst_180 : f32 to vector<32x32xf32>
    %312 = arith.cmpf oge, %310, %311 : vector<32x32xf32>
    %cst_181 = arith.constant 1.500000e-01 : f32
    %313 = vector.broadcast %cst_181 : f32 to vector<32x32xf32>
    %314 = arith.mulf %313, %310 : vector<32x32xf32>
    %315 = arith.select %312, %310, %314 : vector<32x32xi1>, vector<32x32xf32>
    %c0_182 = arith.constant 0 : index
    %c0_183 = arith.constant 0 : index
    %316 = vector.load %arg29[%c0_182, %c0_183] : memref<32x32xf32, #tpu.memory_space<vmem>>, vector<32x32xf32>
    %cst_184 = arith.constant dense<0.000000e+00> : vector<32x32xf32>
    %317 = tpu.matmul %315, %316, %cst_184 {dimension_numbers = #tpu.dot_dimension_numbers<[1], [0], [0], [1], [0, 0, 1, 1], [], []>} : vector<32x32xf32>, vector<32x32xf32>, vector<32x32xf32> -> vector<32x32xf32>
    %c0_185 = arith.constant 0 : index
    %c0_186 = arith.constant 0 : index
    %318 = vector.load %arg30[%c0_185, %c0_186] : memref<1x32xf32, #tpu.memory_space<vmem>>, vector<1x32xf32>
    %319 = vector.broadcast %318 : vector<1x32xf32> to vector<32x32xf32>
    %320 = arith.addf %317, %319 : vector<32x32xf32>
    %c0_187 = arith.constant 0 : index
    %c0_188 = arith.constant 0 : index
    %321 = vector.load %arg31[%c0_187, %c0_188] : memref<32x128xf32, #tpu.memory_space<vmem>>, vector<32x128xf32>
    %cst_189 = arith.constant dense<0.000000e+00> : vector<16x128xf32>
    %322 = tpu.matmul %305, %321, %cst_189 {dimension_numbers = #tpu.dot_dimension_numbers<[1], [0], [0], [1], [0, 0, 1, 1], [], []>} : vector<16x32xf32>, vector<32x128xf32>, vector<16x128xf32> -> vector<16x128xf32>
    %c0_190 = arith.constant 0 : index
    %c0_191 = arith.constant 0 : index
    %323 = vector.load %arg32[%c0_190, %c0_191] : memref<1x128xf32, #tpu.memory_space<vmem>>, vector<1x128xf32>
    %324 = vector.broadcast %323 : vector<1x128xf32> to vector<16x128xf32>
    %325 = arith.addf %322, %324 : vector<16x128xf32>
    %326 = vector.extract_strided_slice %325 {offsets = [0, 0], sizes = [16, 32], strides = [1, 1]} : vector<16x128xf32> to vector<16x32xf32>
    %327 = vector.extract_strided_slice %325 {offsets = [0, 32], sizes = [16, 32], strides = [1, 1]} : vector<16x128xf32> to vector<16x32xf32>
    %328 = vector.extract_strided_slice %325 {offsets = [0, 64], sizes = [16, 32], strides = [1, 1]} : vector<16x128xf32> to vector<16x32xf32>
    %329 = vector.extract_strided_slice %325 {offsets = [0, 96], sizes = [16, 32], strides = [1, 1]} : vector<16x128xf32> to vector<16x32xf32>
    %c0_192 = arith.constant 0 : index
    %c0_193 = arith.constant 0 : index
    %330 = vector.load %arg33[%c0_192, %c0_193] : memref<32x32xf32, #tpu.memory_space<vmem>>, vector<32x32xf32>
    %cst_194 = arith.constant dense<0.000000e+00> : vector<32x32xf32>
    %331 = tpu.matmul %320, %330, %cst_194 {dimension_numbers = #tpu.dot_dimension_numbers<[1], [0], [0], [1], [0, 0, 1, 1], [], []>} : vector<32x32xf32>, vector<32x32xf32>, vector<32x32xf32> -> vector<32x32xf32>
    %332 = arith.truncf %327 : vector<16x32xf32> to vector<16x32xbf16>
    %cst_195 = arith.constant dense<0.000000e+00> : vector<32x32xf32>
    %333 = tpu.matmul %1, %332, %cst_195 {dimension_numbers = #tpu.dot_dimension_numbers<[1], [0], [0], [1], [0, 0, 1, 1], [], []>} : vector<32x16xbf16>, vector<16x32xbf16>, vector<32x32xf32> -> vector<32x32xf32>
    %334 = arith.addf %333, %331 : vector<32x32xf32>
    %335 = arith.truncf %328 : vector<16x32xf32> to vector<16x32xbf16>
    %cst_196 = arith.constant dense<0.000000e+00> : vector<32x32xf32>
    %336 = tpu.matmul %1, %335, %cst_196 {dimension_numbers = #tpu.dot_dimension_numbers<[1], [0], [0], [1], [0, 0, 1, 1], [], []>} : vector<32x16xbf16>, vector<16x32xbf16>, vector<32x32xf32> -> vector<32x32xf32>
    %337 = arith.addf %336, %331 : vector<32x32xf32>
    %338 = arith.extf %2 : vector<16x32xbf16> to vector<16x32xf32>
    %cst_197 = arith.constant 1.000000e+00 : f32
    %339 = vector.broadcast %cst_197 : f32 to vector<16x32xf32>
    %340 = arith.subf %338, %339 : vector<16x32xf32>
    %cst_198 = arith.constant 1.000000e+30 : f32
    %341 = vector.broadcast %cst_198 : f32 to vector<16x32xf32>
    %342 = arith.mulf %340, %341 : vector<16x32xf32>
    %343 = vector.extract_strided_slice %326 {offsets = [0, 0], sizes = [16, 16], strides = [1, 1]} : vector<16x32xf32> to vector<16x16xf32>
    %344 = vector.extract_strided_slice %334 {offsets = [0, 0], sizes = [32, 16], strides = [1, 1]} : vector<32x32xf32> to vector<32x16xf32>
    %345 = vector.extract_strided_slice %337 {offsets = [0, 0], sizes = [32, 16], strides = [1, 1]} : vector<32x32xf32> to vector<32x16xf32>
    %cst_199 = arith.constant dense<0.000000e+00> : vector<16x32xf32>
    %346 = tpu.matmul %343, %344, %cst_199 {dimension_numbers = #tpu.dot_dimension_numbers<[1], [1], [0], [0], [0, 0, 1, 0], [], []>} : vector<16x16xf32>, vector<32x16xf32>, vector<16x32xf32> -> vector<16x32xf32>
    %cst_200 = arith.constant 2.500000e-01 : f32
    %347 = vector.broadcast %cst_200 : f32 to vector<16x32xf32>
    %348 = arith.mulf %346, %347 : vector<16x32xf32>
    %349 = arith.addf %348, %342 : vector<16x32xf32>
    %cst_201 = arith.constant dense<0xFF800000> : vector<16xf32>
    %350 = vector.multi_reduction <maximumf>, %349, %cst_201 [1] : vector<16x32xf32> to vector<16xf32>
    %351 = vector.shape_cast %350 : vector<16xf32> to vector<16x1xf32>
    %cst_202 = arith.constant -1.000000e+20 : f32
    %352 = vector.broadcast %cst_202 : f32 to vector<16x1xf32>
    %353 = arith.maximumf %351, %352 : vector<16x1xf32>
    %354 = vector.broadcast %353 : vector<16x1xf32> to vector<16x32xf32>
    %355 = arith.subf %349, %354 : vector<16x32xf32>
    %356 = math.exp %355 : vector<16x32xf32>
    %cst_203 = arith.constant dense<0.000000e+00> : vector<16xf32>
    %357 = vector.multi_reduction <add>, %356, %cst_203 [1] : vector<16x32xf32> to vector<16xf32>
    %358 = vector.shape_cast %357 : vector<16xf32> to vector<16x1xf32>
    %cst_204 = arith.constant 1.000000e-16 : f32
    %359 = vector.broadcast %cst_204 : f32 to vector<16x1xf32>
    %360 = arith.addf %358, %359 : vector<16x1xf32>
    %cst_205 = arith.constant dense<0.000000e+00> : vector<16x16xf32>
    %361 = tpu.matmul %356, %345, %cst_205 {dimension_numbers = #tpu.dot_dimension_numbers<[1], [0], [0], [1], [0, 0, 1, 1], [], []>} : vector<16x32xf32>, vector<32x16xf32>, vector<16x16xf32> -> vector<16x16xf32>
    %362 = tpu.reciprocal %360 {approx = true} : vector<16x1xf32> -> vector<16x1xf32>
    %363 = vector.broadcast %362 : vector<16x1xf32> to vector<16x16xf32>
    %364 = arith.mulf %361, %363 : vector<16x16xf32>
    %c0_206 = arith.constant 0 : index
    %c0_207 = arith.constant 0 : index
    %365 = vector.load %arg45[%c0_206, %c0_207] : memref<16x32xf32, #tpu.memory_space<vmem>>, vector<16x16xf32>
    tpu.vector_store %arg45[%c0_206, %c0_207], %364 {strides = array<i32>} : memref<16x32xf32, #tpu.memory_space<vmem>>, vector<16x16xf32>,
    %366 = vector.extract_strided_slice %326 {offsets = [0, 16], sizes = [16, 16], strides = [1, 1]} : vector<16x32xf32> to vector<16x16xf32>
    %367 = vector.extract_strided_slice %334 {offsets = [0, 16], sizes = [32, 16], strides = [1, 1]} : vector<32x32xf32> to vector<32x16xf32>
    %368 = vector.extract_strided_slice %337 {offsets = [0, 16], sizes = [32, 16], strides = [1, 1]} : vector<32x32xf32> to vector<32x16xf32>
    %cst_208 = arith.constant dense<0.000000e+00> : vector<16x32xf32>
    %369 = tpu.matmul %366, %367, %cst_208 {dimension_numbers = #tpu.dot_dimension_numbers<[1], [1], [0], [0], [0, 0, 1, 0], [], []>} : vector<16x16xf32>, vector<32x16xf32>, vector<16x32xf32> -> vector<16x32xf32>
    %cst_209 = arith.constant 2.500000e-01 : f32
    %370 = vector.broadcast %cst_209 : f32 to vector<16x32xf32>
    %371 = arith.mulf %369, %370 : vector<16x32xf32>
    %372 = arith.addf %371, %342 : vector<16x32xf32>
    %cst_210 = arith.constant dense<0xFF800000> : vector<16xf32>
    %373 = vector.multi_reduction <maximumf>, %372, %cst_210 [1] : vector<16x32xf32> to vector<16xf32>
    %374 = vector.shape_cast %373 : vector<16xf32> to vector<16x1xf32>
    %cst_211 = arith.constant -1.000000e+20 : f32
    %375 = vector.broadcast %cst_211 : f32 to vector<16x1xf32>
    %376 = arith.maximumf %374, %375 : vector<16x1xf32>
    %377 = vector.broadcast %376 : vector<16x1xf32> to vector<16x32xf32>
    %378 = arith.subf %372, %377 : vector<16x32xf32>
    %379 = math.exp %378 : vector<16x32xf32>
    %cst_212 = arith.constant dense<0.000000e+00> : vector<16xf32>
    %380 = vector.multi_reduction <add>, %379, %cst_212 [1] : vector<16x32xf32> to vector<16xf32>
    %381 = vector.shape_cast %380 : vector<16xf32> to vector<16x1xf32>
    %cst_213 = arith.constant 1.000000e-16 : f32
    %382 = vector.broadcast %cst_213 : f32 to vector<16x1xf32>
    %383 = arith.addf %381, %382 : vector<16x1xf32>
    %cst_214 = arith.constant dense<0.000000e+00> : vector<16x16xf32>
    %384 = tpu.matmul %379, %368, %cst_214 {dimension_numbers = #tpu.dot_dimension_numbers<[1], [0], [0], [1], [0, 0, 1, 1], [], []>} : vector<16x32xf32>, vector<32x16xf32>, vector<16x16xf32> -> vector<16x16xf32>
    %385 = tpu.reciprocal %383 {approx = true} : vector<16x1xf32> -> vector<16x1xf32>
    %386 = vector.broadcast %385 : vector<16x1xf32> to vector<16x16xf32>
    %387 = arith.mulf %384, %386 : vector<16x16xf32>
    %c0_215 = arith.constant 0 : index
    %c16 = arith.constant 16 : index
    %388 = vector.load %arg45[%c0_215, %c16] : memref<16x32xf32, #tpu.memory_space<vmem>>, vector<16x16xf32>
    tpu.vector_store %arg45[%c0_215, %c16], %387 {strides = array<i32>} : memref<16x32xf32, #tpu.memory_space<vmem>>, vector<16x16xf32>,
    %c0_216 = arith.constant 0 : index
    %c0_217 = arith.constant 0 : index
    %389 = vector.load %arg45[%c0_216, %c0_217] : memref<16x32xf32, #tpu.memory_space<vmem>>, vector<16x32xf32>
    %c0_218 = arith.constant 0 : index
    %c0_219 = arith.constant 0 : index
    %390 = vector.load %arg34[%c0_218, %c0_219] : memref<3x32xf32, #tpu.memory_space<vmem>>, vector<3x32xf32>
    %391 = vector.extract_strided_slice %390 {offsets = [0, 0], sizes = [1, 32], strides = [1, 1]} : vector<3x32xf32> to vector<1x32xf32>
    %392 = vector.broadcast %391 : vector<1x32xf32> to vector<16x32xf32>
    %393 = arith.mulf %389, %392 : vector<16x32xf32>
    %394 = vector.extract_strided_slice %390 {offsets = [1, 0], sizes = [1, 32], strides = [1, 1]} : vector<3x32xf32> to vector<1x32xf32>
    %395 = vector.broadcast %394 : vector<1x32xf32> to vector<16x32xf32>
    %396 = arith.mulf %329, %395 : vector<16x32xf32>
    %397 = arith.addf %393, %396 : vector<16x32xf32>
    %398 = arith.subf %389, %329 : vector<16x32xf32>
    %399 = vector.extract_strided_slice %390 {offsets = [2, 0], sizes = [1, 32], strides = [1, 1]} : vector<3x32xf32> to vector<1x32xf32>
    %400 = vector.broadcast %399 : vector<1x32xf32> to vector<16x32xf32>
    %401 = arith.mulf %398, %400 : vector<16x32xf32>
    %402 = arith.addf %397, %401 : vector<16x32xf32>
    %cst_220 = arith.constant dense<0.000000e+00> : vector<16xf32>
    %403 = vector.multi_reduction <add>, %402, %cst_220 [1] : vector<16x32xf32> to vector<16xf32>
    %404 = vector.shape_cast %403 : vector<16xf32> to vector<16x1xf32>
    %405 = arith.negf %404 : vector<16x1xf32>
    %406 = math.exp %405 : vector<16x1xf32>
    %cst_221 = arith.constant 1.000000e+00 : f32
    %407 = vector.broadcast %cst_221 : f32 to vector<16x1xf32>
    %408 = arith.addf %407, %406 : vector<16x1xf32>
    %409 = arith.divf %407, %408 : vector<16x1xf32>
    %410 = vector.broadcast %409 : vector<16x1xf32> to vector<16x32xf32>
    %411 = arith.mulf %410, %329 : vector<16x32xf32>
    %cst_222 = arith.constant 1.000000e+00 : f32
    %412 = vector.broadcast %cst_222 : f32 to vector<16x1xf32>
    %413 = arith.subf %412, %409 : vector<16x1xf32>
    %414 = vector.broadcast %413 : vector<16x1xf32> to vector<16x32xf32>
    %415 = arith.mulf %414, %389 : vector<16x32xf32>
    %416 = arith.addf %411, %415 : vector<16x32xf32>
    %c0_223 = arith.constant 0 : index
    %c0_224 = arith.constant 0 : index
    %417 = vector.load %arg35[%c0_223, %c0_224] : memref<1x32xf32, #tpu.memory_space<vmem>>, vector<1x32xf32>
    %418 = vector.broadcast %417 : vector<1x32xf32> to vector<16x32xf32>
    %419 = arith.mulf %416, %418 : vector<16x32xf32>
    %c0_225 = arith.constant 0 : index
    %c0_226 = arith.constant 0 : index
    %420 = vector.load %arg36[%c0_225, %c0_226] : memref<1x32xf32, #tpu.memory_space<vmem>>, vector<1x32xf32>
    %421 = vector.broadcast %420 : vector<1x32xf32> to vector<16x32xf32>
    %422 = arith.addf %419, %421 : vector<16x32xf32>
    %cst_227 = arith.constant 0.000000e+00 : f32
    %423 = vector.broadcast %cst_227 : f32 to vector<16x32xf32>
    %424 = arith.cmpf oge, %422, %423 : vector<16x32xf32>
    %cst_228 = arith.constant 1.500000e-01 : f32
    %425 = vector.broadcast %cst_228 : f32 to vector<16x32xf32>
    %426 = arith.mulf %425, %422 : vector<16x32xf32>
    %427 = arith.select %424, %422, %426 : vector<16x32xi1>, vector<16x32xf32>
    %428 = arith.addf %427, %305 : vector<16x32xf32>
    %c2 = arith.constant 2 : index
    %c0_229 = arith.constant 0 : index
    %c0_230 = arith.constant 0 : index
    %429 = vector.load %arg9[%c2, %c0_229, %c0_230] : memref<4x7x32xf32, #tpu.memory_space<vmem>>, vector<1x7x32xf32>
    %430 = vector.shape_cast %429 : vector<1x7x32xf32> to vector<7x32xf32>
    %cst_231 = arith.constant dense<0.000000e+00> : vector<32x32xf32>
    %431 = tpu.matmul %0, %430, %cst_231 {dimension_numbers = #tpu.dot_dimension_numbers<[1], [0], [0], [1], [0, 0, 1, 1], [], []>} : vector<32x7xf32>, vector<7x32xf32>, vector<32x32xf32> -> vector<32x32xf32>
    %c2_232 = arith.constant 2 : index
    %c0_233 = arith.constant 0 : index
    %c0_234 = arith.constant 0 : index
    %432 = vector.load %arg10[%c2_232, %c0_233, %c0_234] : memref<4x1x32xf32, #tpu.memory_space<vmem>>, vector<1x1x32xf32>
    %433 = vector.shape_cast %432 : vector<1x1x32xf32> to vector<1x32xf32>
    %434 = vector.broadcast %433 : vector<1x32xf32> to vector<32x32xf32>
    %435 = arith.addf %431, %434 : vector<32x32xf32>
    %c2_235 = arith.constant 2 : index
    %c0_236 = arith.constant 0 : index
    %c0_237 = arith.constant 0 : index
    %436 = vector.load %arg11[%c2_235, %c0_236, %c0_237] : memref<4x1x32xf32, #tpu.memory_space<vmem>>, vector<1x1x32xf32>
    %437 = vector.shape_cast %436 : vector<1x1x32xf32> to vector<1x32xf32>
    %c2_238 = arith.constant 2 : index
    %c0_239 = arith.constant 0 : index
    %c0_240 = arith.constant 0 : index
    %438 = vector.load %arg12[%c2_238, %c0_239, %c0_240] : memref<4x1x32xf32, #tpu.memory_space<vmem>>, vector<1x1x32xf32>
    %439 = vector.shape_cast %438 : vector<1x1x32xf32> to vector<1x32xf32>
    %cst_241 = arith.constant dense<0.000000e+00> : vector<32xf32>
    %440 = vector.multi_reduction <add>, %435, %cst_241 [1] : vector<32x32xf32> to vector<32xf32>
    %441 = vector.shape_cast %440 : vector<32xf32> to vector<32x1xf32>
    %cst_242 = arith.constant 3.200000e+01 : f32
    %442 = vector.broadcast %cst_242 : f32 to vector<32x1xf32>
    %443 = arith.divf %441, %442 : vector<32x1xf32>
    %444 = vector.broadcast %443 : vector<32x1xf32> to vector<32x32xf32>
    %445 = arith.subf %435, %444 : vector<32x32xf32>
    %446 = arith.mulf %445, %445 : vector<32x32xf32>
    %cst_243 = arith.constant dense<0.000000e+00> : vector<32xf32>
    %447 = vector.multi_reduction <add>, %446, %cst_243 [1] : vector<32x32xf32> to vector<32xf32>
    %448 = vector.shape_cast %447 : vector<32xf32> to vector<32x1xf32>
    %cst_244 = arith.constant 3.200000e+01 : f32
    %449 = vector.broadcast %cst_244 : f32 to vector<32x1xf32>
    %450 = arith.divf %448, %449 : vector<32x1xf32>
    %cst_245 = arith.constant 9.99999974E-6 : f32
    %451 = vector.broadcast %cst_245 : f32 to vector<32x1xf32>
    %452 = arith.addf %450, %451 : vector<32x1xf32>
    %453 = math.rsqrt %452 : vector<32x1xf32>
    %454 = vector.broadcast %453 : vector<32x1xf32> to vector<32x32xf32>
    %455 = arith.mulf %445, %454 : vector<32x32xf32>
    %456 = vector.broadcast %437 : vector<1x32xf32> to vector<32x32xf32>
    %457 = arith.mulf %455, %456 : vector<32x32xf32>
    %458 = vector.broadcast %439 : vector<1x32xf32> to vector<32x32xf32>
    %459 = arith.addf %457, %458 : vector<32x32xf32>
    %cst_246 = arith.constant 0.000000e+00 : f32
    %460 = vector.broadcast %cst_246 : f32 to vector<32x32xf32>
    %461 = arith.cmpf oge, %459, %460 : vector<32x32xf32>
    %cst_247 = arith.constant 1.500000e-01 : f32
    %462 = vector.broadcast %cst_247 : f32 to vector<32x32xf32>
    %463 = arith.mulf %462, %459 : vector<32x32xf32>
    %464 = arith.select %461, %459, %463 : vector<32x32xi1>, vector<32x32xf32>
    %c2_248 = arith.constant 2 : index
    %c0_249 = arith.constant 0 : index
    %c0_250 = arith.constant 0 : index
    %465 = vector.load %arg13[%c2_248, %c0_249, %c0_250] : memref<4x32x32xf32, #tpu.memory_space<vmem>>, vector<1x32x32xf32>
    %466 = vector.shape_cast %465 : vector<1x32x32xf32> to vector<32x32xf32>
    %cst_251 = arith.constant dense<0.000000e+00> : vector<32x32xf32>
    %467 = tpu.matmul %464, %466, %cst_251 {dimension_numbers = #tpu.dot_dimension_numbers<[1], [0], [0], [1], [0, 0, 1, 1], [], []>} : vector<32x32xf32>, vector<32x32xf32>, vector<32x32xf32> -> vector<32x32xf32>
    %c2_252 = arith.constant 2 : index
    %c0_253 = arith.constant 0 : index
    %c0_254 = arith.constant 0 : index
    %468 = vector.load %arg14[%c2_252, %c0_253, %c0_254] : memref<4x1x32xf32, #tpu.memory_space<vmem>>, vector<1x1x32xf32>
    %469 = vector.shape_cast %468 : vector<1x1x32xf32> to vector<1x32xf32>
    %470 = vector.broadcast %469 : vector<1x32xf32> to vector<32x32xf32>
    %471 = arith.addf %467, %470 : vector<32x32xf32>
    %cst_255 = arith.constant 0.000000e+00 : f32
    %472 = vector.broadcast %cst_255 : f32 to vector<32x32xf32>
    %473 = arith.cmpf oge, %471, %472 : vector<32x32xf32>
    %cst_256 = arith.constant 1.500000e-01 : f32
    %474 = vector.broadcast %cst_256 : f32 to vector<32x32xf32>
    %475 = arith.mulf %474, %471 : vector<32x32xf32>
    %476 = arith.select %473, %471, %475 : vector<32x32xi1>, vector<32x32xf32>
    %c2_257 = arith.constant 2 : index
    %c0_258 = arith.constant 0 : index
    %c0_259 = arith.constant 0 : index
    %477 = vector.load %arg15[%c2_257, %c0_258, %c0_259] : memref<4x32x32xf32, #tpu.memory_space<vmem>>, vector<1x32x32xf32>
    %478 = vector.shape_cast %477 : vector<1x32x32xf32> to vector<32x32xf32>
    %cst_260 = arith.constant dense<0.000000e+00> : vector<32x32xf32>
    %479 = tpu.matmul %476, %478, %cst_260 {dimension_numbers = #tpu.dot_dimension_numbers<[1], [0], [0], [1], [0, 0, 1, 1], [], []>} : vector<32x32xf32>, vector<32x32xf32>, vector<32x32xf32> -> vector<32x32xf32>
    %c2_261 = arith.constant 2 : index
    %c0_262 = arith.constant 0 : index
    %c0_263 = arith.constant 0 : index
    %480 = vector.load %arg16[%c2_261, %c0_262, %c0_263] : memref<4x1x32xf32, #tpu.memory_space<vmem>>, vector<1x1x32xf32>
    %481 = vector.shape_cast %480 : vector<1x1x32xf32> to vector<1x32xf32>
    %482 = vector.broadcast %481 : vector<1x32xf32> to vector<32x32xf32>
    %483 = arith.addf %479, %482 : vector<32x32xf32>
    %484 = arith.truncf %428 : vector<16x32xf32> to vector<16x32xbf16>
    %cst_264 = arith.constant dense<0.000000e+00> : vector<32x32xf32>
    %485 = tpu.matmul %1, %484, %cst_264 {dimension_numbers = #tpu.dot_dimension_numbers<[1], [0], [0], [1], [0, 0, 1, 1], [], []>} : vector<32x16xbf16>, vector<16x32xbf16>, vector<32x32xf32> -> vector<32x32xf32>
    %486 = arith.negf %483 : vector<32x32xf32>
    %487 = math.exp %486 : vector<32x32xf32>
    %cst_265 = arith.constant 1.000000e+00 : f32
    %488 = vector.broadcast %cst_265 : f32 to vector<32x32xf32>
    %489 = arith.addf %488, %487 : vector<32x32xf32>
    %490 = arith.divf %488, %489 : vector<32x32xf32>
    %491 = arith.mulf %490, %485 : vector<32x32xf32>
    %cst_266 = arith.constant 1.000000e+00 : f32
    %492 = vector.broadcast %cst_266 : f32 to vector<32x32xf32>
    %493 = arith.subf %492, %490 : vector<32x32xf32>
    %494 = arith.mulf %493, %483 : vector<32x32xf32>
    %495 = arith.addf %491, %494 : vector<32x32xf32>
    %496 = arith.truncf %495 : vector<32x32xf32> to vector<32x32xbf16>
    %cst_267 = arith.constant dense<0.000000e+00> : vector<16x32xf32>
    %497 = tpu.matmul %2, %496, %cst_267 {dimension_numbers = #tpu.dot_dimension_numbers<[1], [0], [0], [1], [0, 0, 1, 1], [], []>} : vector<16x32xbf16>, vector<32x32xbf16>, vector<16x32xf32> -> vector<16x32xf32>
    %c2_268 = arith.constant 2 : index
    %498 = memref.load %arg8[%c2_268] : memref<4xf32, #tpu.memory_space<smem>>
    %cst_269 = arith.constant 1.000000e+00 : f32
    %499 = arith.addf %cst_269, %498 : f32
    %500 = vector.broadcast %499 : f32 to vector<16x32xf32>
    %501 = arith.mulf %500, %428 : vector<16x32xf32>
    %502 = arith.addf %501, %497 : vector<16x32xf32>
    %c2_270 = arith.constant 2 : index
    %c0_271 = arith.constant 0 : index
    %c0_272 = arith.constant 0 : index
    %503 = vector.load %arg17[%c2_270, %c0_271, %c0_272] : memref<4x32x64xf32, #tpu.memory_space<vmem>>, vector<1x32x64xf32>
    %504 = vector.shape_cast %503 : vector<1x32x64xf32> to vector<32x64xf32>
    %cst_273 = arith.constant dense<0.000000e+00> : vector<16x64xf32>
    %505 = tpu.matmul %502, %504, %cst_273 {dimension_numbers = #tpu.dot_dimension_numbers<[1], [0], [0], [1], [0, 0, 1, 1], [], []>} : vector<16x32xf32>, vector<32x64xf32>, vector<16x64xf32> -> vector<16x64xf32>
    %c2_274 = arith.constant 2 : index
    %c0_275 = arith.constant 0 : index
    %c0_276 = arith.constant 0 : index
    %506 = vector.load %arg18[%c2_274, %c0_275, %c0_276] : memref<4x1x64xf32, #tpu.memory_space<vmem>>, vector<1x1x64xf32>
    %507 = vector.shape_cast %506 : vector<1x1x64xf32> to vector<1x64xf32>
    %508 = vector.broadcast %507 : vector<1x64xf32> to vector<16x64xf32>
    %509 = arith.addf %505, %508 : vector<16x64xf32>
    %c2_277 = arith.constant 2 : index
    %c0_278 = arith.constant 0 : index
    %c0_279 = arith.constant 0 : index
    %510 = vector.load %arg19[%c2_277, %c0_278, %c0_279] : memref<4x1x64xf32, #tpu.memory_space<vmem>>, vector<1x1x64xf32>
    %511 = vector.shape_cast %510 : vector<1x1x64xf32> to vector<1x64xf32>
    %c2_280 = arith.constant 2 : index
    %c0_281 = arith.constant 0 : index
    %c0_282 = arith.constant 0 : index
    %512 = vector.load %arg20[%c2_280, %c0_281, %c0_282] : memref<4x1x64xf32, #tpu.memory_space<vmem>>, vector<1x1x64xf32>
    %513 = vector.shape_cast %512 : vector<1x1x64xf32> to vector<1x64xf32>
    %cst_283 = arith.constant dense<0.000000e+00> : vector<16xf32>
    %514 = vector.multi_reduction <add>, %509, %cst_283 [1] : vector<16x64xf32> to vector<16xf32>
    %515 = vector.shape_cast %514 : vector<16xf32> to vector<16x1xf32>
    %cst_284 = arith.constant 6.400000e+01 : f32
    %516 = vector.broadcast %cst_284 : f32 to vector<16x1xf32>
    %517 = arith.divf %515, %516 : vector<16x1xf32>
    %518 = vector.broadcast %517 : vector<16x1xf32> to vector<16x64xf32>
    %519 = arith.subf %509, %518 : vector<16x64xf32>
    %520 = arith.mulf %519, %519 : vector<16x64xf32>
    %cst_285 = arith.constant dense<0.000000e+00> : vector<16xf32>
    %521 = vector.multi_reduction <add>, %520, %cst_285 [1] : vector<16x64xf32> to vector<16xf32>
    %522 = vector.shape_cast %521 : vector<16xf32> to vector<16x1xf32>
    %cst_286 = arith.constant 6.400000e+01 : f32
    %523 = vector.broadcast %cst_286 : f32 to vector<16x1xf32>
    %524 = arith.divf %522, %523 : vector<16x1xf32>
    %cst_287 = arith.constant 9.99999974E-6 : f32
    %525 = vector.broadcast %cst_287 : f32 to vector<16x1xf32>
    %526 = arith.addf %524, %525 : vector<16x1xf32>
    %527 = math.rsqrt %526 : vector<16x1xf32>
    %528 = vector.broadcast %527 : vector<16x1xf32> to vector<16x64xf32>
    %529 = arith.mulf %519, %528 : vector<16x64xf32>
    %530 = vector.broadcast %511 : vector<1x64xf32> to vector<16x64xf32>
    %531 = arith.mulf %529, %530 : vector<16x64xf32>
    %532 = vector.broadcast %513 : vector<1x64xf32> to vector<16x64xf32>
    %533 = arith.addf %531, %532 : vector<16x64xf32>
    %cst_288 = arith.constant 0.000000e+00 : f32
    %534 = vector.broadcast %cst_288 : f32 to vector<16x64xf32>
    %535 = arith.cmpf oge, %533, %534 : vector<16x64xf32>
    %cst_289 = arith.constant 1.500000e-01 : f32
    %536 = vector.broadcast %cst_289 : f32 to vector<16x64xf32>
    %537 = arith.mulf %536, %533 : vector<16x64xf32>
    %538 = arith.select %535, %533, %537 : vector<16x64xi1>, vector<16x64xf32>
    %c2_290 = arith.constant 2 : index
    %c0_291 = arith.constant 0 : index
    %c0_292 = arith.constant 0 : index
    %539 = vector.load %arg21[%c2_290, %c0_291, %c0_292] : memref<4x64x32xf32, #tpu.memory_space<vmem>>, vector<1x64x32xf32>
    %540 = vector.shape_cast %539 : vector<1x64x32xf32> to vector<64x32xf32>
    %cst_293 = arith.constant dense<0.000000e+00> : vector<16x32xf32>
    %541 = tpu.matmul %538, %540, %cst_293 {dimension_numbers = #tpu.dot_dimension_numbers<[1], [0], [0], [1], [0, 0, 1, 1], [], []>} : vector<16x64xf32>, vector<64x32xf32>, vector<16x32xf32> -> vector<16x32xf32>
    %c2_294 = arith.constant 2 : index
    %c0_295 = arith.constant 0 : index
    %c0_296 = arith.constant 0 : index
    %542 = vector.load %arg22[%c2_294, %c0_295, %c0_296] : memref<4x1x32xf32, #tpu.memory_space<vmem>>, vector<1x1x32xf32>
    %543 = vector.shape_cast %542 : vector<1x1x32xf32> to vector<1x32xf32>
    %544 = vector.broadcast %543 : vector<1x32xf32> to vector<16x32xf32>
    %545 = arith.addf %541, %544 : vector<16x32xf32>
    %c2_297 = arith.constant 2 : index
    %c0_298 = arith.constant 0 : index
    %c0_299 = arith.constant 0 : index
    %546 = vector.load %arg23[%c2_297, %c0_298, %c0_299] : memref<4x1x32xf32, #tpu.memory_space<vmem>>, vector<1x1x32xf32>
    %547 = vector.shape_cast %546 : vector<1x1x32xf32> to vector<1x32xf32>
    %c2_300 = arith.constant 2 : index
    %c0_301 = arith.constant 0 : index
    %c0_302 = arith.constant 0 : index
    %548 = vector.load %arg24[%c2_300, %c0_301, %c0_302] : memref<4x1x32xf32, #tpu.memory_space<vmem>>, vector<1x1x32xf32>
    %549 = vector.shape_cast %548 : vector<1x1x32xf32> to vector<1x32xf32>
    %cst_303 = arith.constant dense<0.000000e+00> : vector<16xf32>
    %550 = vector.multi_reduction <add>, %545, %cst_303 [1] : vector<16x32xf32> to vector<16xf32>
    %551 = vector.shape_cast %550 : vector<16xf32> to vector<16x1xf32>
    %cst_304 = arith.constant 3.200000e+01 : f32
    %552 = vector.broadcast %cst_304 : f32 to vector<16x1xf32>
    %553 = arith.divf %551, %552 : vector<16x1xf32>
    %554 = vector.broadcast %553 : vector<16x1xf32> to vector<16x32xf32>
    %555 = arith.subf %545, %554 : vector<16x32xf32>
    %556 = arith.mulf %555, %555 : vector<16x32xf32>
    %cst_305 = arith.constant dense<0.000000e+00> : vector<16xf32>
    %557 = vector.multi_reduction <add>, %556, %cst_305 [1] : vector<16x32xf32> to vector<16xf32>
    %558 = vector.shape_cast %557 : vector<16xf32> to vector<16x1xf32>
    %cst_306 = arith.constant 3.200000e+01 : f32
    %559 = vector.broadcast %cst_306 : f32 to vector<16x1xf32>
    %560 = arith.divf %558, %559 : vector<16x1xf32>
    %cst_307 = arith.constant 9.99999974E-6 : f32
    %561 = vector.broadcast %cst_307 : f32 to vector<16x1xf32>
    %562 = arith.addf %560, %561 : vector<16x1xf32>
    %563 = math.rsqrt %562 : vector<16x1xf32>
    %564 = vector.broadcast %563 : vector<16x1xf32> to vector<16x32xf32>
    %565 = arith.mulf %555, %564 : vector<16x32xf32>
    %566 = vector.broadcast %547 : vector<1x32xf32> to vector<16x32xf32>
    %567 = arith.mulf %565, %566 : vector<16x32xf32>
    %568 = vector.broadcast %549 : vector<1x32xf32> to vector<16x32xf32>
    %569 = arith.addf %567, %568 : vector<16x32xf32>
    %570 = arith.addf %428, %569 : vector<16x32xf32>
    %c3 = arith.constant 3 : index
    %c0_308 = arith.constant 0 : index
    %c0_309 = arith.constant 0 : index
    %571 = vector.load %arg9[%c3, %c0_308, %c0_309] : memref<4x7x32xf32, #tpu.memory_space<vmem>>, vector<1x7x32xf32>
    %572 = vector.shape_cast %571 : vector<1x7x32xf32> to vector<7x32xf32>
    %cst_310 = arith.constant dense<0.000000e+00> : vector<32x32xf32>
    %573 = tpu.matmul %0, %572, %cst_310 {dimension_numbers = #tpu.dot_dimension_numbers<[1], [0], [0], [1], [0, 0, 1, 1], [], []>} : vector<32x7xf32>, vector<7x32xf32>, vector<32x32xf32> -> vector<32x32xf32>
    %c3_311 = arith.constant 3 : index
    %c0_312 = arith.constant 0 : index
    %c0_313 = arith.constant 0 : index
    %574 = vector.load %arg10[%c3_311, %c0_312, %c0_313] : memref<4x1x32xf32, #tpu.memory_space<vmem>>, vector<1x1x32xf32>
    %575 = vector.shape_cast %574 : vector<1x1x32xf32> to vector<1x32xf32>
    %576 = vector.broadcast %575 : vector<1x32xf32> to vector<32x32xf32>
    %577 = arith.addf %573, %576 : vector<32x32xf32>
    %c3_314 = arith.constant 3 : index
    %c0_315 = arith.constant 0 : index
    %c0_316 = arith.constant 0 : index
    %578 = vector.load %arg11[%c3_314, %c0_315, %c0_316] : memref<4x1x32xf32, #tpu.memory_space<vmem>>, vector<1x1x32xf32>
    %579 = vector.shape_cast %578 : vector<1x1x32xf32> to vector<1x32xf32>
    %c3_317 = arith.constant 3 : index
    %c0_318 = arith.constant 0 : index
    %c0_319 = arith.constant 0 : index
    %580 = vector.load %arg12[%c3_317, %c0_318, %c0_319] : memref<4x1x32xf32, #tpu.memory_space<vmem>>, vector<1x1x32xf32>
    %581 = vector.shape_cast %580 : vector<1x1x32xf32> to vector<1x32xf32>
    %cst_320 = arith.constant dense<0.000000e+00> : vector<32xf32>
    %582 = vector.multi_reduction <add>, %577, %cst_320 [1] : vector<32x32xf32> to vector<32xf32>
    %583 = vector.shape_cast %582 : vector<32xf32> to vector<32x1xf32>
    %cst_321 = arith.constant 3.200000e+01 : f32
    %584 = vector.broadcast %cst_321 : f32 to vector<32x1xf32>
    %585 = arith.divf %583, %584 : vector<32x1xf32>
    %586 = vector.broadcast %585 : vector<32x1xf32> to vector<32x32xf32>
    %587 = arith.subf %577, %586 : vector<32x32xf32>
    %588 = arith.mulf %587, %587 : vector<32x32xf32>
    %cst_322 = arith.constant dense<0.000000e+00> : vector<32xf32>
    %589 = vector.multi_reduction <add>, %588, %cst_322 [1] : vector<32x32xf32> to vector<32xf32>
    %590 = vector.shape_cast %589 : vector<32xf32> to vector<32x1xf32>
    %cst_323 = arith.constant 3.200000e+01 : f32
    %591 = vector.broadcast %cst_323 : f32 to vector<32x1xf32>
    %592 = arith.divf %590, %591 : vector<32x1xf32>
    %cst_324 = arith.constant 9.99999974E-6 : f32
    %593 = vector.broadcast %cst_324 : f32 to vector<32x1xf32>
    %594 = arith.addf %592, %593 : vector<32x1xf32>
    %595 = math.rsqrt %594 : vector<32x1xf32>
    %596 = vector.broadcast %595 : vector<32x1xf32> to vector<32x32xf32>
    %597 = arith.mulf %587, %596 : vector<32x32xf32>
    %598 = vector.broadcast %579 : vector<1x32xf32> to vector<32x32xf32>
    %599 = arith.mulf %597, %598 : vector<32x32xf32>
    %600 = vector.broadcast %581 : vector<1x32xf32> to vector<32x32xf32>
    %601 = arith.addf %599, %600 : vector<32x32xf32>
    %cst_325 = arith.constant 0.000000e+00 : f32
    %602 = vector.broadcast %cst_325 : f32 to vector<32x32xf32>
    %603 = arith.cmpf oge, %601, %602 : vector<32x32xf32>
    %cst_326 = arith.constant 1.500000e-01 : f32
    %604 = vector.broadcast %cst_326 : f32 to vector<32x32xf32>
    %605 = arith.mulf %604, %601 : vector<32x32xf32>
    %606 = arith.select %603, %601, %605 : vector<32x32xi1>, vector<32x32xf32>
    %c3_327 = arith.constant 3 : index
    %c0_328 = arith.constant 0 : index
    %c0_329 = arith.constant 0 : index
    %607 = vector.load %arg13[%c3_327, %c0_328, %c0_329] : memref<4x32x32xf32, #tpu.memory_space<vmem>>, vector<1x32x32xf32>
    %608 = vector.shape_cast %607 : vector<1x32x32xf32> to vector<32x32xf32>
    %cst_330 = arith.constant dense<0.000000e+00> : vector<32x32xf32>
    %609 = tpu.matmul %606, %608, %cst_330 {dimension_numbers = #tpu.dot_dimension_numbers<[1], [0], [0], [1], [0, 0, 1, 1], [], []>} : vector<32x32xf32>, vector<32x32xf32>, vector<32x32xf32> -> vector<32x32xf32>
    %c3_331 = arith.constant 3 : index
    %c0_332 = arith.constant 0 : index
    %c0_333 = arith.constant 0 : index
    %610 = vector.load %arg14[%c3_331, %c0_332, %c0_333] : memref<4x1x32xf32, #tpu.memory_space<vmem>>, vector<1x1x32xf32>
    %611 = vector.shape_cast %610 : vector<1x1x32xf32> to vector<1x32xf32>
    %612 = vector.broadcast %611 : vector<1x32xf32> to vector<32x32xf32>
    %613 = arith.addf %609, %612 : vector<32x32xf32>
    %cst_334 = arith.constant 0.000000e+00 : f32
    %614 = vector.broadcast %cst_334 : f32 to vector<32x32xf32>
    %615 = arith.cmpf oge, %613, %614 : vector<32x32xf32>
    %cst_335 = arith.constant 1.500000e-01 : f32
    %616 = vector.broadcast %cst_335 : f32 to vector<32x32xf32>
    %617 = arith.mulf %616, %613 : vector<32x32xf32>
    %618 = arith.select %615, %613, %617 : vector<32x32xi1>, vector<32x32xf32>
    %c3_336 = arith.constant 3 : index
    %c0_337 = arith.constant 0 : index
    %c0_338 = arith.constant 0 : index
    %619 = vector.load %arg15[%c3_336, %c0_337, %c0_338] : memref<4x32x32xf32, #tpu.memory_space<vmem>>, vector<1x32x32xf32>
    %620 = vector.shape_cast %619 : vector<1x32x32xf32> to vector<32x32xf32>
    %cst_339 = arith.constant dense<0.000000e+00> : vector<32x32xf32>
    %621 = tpu.matmul %618, %620, %cst_339 {dimension_numbers = #tpu.dot_dimension_numbers<[1], [0], [0], [1], [0, 0, 1, 1], [], []>} : vector<32x32xf32>, vector<32x32xf32>, vector<32x32xf32> -> vector<32x32xf32>
    %c3_340 = arith.constant 3 : index
    %c0_341 = arith.constant 0 : index
    %c0_342 = arith.constant 0 : index
    %622 = vector.load %arg16[%c3_340, %c0_341, %c0_342] : memref<4x1x32xf32, #tpu.memory_space<vmem>>, vector<1x1x32xf32>
    %623 = vector.shape_cast %622 : vector<1x1x32xf32> to vector<1x32xf32>
    %624 = vector.broadcast %623 : vector<1x32xf32> to vector<32x32xf32>
    %625 = arith.addf %621, %624 : vector<32x32xf32>
    %626 = arith.truncf %570 : vector<16x32xf32> to vector<16x32xbf16>
    %cst_343 = arith.constant dense<0.000000e+00> : vector<32x32xf32>
    %627 = tpu.matmul %1, %626, %cst_343 {dimension_numbers = #tpu.dot_dimension_numbers<[1], [0], [0], [1], [0, 0, 1, 1], [], []>} : vector<32x16xbf16>, vector<16x32xbf16>, vector<32x32xf32> -> vector<32x32xf32>
    %628 = arith.negf %625 : vector<32x32xf32>
    %629 = math.exp %628 : vector<32x32xf32>
    %cst_344 = arith.constant 1.000000e+00 : f32
    %630 = vector.broadcast %cst_344 : f32 to vector<32x32xf32>
    %631 = arith.addf %630, %629 : vector<32x32xf32>
    %632 = arith.divf %630, %631 : vector<32x32xf32>
    %633 = arith.mulf %632, %627 : vector<32x32xf32>
    %cst_345 = arith.constant 1.000000e+00 : f32
    %634 = vector.broadcast %cst_345 : f32 to vector<32x32xf32>
    %635 = arith.subf %634, %632 : vector<32x32xf32>
    %636 = arith.mulf %635, %625 : vector<32x32xf32>
    %637 = arith.addf %633, %636 : vector<32x32xf32>
    %638 = arith.truncf %637 : vector<32x32xf32> to vector<32x32xbf16>
    %cst_346 = arith.constant dense<0.000000e+00> : vector<16x32xf32>
    %639 = tpu.matmul %2, %638, %cst_346 {dimension_numbers = #tpu.dot_dimension_numbers<[1], [0], [0], [1], [0, 0, 1, 1], [], []>} : vector<16x32xbf16>, vector<32x32xbf16>, vector<16x32xf32> -> vector<16x32xf32>
    %c3_347 = arith.constant 3 : index
    %640 = memref.load %arg8[%c3_347] : memref<4xf32, #tpu.memory_space<smem>>
    %cst_348 = arith.constant 1.000000e+00 : f32
    %641 = arith.addf %cst_348, %640 : f32
    %642 = vector.broadcast %641 : f32 to vector<16x32xf32>
    %643 = arith.mulf %642, %570 : vector<16x32xf32>
    %644 = arith.addf %643, %639 : vector<16x32xf32>
    %c3_349 = arith.constant 3 : index
    %c0_350 = arith.constant 0 : index
    %c0_351 = arith.constant 0 : index
    %645 = vector.load %arg17[%c3_349, %c0_350, %c0_351] : memref<4x32x64xf32, #tpu.memory_space<vmem>>, vector<1x32x64xf32>
    %646 = vector.shape_cast %645 : vector<1x32x64xf32> to vector<32x64xf32>
    %cst_352 = arith.constant dense<0.000000e+00> : vector<16x64xf32>
    %647 = tpu.matmul %644, %646, %cst_352 {dimension_numbers = #tpu.dot_dimension_numbers<[1], [0], [0], [1], [0, 0, 1, 1], [], []>} : vector<16x32xf32>, vector<32x64xf32>, vector<16x64xf32> -> vector<16x64xf32>
    %c3_353 = arith.constant 3 : index
    %c0_354 = arith.constant 0 : index
    %c0_355 = arith.constant 0 : index
    %648 = vector.load %arg18[%c3_353, %c0_354, %c0_355] : memref<4x1x64xf32, #tpu.memory_space<vmem>>, vector<1x1x64xf32>
    %649 = vector.shape_cast %648 : vector<1x1x64xf32> to vector<1x64xf32>
    %650 = vector.broadcast %649 : vector<1x64xf32> to vector<16x64xf32>
    %651 = arith.addf %647, %650 : vector<16x64xf32>
    %c3_356 = arith.constant 3 : index
    %c0_357 = arith.constant 0 : index
    %c0_358 = arith.constant 0 : index
    %652 = vector.load %arg19[%c3_356, %c0_357, %c0_358] : memref<4x1x64xf32, #tpu.memory_space<vmem>>, vector<1x1x64xf32>
    %653 = vector.shape_cast %652 : vector<1x1x64xf32> to vector<1x64xf32>
    %c3_359 = arith.constant 3 : index
    %c0_360 = arith.constant 0 : index
    %c0_361 = arith.constant 0 : index
    %654 = vector.load %arg20[%c3_359, %c0_360, %c0_361] : memref<4x1x64xf32, #tpu.memory_space<vmem>>, vector<1x1x64xf32>
    %655 = vector.shape_cast %654 : vector<1x1x64xf32> to vector<1x64xf32>
    %cst_362 = arith.constant dense<0.000000e+00> : vector<16xf32>
    %656 = vector.multi_reduction <add>, %651, %cst_362 [1] : vector<16x64xf32> to vector<16xf32>
    %657 = vector.shape_cast %656 : vector<16xf32> to vector<16x1xf32>
    %cst_363 = arith.constant 6.400000e+01 : f32
    %658 = vector.broadcast %cst_363 : f32 to vector<16x1xf32>
    %659 = arith.divf %657, %658 : vector<16x1xf32>
    %660 = vector.broadcast %659 : vector<16x1xf32> to vector<16x64xf32>
    %661 = arith.subf %651, %660 : vector<16x64xf32>
    %662 = arith.mulf %661, %661 : vector<16x64xf32>
    %cst_364 = arith.constant dense<0.000000e+00> : vector<16xf32>
    %663 = vector.multi_reduction <add>, %662, %cst_364 [1] : vector<16x64xf32> to vector<16xf32>
    %664 = vector.shape_cast %663 : vector<16xf32> to vector<16x1xf32>
    %cst_365 = arith.constant 6.400000e+01 : f32
    %665 = vector.broadcast %cst_365 : f32 to vector<16x1xf32>
    %666 = arith.divf %664, %665 : vector<16x1xf32>
    %cst_366 = arith.constant 9.99999974E-6 : f32
    %667 = vector.broadcast %cst_366 : f32 to vector<16x1xf32>
    %668 = arith.addf %666, %667 : vector<16x1xf32>
    %669 = math.rsqrt %668 : vector<16x1xf32>
    %670 = vector.broadcast %669 : vector<16x1xf32> to vector<16x64xf32>
    %671 = arith.mulf %661, %670 : vector<16x64xf32>
    %672 = vector.broadcast %653 : vector<1x64xf32> to vector<16x64xf32>
    %673 = arith.mulf %671, %672 : vector<16x64xf32>
    %674 = vector.broadcast %655 : vector<1x64xf32> to vector<16x64xf32>
    %675 = arith.addf %673, %674 : vector<16x64xf32>
    %cst_367 = arith.constant 0.000000e+00 : f32
    %676 = vector.broadcast %cst_367 : f32 to vector<16x64xf32>
    %677 = arith.cmpf oge, %675, %676 : vector<16x64xf32>
    %cst_368 = arith.constant 1.500000e-01 : f32
    %678 = vector.broadcast %cst_368 : f32 to vector<16x64xf32>
    %679 = arith.mulf %678, %675 : vector<16x64xf32>
    %680 = arith.select %677, %675, %679 : vector<16x64xi1>, vector<16x64xf32>
    %c3_369 = arith.constant 3 : index
    %c0_370 = arith.constant 0 : index
    %c0_371 = arith.constant 0 : index
    %681 = vector.load %arg21[%c3_369, %c0_370, %c0_371] : memref<4x64x32xf32, #tpu.memory_space<vmem>>, vector<1x64x32xf32>
    %682 = vector.shape_cast %681 : vector<1x64x32xf32> to vector<64x32xf32>
    %cst_372 = arith.constant dense<0.000000e+00> : vector<16x32xf32>
    %683 = tpu.matmul %680, %682, %cst_372 {dimension_numbers = #tpu.dot_dimension_numbers<[1], [0], [0], [1], [0, 0, 1, 1], [], []>} : vector<16x64xf32>, vector<64x32xf32>, vector<16x32xf32> -> vector<16x32xf32>
    %c3_373 = arith.constant 3 : index
    %c0_374 = arith.constant 0 : index
    %c0_375 = arith.constant 0 : index
    %684 = vector.load %arg22[%c3_373, %c0_374, %c0_375] : memref<4x1x32xf32, #tpu.memory_space<vmem>>, vector<1x1x32xf32>
    %685 = vector.shape_cast %684 : vector<1x1x32xf32> to vector<1x32xf32>
    %686 = vector.broadcast %685 : vector<1x32xf32> to vector<16x32xf32>
    %687 = arith.addf %683, %686 : vector<16x32xf32>
    %c3_376 = arith.constant 3 : index
    %c0_377 = arith.constant 0 : index
    %c0_378 = arith.constant 0 : index
    %688 = vector.load %arg23[%c3_376, %c0_377, %c0_378] : memref<4x1x32xf32, #tpu.memory_space<vmem>>, vector<1x1x32xf32>
    %689 = vector.shape_cast %688 : vector<1x1x32xf32> to vector<1x32xf32>
    %c3_379 = arith.constant 3 : index
    %c0_380 = arith.constant 0 : index
    %c0_381 = arith.constant 0 : index
    %690 = vector.load %arg24[%c3_379, %c0_380, %c0_381] : memref<4x1x32xf32, #tpu.memory_space<vmem>>, vector<1x1x32xf32>
    %691 = vector.shape_cast %690 : vector<1x1x32xf32> to vector<1x32xf32>
    %cst_382 = arith.constant dense<0.000000e+00> : vector<16xf32>
    %692 = vector.multi_reduction <add>, %687, %cst_382 [1] : vector<16x32xf32> to vector<16xf32>
    %693 = vector.shape_cast %692 : vector<16xf32> to vector<16x1xf32>
    %cst_383 = arith.constant 3.200000e+01 : f32
    %694 = vector.broadcast %cst_383 : f32 to vector<16x1xf32>
    %695 = arith.divf %693, %694 : vector<16x1xf32>
    %696 = vector.broadcast %695 : vector<16x1xf32> to vector<16x32xf32>
    %697 = arith.subf %687, %696 : vector<16x32xf32>
    %698 = arith.mulf %697, %697 : vector<16x32xf32>
    %cst_384 = arith.constant dense<0.000000e+00> : vector<16xf32>
    %699 = vector.multi_reduction <add>, %698, %cst_384 [1] : vector<16x32xf32> to vector<16xf32>
    %700 = vector.shape_cast %699 : vector<16xf32> to vector<16x1xf32>
    %cst_385 = arith.constant 3.200000e+01 : f32
    %701 = vector.broadcast %cst_385 : f32 to vector<16x1xf32>
    %702 = arith.divf %700, %701 : vector<16x1xf32>
    %cst_386 = arith.constant 9.99999974E-6 : f32
    %703 = vector.broadcast %cst_386 : f32 to vector<16x1xf32>
    %704 = arith.addf %702, %703 : vector<16x1xf32>
    %705 = math.rsqrt %704 : vector<16x1xf32>
    %706 = vector.broadcast %705 : vector<16x1xf32> to vector<16x32xf32>
    %707 = arith.mulf %697, %706 : vector<16x32xf32>
    %708 = vector.broadcast %689 : vector<1x32xf32> to vector<16x32xf32>
    %709 = arith.mulf %707, %708 : vector<16x32xf32>
    %710 = vector.broadcast %691 : vector<1x32xf32> to vector<16x32xf32>
    %711 = arith.addf %709, %710 : vector<16x32xf32>
    %712 = arith.addf %570, %711 : vector<16x32xf32>
    %c0_387 = arith.constant 0 : index
    %c0_388 = arith.constant 0 : index
    %713 = vector.load %arg37[%c0_387, %c0_388] : memref<1x32xf32, #tpu.memory_space<vmem>>, vector<1x32xf32>
    %714 = vector.broadcast %713 : vector<1x32xf32> to vector<16x32xf32>
    %715 = arith.mulf %712, %714 : vector<16x32xf32>
    %c0_389 = arith.constant 0 : index
    %c0_390 = arith.constant 0 : index
    %716 = vector.load %arg38[%c0_389, %c0_390] : memref<1x32xf32, #tpu.memory_space<vmem>>, vector<1x32xf32>
    %717 = vector.broadcast %716 : vector<1x32xf32> to vector<16x32xf32>
    %718 = arith.addf %715, %717 : vector<16x32xf32>
    %cst_391 = arith.constant 0.000000e+00 : f32
    %719 = vector.broadcast %cst_391 : f32 to vector<16x32xf32>
    %720 = arith.cmpf oge, %718, %719 : vector<16x32xf32>
    %cst_392 = arith.constant 1.500000e-01 : f32
    %721 = vector.broadcast %cst_392 : f32 to vector<16x32xf32>
    %722 = arith.mulf %721, %718 : vector<16x32xf32>
    %723 = arith.select %720, %718, %722 : vector<16x32xi1>, vector<16x32xf32>
    %c0_393 = arith.constant 0 : index
    %c0_394 = arith.constant 0 : index
    %724 = vector.load %arg6[%c0_393, %c0_394] : memref<2x16xf32, #tpu.memory_space<vmem>>, vector<2x16xf32>
    %cst_395 = arith.constant dense<0.000000e+00> : vector<2x32xf32>
    %725 = tpu.matmul %724, %723, %cst_395 {dimension_numbers = #tpu.dot_dimension_numbers<[1], [0], [0], [1], [0, 0, 1, 1], [], []>} : vector<2x16xf32>, vector<16x32xf32>, vector<2x32xf32> -> vector<2x32xf32>
    %c0_396 = arith.constant 0 : index
    %c0_397 = arith.constant 0 : index
    %726 = vector.load %arg7[%c0_396, %c0_397] : memref<2x1xf32, #tpu.memory_space<vmem>>, vector<2x1xf32>
    %727 = vector.broadcast %726 : vector<2x1xf32> to vector<2x32xf32>
    %728 = arith.mulf %725, %727 : vector<2x32xf32>
    %c0_398 = arith.constant 0 : index
    %c0_399 = arith.constant 0 : index
    %729 = vector.load %arg44[%c0_398, %c0_399] : memref<2x32xf32, #tpu.memory_space<vmem>>, vector<2x32xf32>
    tpu.vector_store %arg44[%c0_398, %c0_399], %728 {strides = array<i32>} : memref<2x32xf32, #tpu.memory_space<vmem>>, vector<2x32xf32>,
    %c0_400 = arith.constant 0 : index
    %c0_401 = arith.constant 0 : index
    %730 = vector.load %arg39[%c0_400, %c0_401] : memref<32x16xf32, #tpu.memory_space<vmem>>, vector<32x16xf32>
    %cst_402 = arith.constant dense<0.000000e+00> : vector<2x16xf32>
    %731 = tpu.matmul %728, %730, %cst_402 {dimension_numbers = #tpu.dot_dimension_numbers<[1], [0], [0], [1], [0, 0, 1, 1], [], []>} : vector<2x32xf32>, vector<32x16xf32>, vector<2x16xf32> -> vector<2x16xf32>
    %c0_403 = arith.constant 0 : index
    %c0_404 = arith.constant 0 : index
    %732 = vector.load %arg40[%c0_403, %c0_404] : memref<1x16xf32, #tpu.memory_space<vmem>>, vector<1x16xf32>
    %733 = vector.broadcast %732 : vector<1x16xf32> to vector<2x16xf32>
    %734 = arith.addf %731, %733 : vector<2x16xf32>
    %cst_405 = arith.constant 0.000000e+00 : f32
    %735 = vector.broadcast %cst_405 : f32 to vector<2x16xf32>
    %736 = arith.cmpf oge, %734, %735 : vector<2x16xf32>
    %cst_406 = arith.constant 1.500000e-01 : f32
    %737 = vector.broadcast %cst_406 : f32 to vector<2x16xf32>
    %738 = arith.mulf %737, %734 : vector<2x16xf32>
    %739 = arith.select %736, %734, %738 : vector<2x16xi1>, vector<2x16xf32>
    %c0_407 = arith.constant 0 : index
    %c0_408 = arith.constant 0 : index
    %740 = vector.load %arg41[%c0_407, %c0_408] : memref<16x3xf32, #tpu.memory_space<vmem>>, vector<16x3xf32>
    %cst_409 = arith.constant dense<0.000000e+00> : vector<2x3xf32>
    %741 = tpu.matmul %739, %740, %cst_409 {dimension_numbers = #tpu.dot_dimension_numbers<[1], [0], [0], [1], [0, 0, 1, 1], [], []>} : vector<2x16xf32>, vector<16x3xf32>, vector<2x3xf32> -> vector<2x3xf32>
    %c0_410 = arith.constant 0 : index
    %c0_411 = arith.constant 0 : index
    %742 = vector.load %arg42[%c0_410, %c0_411] : memref<1x3xf32, #tpu.memory_space<vmem>>, vector<1x3xf32>
    %743 = vector.broadcast %742 : vector<1x3xf32> to vector<2x3xf32>
    %744 = arith.addf %741, %743 : vector<2x3xf32>
    %c0_412 = arith.constant 0 : index
    %c0_413 = arith.constant 0 : index
    %745 = vector.load %arg43[%c0_412, %c0_413] : memref<2x3xf32, #tpu.memory_space<vmem>>, vector<2x3xf32>
    tpu.vector_store %arg43[%c0_412, %c0_413], %744 {strides = array<i32>} : memref<2x3xf32, #tpu.memory_space<vmem>>, vector<2x3xf32>,
    return
  }
}

</mosaic_0001>

<bundles_post_ra>
// kernel: tpu_custom_call.1
= control target key start
LH: loop header
LB: loop body
LE: loop exit
PB: predicated region body
PF: predicated region fallthrough
CT: control target
= control target key end

     0   :  { %s6927_s6 = smov 1   ;;  %s6928_s10 = smov 2   ;;  %s7973_s0 = inlined_call_operand.smem [shape: u32[45], index: -1, kind: input, shape index: {}] }
   0x1   :  { %s6998_s5 = sld [smem:[%s7973_s0]]   ;;  %s6929_s14 = smov 3  }
   0x2   :  { %s7003_s9 = sld [smem:[%s7973_s0 + %s6927_s6]]   ;;  %s6930_s18 = smov 4  }
   0x3   :  { %s7008_s13 = sld [smem:[%s7973_s0 + %s6928_s10]]   ;;  %s6931_s22 = smov 5  }
   0x4   :  { %s7013_s17 = sld [smem:[%s7973_s0 + %s6929_s14]]   ;;  %s6932_s26 = smov 6  }
   0x5   :  { %s7018_s21 = sld [smem:[%s7973_s0 + %s6930_s18]]   ;;  %s6933_s30 = smov 7  }
   0x6   :  { %s7023_s25 = sld [smem:[%s7973_s0 + %s6931_s22]]   ;;  %s6934_s4 = smov 8  }
   0x7   :  { %s7028_s29 = sld [smem:[%s7973_s0 + %s6932_s26]]   ;;  %s6935_s10 = smov 9  }
   0x8   :  { %s7033_s3 = sld [smem:[%s7973_s0 + %s6933_s30]]   ;;  %s6936_s15 = smov 10  }
   0x9   :  { %s7038_s8 = sld [smem:[%s7973_s0 + %s6934_s4]]   ;;  %s6937_s20 = smov 11  }
   0xa   :  { %s7043_s14 = sld [smem:[%s7973_s0 + %s6935_s10]]   ;;  %s6938_s26 = smov 12  }
   0xb   :  { %s7048_s19 = sld [smem:[%s7973_s0 + %s6936_s15]]   ;;  %s6939_s1 = smov 13  }
   0xc   :  { %7988 = sst [smem:[#allocation26_spill]] %s7023_s25  ;;  %s6940_s7 = smov 14  }
   0xd   :  { %s7053_s24 = sld [smem:[%s7973_s0 + %s6937_s20]]   ;;  %s6941_s15 = smov 15  }
   0xe   :  { %7989 = sst [smem:[#allocation27_spill]] %s7033_s3  ;;  %s6942_s22 = smov 16  }
   0xf   :  { %s7058_s30 = sld [smem:[%s7973_s0 + %s6938_s26]]   ;;  %s6943_s28 = smov 17  }
  0x10   :  { %s7063_s6 = sld [smem:[%s7973_s0 + %s6939_s1]]  }
  0x11   :  { %s7068_s12 = sld [smem:[%s7973_s0 + %s6940_s7]]   ;;  %s6944_s7 = smov 18  }
  0x12   :  { %s7073_s20 = sld [smem:[%s7973_s0 + %s6941_s15]]   ;;  %s6945_s15 = smov 19  }
  0x13   :  { %s7078_s27 = sld [smem:[%s7973_s0 + %s6942_s22]]   ;;  %s6946_s22 = smov 20  }
  0x14   :  { %s7083_s4 = sld [smem:[%s7973_s0 + %s6943_s28]]   ;;  %s6947_s28 = smov 21  }
  0x15   :  { %s7088_s3 = sld [smem:[%s7973_s0 + %s6944_s7]]   ;;  %s6948_s7 = smov 22  }
  0x16   :  { %s7093_s25 = sld [smem:[%s7973_s0 + %s6945_s15]]   ;;  %s6949_s15 = smov 23  }
  0x19   :  { %7990 = sst [smem:[#allocation28_spill]] %s7078_s27 }
  0x1a   :  { %7991 = sst [smem:[#allocation29_spill]] %s7083_s4 }
  0x1b   :  { %7992 = sst [smem:[#allocation30_spill]] %s7088_s3 }
  0x1c   :  { %7993 = sst [smem:[#allocation31_spill]] %s7093_s25 }
  0x1d   :  { %s7098_s27 = sld [smem:[%s7973_s0 + %s6946_s22]]   ;;  %s6950_s22 = smov 24  }
  0x1e   :  { %s7103_s4 = sld [smem:[%s7973_s0 + %s6947_s28]]   ;;  %s6951_s28 = smov 25  }
  0x1f   :  { %s7108_s3 = sld [smem:[%s7973_s0 + %s6948_s7]]   ;;  %s6952_s7 = smov 26  }
  0x20   :  { %s7113_s25 = sld [smem:[%s7973_s0 + %s6949_s15]]   ;;  %s6953_s15 = smov 27  }
  0x23   :  { %7994 = sst [smem:[#allocation32_spill]] %s7098_s27 }
  0x24   :  { %7995 = sst [smem:[#allocation33_spill]] %s7103_s4 }
  0x25   :  { %7996 = sst [smem:[#allocation34_spill]] %s7108_s3 }
  0x26   :  { %7997 = sst [smem:[#allocation35_spill]] %s7113_s25 }
  0x27   :  { %s7118_s27 = sld [smem:[%s7973_s0 + %s6950_s22]]   ;;  %s6954_s22 = smov 28  }
  0x28   :  { %s7123_s4 = sld [smem:[%s7973_s0 + %s6951_s28]]   ;;  %s6955_s28 = smov 29  }
  0x29   :  { %s7128_s3 = sld [smem:[%s7973_s0 + %s6952_s7]]   ;;  %s6956_s7 = smov 30  }
  0x2a   :  { %s7133_s25 = sld [smem:[%s7973_s0 + %s6953_s15]]   ;;  %s6957_s15 = smov 31  }
  0x2d   :  { %7998 = sst [smem:[#allocation36_spill]] %s7118_s27 }
  0x2e   :  { %7999 = sst [smem:[#allocation37_spill]] %s7123_s4 }
  0x2f   :  { %8000 = sst [smem:[#allocation38_spill]] %s7128_s3 }
  0x30   :  { %8001 = sst [smem:[#allocation39_spill]] %s7133_s25 }
  0x31   :  { %s7138_s27 = sld [smem:[%s7973_s0 + %s6954_s22]]   ;;  %s6958_s22 = smov 32  }
  0x32   :  { %s7143_s4 = sld [smem:[%s7973_s0 + %s6955_s28]]   ;;  %s6959_s28 = smov 33  }
  0x33   :  { %s7148_s3 = sld [smem:[%s7973_s0 + %s6956_s7]]   ;;  %s6960_s7 = smov 34  }
  0x34   :  { %s7153_s25 = sld [smem:[%s7973_s0 + %s6957_s15]]   ;;  %s6961_s15 = smov 35  }
  0x37   :  { %8002 = sst [smem:[#allocation40_spill]] %s7138_s27 }
  0x38   :  { %8003 = sst [smem:[#allocation41_spill]] %s7143_s4 }
  0x39   :  { %8004 = sst [smem:[#allocation42_spill]] %s7148_s3 }
  0x3a   :  { %8005 = sst [smem:[#allocation43_spill]] %s7153_s25 }
  0x3b   :  { %s7158_s27 = sld [smem:[%s7973_s0 + %s6958_s22]]   ;;  %s6962_s22 = smov 36  }
  0x3c   :  { %s7163_s4 = sld [smem:[%s7973_s0 + %s6959_s28]]   ;;  %s6963_s28 = smov 37  }
  0x3d   :  { %s7168_s3 = sld [smem:[%s7973_s0 + %s6960_s7]]   ;;  %s6964_s7 = smov 38  }
  0x3e   :  { %s7173_s25 = sld [smem:[%s7973_s0 + %s6961_s15]]   ;;  %s6965_s15 = smov 39  }
  0x41   :  { %8006 = sst [smem:[#allocation44_spill]] %s7158_s27 }
  0x42   :  { %8007 = sst [smem:[#allocation45_spill]] %s7163_s4 }
  0x43   :  { %8008 = sst [smem:[#allocation46_spill]] %s7168_s3 }
  0x44   :  { %8009 = sst [smem:[#allocation47_spill]] %s7173_s25 }
  0x45   :  { %s7178_s27 = sld [smem:[%s7973_s0 + %s6962_s22]]   ;;  %s6966_s22 = smov 40  }
  0x46   :  { %s7183_s4 = sld [smem:[%s7973_s0 + %s6963_s28]]   ;;  %s6967_s28 = smov 41  }
  0x47   :  { %s7188_s3 = sld [smem:[%s7973_s0 + %s6964_s7]]   ;;  %s6968_s7 = smov 42  }
  0x48   :  { %s7193_s25 = sld [smem:[%s7973_s0 + %s6965_s15]]   ;;  %s6969_s15 = smov 43  }
  0x4b   :  { %8010 = sst [smem:[#allocation48_spill]] %s7178_s27 }
  0x4c   :  { %8011 = sst [smem:[#allocation49_spill]] %s7183_s4 }
  0x4d   :  { %8012 = sst [smem:[#allocation50_spill]] %s7188_s3 }
  0x4e   :  { %8013 = sst [smem:[#allocation51_spill]] %s7193_s25 }
  0x4f   :  { %s7198_s27 = sld [smem:[%s7973_s0 + %s6966_s22]]   ;;  %s6970_s22 = smov 44  }
  0x50   :  { %s7203_s4 = sld [smem:[%s7973_s0 + %s6967_s28]]  }
  0x51   :  { %s7208_s3 = sld [smem:[%s7973_s0 + %s6968_s7]]  }
  0x52   :  { %s7213_s25 = sld [smem:[%s7973_s0 + %s6969_s15]]  }
  0x55   :  { %8014 = sst [smem:[#allocation52_spill]] %s7198_s27 }
  0x56   :  { %s7218_s27 = sld [smem:[%s7973_s0 + %s6970_s22]]  }
  0x57   :  { %95 = vsyncpa [#allocation4], 0 }
  0x58   :  { %96 = vsyncpa [#allocation8], 0 }
  0x59   :  { %97 = vsyncpa [#allocation6], 0 }
  0x5a   :  { %98 = vsyncpa [#allocation12], 0 }
  0x5b   :  { %99 = vsyncpa [#allocation15], 0 }
  0x5c   :  { %100 = vsyncpa [#allocation5], 0 }
  0x5d   :  { %101 = vsyncpa [#allocation18], 0  ;;  %s6971_s28 = smov [#allocation7]   ;;  %s6972_s2 = smov [#allocation11]  }
  0x5e   :  { %s120_s1 = sshll.u32 %s6971_s28, 4  ;;  %s159_s7 = sshll.u32 %s6972_s2, 4  ;;  %s121_s1 = int_to_ptr.vmem [resolvable:$true] %s120_s1  ;;  %s7220_s7 = int_to_ptr.vmem [resolvable:$true] %s159_s7 }
  0x5f   :  { %s6727_s10 = scalar_lea.hbm %s7008_s13, 16 }
  0x60   :  { %p6728_p0 = scmp.ne.s32.totalorder %s7008_s13, %s6727_s10  ;;  %p6731_p1 = scmp.lt.u32.totalorder %s6727_s10, %s7008_s13 }
  0x62   :  { %p6733_p2 = pnand %p6731_p1, %p6728_p0 }
  0x64   :  { %6736 = shalt.err (!%p6733_p2)
}
  0x65   :  { %s6737_s0 = scalar_lea.vmem %s121_s1, 16  ;;  %s6741_s11 = scalar_lea.vmem %s121_s1, 32 }
  0x66   :  { %p6738_p3 = scmp.ne.s32.totalorder %s121_s1, %s6737_s0  ;;  %p6742_p4 = scmp.lt.s32.totalorder %s121_s1, %s121_s1 }
  0x67   :  { %p6743_p5 = scmp.lt.s32.totalorder %s6741_s11, %s6737_s0 }
  0x69   :  { %p6744_p6 = por %p6743_p5, %p6742_p4 }
  0x6b   :  { %p6745_p7 = pnand %p6744_p6, %p6738_p3 }
  0x6d   :  { %6748 = shalt.err (!%p6745_p7)
}
  0x6e   :  { %123 = dma.hbm_to_vmem [thread:$0]  %s7008_s13, 16, %s121_s1, [#allocation8]  }
  0x6f   :  { %s6749_s15 = scalar_lea.hbm %s7053_s24, 64 }
  0x70   :  { %p6750_p8 = scmp.ne.s32.totalorder %s7053_s24, %s6749_s15  ;;  %p6753_p9 = scmp.lt.u32.totalorder %s6749_s15, %s7053_s24 }
  0x72   :  { %p6755_p10 = pnand %p6753_p9, %p6750_p8 }
  0x74   :  { %6758 = shalt.err (!%p6755_p10)
}
  0x75   :  { %s6759_s16 = scalar_lea.vmem %s7220_s7, 64  ;;  %p6764_p12 = scmp.lt.s32.totalorder %s7220_s7, %s7220_s7 }
  0x76   :  { %p6760_p11 = scmp.ne.s32.totalorder %s7220_s7, %s6759_s16  ;;  %p6765_p13 = scmp.lt.s32.totalorder %s6759_s16, %s6759_s16 }
  0x78   :  { %p6766_p0 = por %p6765_p13, %p6764_p12 }
  0x7a   :  { %p6767_p1 = pnand %p6766_p0, %p6760_p11 }
  0x7c   :  { %6770 = shalt.err (!%p6767_p1)
}
  0x7d   :  { %s6973_s18 = smov 16   ;;  %s6974_s13 = smov 1  }
  0x7e   :  { %165 = dma.hbm_to_vmem [thread:$0]  %s7053_s24, 64, %s7220_s7, [#allocation12], %s6973_s18, %s6973_s18, %s6974_s13  }
  0x7f   :  { %s6975_s22 = smov [#allocation3]   ;;  %s6976_s26 = smov [#allocation9]  }
  0x80   :  { %s110_s23 = sshll.u32 %s6975_s22, 4  ;;  %s136_s28 = sshll.u32 %s6976_s26, 4  ;;  %s111_s23 = int_to_ptr.vmem [resolvable:$true] %s110_s23  ;;  %s137_s28 = int_to_ptr.vmem [resolvable:$true] %s136_s28 }
  0x81   :  { %s6771_s1 = scalar_lea.hbm %s7003_s9, 16 }
  0x82   :  { %p6772_p2 = scmp.ne.s32.totalorder %s7003_s9, %s6771_s1  ;;  %p6775_p3 = scmp.lt.u32.totalorder %s6771_s1, %s7003_s9 }
  0x84   :  { %p6777_p4 = pnand %p6775_p3, %p6772_p2 }
  0x86   :  { %6780 = shalt.err (!%p6777_p4)
}
  0x87   :  { %s6781_s2 = scalar_lea.vmem %s111_s23, 16  ;;  %s6785_s10 = scalar_lea.vmem %s111_s23, 32 }
  0x88   :  { %p6782_p5 = scmp.ne.s32.totalorder %s111_s23, %s6781_s2  ;;  %p6786_p6 = scmp.lt.s32.totalorder %s111_s23, %s111_s23 }
  0x89   :  { %p6787_p7 = scmp.lt.s32.totalorder %s6785_s10, %s6781_s2 }
  0x8b   :  { %p6788_p8 = por %p6787_p7, %p6786_p6 }
  0x8d   :  { %p6789_p9 = pnand %p6788_p8, %p6782_p5 }
  0x8f   :  { %6792 = shalt.err (!%p6789_p9)
}
  0x90   :  { %113 = dma.hbm_to_vmem [thread:$0]  %s7003_s9, 16, %s111_s23, [#allocation4]  }
  0x91   :  { %s6793_s24 = scalar_lea.hbm %s7028_s29, 32 }
  0x92   :  { %p6794_p10 = scmp.ne.s32.totalorder %s7028_s29, %s6793_s24  ;;  %p6797_p11 = scmp.lt.u32.totalorder %s6793_s24, %s7028_s29 }
  0x94   :  { %p6799_p12 = pnand %p6797_p11, %p6794_p10 }
  0x96   :  { %6802 = shalt.err (!%p6799_p12)
}
  0x97   :  { %s6803_s7 = scalar_lea.vmem %s137_s28, 32  ;;  %p6808_p0 = scmp.lt.s32.totalorder %s137_s28, %s137_s28 }
  0x98   :  { %p6804_p13 = scmp.ne.s32.totalorder %s137_s28, %s6803_s7  ;;  %p6809_p1 = scmp.lt.s32.totalorder %s6803_s7, %s6803_s7 }
  0x9a   :  { %p6810_p2 = por %p6809_p1, %p6808_p0 }
  0x9c   :  { %p6811_p3 = pnand %p6810_p2, %p6804_p13 }
  0x9e   :  { %6814 = shalt.err (!%p6811_p3)
}
  0x9f   :  { %139 = dma.hbm_to_vmem [thread:$0]  %s7028_s29, 32, %s137_s28, [#allocation8]  }
  0xa0   :  { %s6815_s0 = scalar_lea.hbm %s7038_s8, 16 }
  0xa1   :  { %p6816_p4 = scmp.ne.s32.totalorder %s7038_s8, %s6815_s0  ;;  %p6819_p5 = scmp.lt.u32.totalorder %s6815_s0, %s7038_s8 }
  0xa3   :  { %p6821_p6 = pnand %p6819_p5, %p6816_p4 }
  0xa5   :  { %6824 = shalt.err (!%p6821_p6)
}
  0xa6   :  { %s6977_s9 = smov [#allocation10]   ;;  %s6978_s11 = smov [#allocation13]  }
  0xa7   :  { %149 = dma.hbm_to_smem %s7038_s8, 16, %s6977_s9, [#allocation6]  }
  0xa8   :  { %s171_s15 = sshll.u32 %s6978_s11, 4  ;;  %s6979_s16 = smov [#allocation14]   ;;  %s172_s15 = int_to_ptr.vmem [resolvable:$true] %s171_s15 }
  0xa9   :  { %s185_s22 = sshll.u32 %s6979_s16, 4  ;;  %s6825_s23 = scalar_lea.hbm %s7058_s30, 64  ;;  %s186_s22 = int_to_ptr.vmem [resolvable:$true] %s185_s22 }
  0xaa   :  { %p6826_p7 = scmp.ne.s32.totalorder %s7058_s30, %s6825_s23  ;;  %p6829_p8 = scmp.lt.u32.totalorder %s6825_s23, %s7058_s30 }
  0xac   :  { %p6831_p9 = pnand %p6829_p8, %p6826_p7 }
  0xae   :  { %6834 = shalt.err (!%p6831_p9)
}
  0xaf   :  { %s6835_s29 = scalar_lea.vmem %s172_s15, 64  ;;  %p6840_p11 = scmp.lt.s32.totalorder %s172_s15, %s172_s15 }
  0xb0   :  { %p6836_p10 = scmp.ne.s32.totalorder %s172_s15, %s6835_s29  ;;  %p6841_p12 = scmp.lt.s32.totalorder %s6835_s29, %s6835_s29 }
  0xb2   :  { %p6842_p13 = por %p6841_p12, %p6840_p11 }
  0xb4   :  { %p6843_p0 = pnand %p6842_p13, %p6836_p10 }
  0xb6   :  { %6846 = shalt.err (!%p6843_p0)
}
  0xb7   :  { %177 = dma.hbm_to_vmem [thread:$0]  %s7058_s30, 64, %s172_s15, [#allocation12], %s6973_s18, %s6973_s18, %s6974_s13  }
  0xb8   :  { %s6847_s8 = scalar_lea.hbm %s7068_s12, 64 }
  0xb9   :  { %p6848_p1 = scmp.ne.s32.totalorder %s7068_s12, %s6847_s8  ;;  %p6851_p2 = scmp.lt.u32.totalorder %s6847_s8, %s7068_s12 }
  0xbb   :  { %p6853_p3 = pnand %p6851_p2, %p6848_p1 }
  0xbd   :  { %6856 = shalt.err (!%p6853_p3)
}
  0xbe   :  { %s6857_s26 = scalar_lea.vmem %s186_s22, 64  ;;  %p6862_p5 = scmp.lt.s32.totalorder %s186_s22, %s186_s22 }
  0xbf   :  { %p6858_p4 = scmp.ne.s32.totalorder %s186_s22, %s6857_s26  ;;  %p6863_p6 = scmp.lt.s32.totalorder %s6857_s26, %s6857_s26 }
  0xc1   :  { %p6864_p7 = por %p6863_p6, %p6862_p5 }
  0xc3   :  { %p6865_p8 = pnand %p6864_p7, %p6858_p4 }
  0xc5   :  { %6868 = shalt.err (!%p6865_p8)
}
  0xc6   :  { %191 = dma.hbm_to_vmem [thread:$0]  %s7068_s12, 64, %s186_s22, [#allocation15], %s6973_s18, %s6973_s18, %s6974_s13  }
  0xc7   :  { %6913 = dma.done.wait [#allocation4], 16  }
  0xc8   :  { %6914 = vsyncadd [#allocation4], 4294967280 }
  0xc9   :  { %6915 = dma.done.wait [#allocation8], 48  }
  0xca   :  { %6916 = vsyncadd [#allocation8], 4294967248 }
  0xcb   :  { %6917 = dma.done.wait [#allocation6], 16  }
  0xcc   :  { %6918 = vsyncadd [#allocation6], 4294967280 }
  0xcd   :  { %6919 = dma.done.wait [#allocation12], 128  }
  0xce   :  { %6920 = vsyncadd [#allocation12], 4294967168 }
  0xcf   :  { %6921 = dma.done.wait [#allocation15], 64  }
  0xd0   :  { %6922 = vsyncadd [#allocation15], 4294967232 }
  0xd1   :  { %269 = sfence }
  0xd2   :  { %v311_v0 = vld [vmem:[%s7043_s14] sm:$0x7f]  ;;  %vm332_vm0 = vcmask 1046528   ;;  %vm319_vm1 = vcmask 56320   ;;  %v7269_v2 = vld [vmem:[%s7013_s17 + $0x8] sm:$0xff]  ;;  %v7275_v3 = vld [vmem:[%s7013_s17 + $0x10] sm:$0xff] }
  0xd3   :  { %v7266_v1 = vld [vmem:[%s7013_s17] sm:$0xff]  ;;  %5784 = vmatprep.subr.msk.mxu0 %vm332_vm0, %v311_v0  ;;  %v7283_v4 = vld [vmem:[%s7013_s17 + $0x18] sm:$0xff]  ;;  %vm423_vm2 = vcmask 261120   ;;  %v510_v39 = vld [vmem:[%s7063_s6 + $0x8] sm:$0xff]  ;;  %v6980_v46 = vmov 0   ;;  %vm748_vm7 = vcmask 130048  }
  0xd4   :  { %5786 = vmatprep.mubr.msk.f32.mxu0 %vm319_vm1, %v7266_v1  ;;  %5785 = vmatpush3.msk.msra.mxu0 %vm332_vm0, %v311_v0  ;;  %v5258_v5 = vld [vmem:[%s7048_s19] ss:$0 sm:$0xff]  ;;  %v511_v40 = vld [vmem:[%s7063_s6 + $0x10] sm:$0xff]  ;;  %v512_v42 = vld [vmem:[%s7063_s6 + $0x18] sm:$0xff]  ;;  %s8016_s30 = sld [smem:[#allocation28_spill]]  ;;  %vm6982_vm12 = vmmov 0  }
  0xd5   :  { %5787 = vmatmul.mubr.msk.f32.vlgmr.msra.gmra.mrb[0].mxu0 %vm319_vm1, %v7269_v2  ;;  %v509_v38 = vld [vmem:[%s7063_s6] sm:$0xff]  ;;  %v6236_v43 = vpack.c.bf16 %v512_v42, %v511_v40  ;;  %v282_v45 = vld [vmem:[%s6998_s5 + $0x8] sm:$0xff]  ;;  %6532 = vset.pattern.permute.xlu1 %v6980_v46  ;;  %v5264_v60 = vld [vmem:[#allocation11] ss:$0 sm:$0xff]  ;;  %s8017_s12 = sld [smem:[#allocation26_spill]]  ;;  %s895_s13 = sld [smem:[#allocation10]] }
  0xd6   :  { %5789 = vmatprep.mubr.msk.f32.mxu0 %vm319_vm1, %v7275_v3  ;;  %v6232_v41 = vpack.c.bf16 %v510_v39, %v509_v38  ;;  %v281_v44 = vld [vmem:[%s6998_s5] sm:$0xff]  ;;  %6531 = vset.pattern.permute.xlu0 %v6980_v46  ;;  %v5265_v62 = vld [vmem:[#allocation13] ss:$0 sm:$0xff]  ;;  %v5266_v42 = vld [vmem:[#allocation14] ss:$0 sm:$0xff]  ;;  %s8015_s5 = sld [smem:[#allocation29_spill]] }
  0xd7   :  { %s8018_s1 = sld [smem:[#allocation30_spill]]  ;;  %vm996_vm13 = vcmask 523264   ;;  %s8019_s2 = sld [smem:[#allocation33_spill]] }
  0xd8   :  { %6233 = vmatprep.subr.bf16.mxu1 %v6232_v41  ;;  %s8020_s10 = sld [smem:[#allocation31_spill]]  ;;  %s8021_s24 = sld [smem:[#allocation32_spill]] }
  0xd9   :  { %5790 = vmatmul.mubr.msk.f32.gmra.mrb[2].mxu0 %vm319_vm1, %v7283_v4  ;;  %6235 = vmatpush3.bf16.msra.mxu1 %v6232_v41  ;;  %v7322_v41 = vld [vmem:[%s7018_s21 + $0x8] sm:$0xff]   ;;  %s8022_s7 = sld [smem:[#allocation34_spill]]  ;;  %s8023_s0 = sld [smem:[#allocation35_spill]] }
  0xda   :  { %6237 = vmatprep.subr.bf16.mxu1 %v6236_v43  ;;  %s8024_s9 = sld [smem:[#allocation36_spill]]  ;;  %s5332_s11 = sld [smem:[#allocation10 + $0x1]] }
  0xdb   :  { %s896_s28 = sadd.f32 1.0, %s895_s13  ;;  %s8025_s16 = sld [smem:[#allocation39_spill]] }
  0xdc   :  { %s8026_s22 = sld [smem:[#allocation41_spill]]  ;;  %s8027_s23 = sld [smem:[#allocation40_spill]] }
  0xdd   :  { %6239 = vmatpush3.bf16.msra.mxu1 %v6236_v43  ;;  %s8028_s29 = sld [smem:[#allocation43_spill]]  ;;  %s8029_s8 = sld [smem:[#allocation45_spill]] }
  0xde   :  { %s8030_s26 = sld [smem:[#allocation37_spill]]  ;;  %s8031_s13 = sld [smem:[#allocation38_spill]] }
  0xe0   :  { %s1740_s15 = sadd.f32 1.0, %s5332_s11  ;;  %s8033_s11 = sld [smem:[#allocation44_spill]] }
 0x1a8   :  { %v5788_v6 = vpop.f32.mrb[0].mxu0 }
 0x1a9   :  { %v402_v7 = vpop.f32.mrb[1].mxu0  ;;  %v408_v9 = vadd.f32 %v5788_v6, %v5258_v5 }
 0x1aa   :  { %v403_v8 = vadd.f32 %v5258_v5, %v402_v7 }
 0x1ab   :  { %v427_v16 = vsel %vm423_vm2, %v408_v9, 0.0 }
 0x1ac   :  { %v5791_v10 = vpop.f32.mrb[2].mxu0  ;;  %v424_v11 = vsel %vm423_vm2, %v403_v8, 0.0 }
 0x1ad   :  { %v412_v12 = vpop.f32.mrb[3].mxu0  ;;  %425 = vadd.xlane.f32.xlu0 %v424_v11  ;;  %v418_v14 = vadd.f32 %v5791_v10, %v5258_v5 }
 0x1ae   :  { %v413_v13 = vadd.f32 %v5258_v5, %v412_v12 }
 0x1af   :  { %v433_v17 = vsel %vm423_vm2, %v418_v14, 0.0 }
 0x1b0   :  { %v430_v15 = vsel %vm423_vm2, %v413_v13, 0.0 }
 0x1b1   :  { %431 = vadd.xlane.f32.xlu1 %v430_v15  ;;  %428 = vadd.xlane.f32.xlu0 %v427_v16 }
 0x1b5   :  { %434 = vadd.xlane.f32.xlu1 %v433_v17 }
 0x23a   :  { %v426_v18 = vpop.xlane.xlu0 %425 }
 0x23b   :  { %v437_v19 = vmul.f32 0.03125, %v426_v18 }
 0x23d   :  { %v441_v20 = vsub.f32 %v403_v8, %v437_v19 }
 0x23e   :  { %v432_v21 = vpop.xlane.xlu1 %431  ;;  %v429_v22 = vpop.xlane.xlu0 %428 }
 0x23f   :  { %v439_v23 = vmul.f32 0.03125, %v432_v21  ;;  %v438_v24 = vmul.f32 0.03125, %v429_v22  ;;  %v445_v25 = vmul.f32 %v441_v20, %v441_v20 }
 0x241   :  { %v443_v26 = vsub.f32 %v413_v13, %v439_v23  ;;  %v442_v27 = vsub.f32 %v408_v9, %v438_v24  ;;  %v449_v28 = vsel %vm423_vm2, %v445_v25, 0.0  ;;  %v629_v25 = vld [vmem:[%s7073_s20] sm:$0xff] }
 0x242   :  { %v435_v29 = vpop.xlane.xlu1 %434  ;;  %450 = vadd.xlane.f32.xlu0 %v449_v28  ;;  %v631_v28 = vld [vmem:[%s7073_s20 + $0x10] sm:$0xff] }
 0x243   :  { %v440_v30 = vmul.f32 0.03125, %v435_v29  ;;  %v447_v31 = vmul.f32 %v443_v26, %v443_v26  ;;  %v446_v32 = vmul.f32 %v442_v27, %v442_v27  ;;  %v632_v29 = vld [vmem:[%s7073_s20 + $0x18] sm:$0xff] }
 0x245   :  { %v444_v33 = vsub.f32 %v418_v14, %v440_v30  ;;  %v455_v34 = vsel %vm423_vm2, %v447_v31, 0.0  ;;  %v452_v35 = vsel %vm423_vm2, %v446_v32, 0.0  ;;  %v6244_v30 = vpack.c.bf16 %v632_v29, %v631_v28  ;;  %v5256_v32 = vld [vmem:[#allocation3] ss:$0 sm:$0xff] }
 0x246   :  { %456 = vadd.xlane.f32.xlu0 %v455_v34  ;;  %453 = vadd.xlane.f32.xlu1 %v452_v35  ;;  %v7311_v35 = vld [vmem:[%s7018_s21] sm:$0xff]  }
 0x247   :  { %v448_v36 = vmul.f32 %v444_v33, %v444_v33 }
 0x249   :  { %v458_v37 = vsel %vm423_vm2, %v448_v36, 0.0 }
 0x24a   :  { %459 = vadd.xlane.f32.xlu1 %v458_v37 }
 0x25b   :  { %291 = vperm.xlu1 %6532, %v282_v45  }
 0x25c   :  { %286 = vperm.xlu0 %6531, %v281_v44  }
 0x2cf   :  { %v451_v47 = vpop.xlane.xlu0 %450 }
 0x2d0   :  { %v461_v48 = vmul.f32 0.03125, %v451_v47 }
 0x2d2   :  { %v465_v49 = vadd.f32 1e-05, %v461_v48 }
 0x2d3   :  { %v454_v50 = vpop.xlane.xlu1 %453  ;;  %v457_v51 = vpop.xlane.xlu0 %456 }
 0x2d4   :  { %6562 = vrsqrt.f32 %v465_v49  ;;  %v462_v52 = vmul.f32 0.03125, %v454_v50  ;;  %v463_v53 = vmul.f32 0.03125, %v457_v51 }
 0x2d6   :  { %v466_v54 = vadd.f32 1e-05, %v462_v52  ;;  %v467_v55 = vadd.f32 1e-05, %v463_v53 }
 0x2d7   :  { %v460_v56 = vpop.xlane.xlu1 %459 }
 0x2d8   :  { %6564 = vrsqrt.f32 %v466_v54  ;;  %v464_v57 = vmul.f32 0.03125, %v460_v56 }
 0x2d9   :  { %6566 = vrsqrt.f32 %v467_v55 }
 0x2da   :  { %v468_v58 = vadd.f32 1e-05, %v464_v57 }
 0x2db   :  { %v292_v31 = vpop.permute.xlu1 %291  ;;  %v287_v34 = vpop.permute.xlu0 %286 }
 0x2dc   :  { %6568 = vrsqrt.f32 %v468_v58  ;;  %v301_v36 = vmul.f32 %v5256_v32, %v292_v31  ;;  %v300_v37 = vmul.f32 %v5256_v32, %v287_v34 }
 0x2de   :  { %v6563_v59 = vpop.eup %6562 }
 0x2df   :  { %v473_v61 = vmul.f32 %v6563_v59, %v441_v20 }
 0x2e1   :  { %v483_v63 = vmul.f32 %v5264_v60, %v473_v61 }
 0x2e2   :  { %v6565_v0 = vpop.eup %6564 }
 0x2e3   :  { %v6567_v5 = vpop.eup %6566  ;;  %v493_v6 = vadd.f32 %v5265_v62, %v483_v63  ;;  %v474_v7 = vmul.f32 %v6565_v0, %v442_v27  ;;  %v6981_v63 = vmov 0.0   ;;  %v902_v0 = vld [vmem:[%s8015_s5] sm:$0xff] }
 0x2e4   :  { %v475_v8 = vmul.f32 %v6567_v5, %v443_v26  ;;  %v630_v26 = vld [vmem:[%s7073_s20 + $0x8] sm:$0xff] }
 0x2e5   :  { %vm497_vm3 = vcmp.ge.f32.partialorder %v493_v6, 0.0  ;;  %v501_v9 = vmul.f32 0.15, %v493_v6  ;;  %v484_v10 = vmul.f32 %v5264_v60, %v474_v7  ;;  %v6240_v27 = vpack.c.bf16 %v630_v26, %v629_v25  ;;  %v903_v5 = vld [vmem:[%s8015_s5 + $0x8] sm:$0xff]  ;;  %v5271_v7 = vld [vmem:[%s8016_s30] ss:$0 sm:$0xff] }
 0x2e6   :  { %v6569_v11 = vpop.eup %6568  ;;  %v485_v12 = vmul.f32 %v5264_v60, %v475_v8 }
 0x2e7   :  { %v505_v13 = vsel %vm497_vm3, %v493_v6, %v501_v9  ;;  %v494_v14 = vadd.f32 %v5265_v62, %v484_v10  ;;  %v476_v15 = vmul.f32 %v6569_v11, %v444_v33  ;;  %6241 = vmatprep.subr.bf16.mxu0 %v6240_v27  ;;  %v5257_v33 = vld [vmem:[#allocation7] ss:$0 sm:$0xff]  ;;  %v6248_v6 = vpack.c.bf16 %v903_v5, %v902_v0 }
 0x2e8   :  { %5800 = vmatprep.mubr.msk.f32.mxu1 %vm423_vm2, %v505_v13  ;;  %v495_v16 = vadd.f32 %v5265_v62, %v485_v12  ;;  %6243 = vmatpush3.bf16.msra.mxu0 %v6240_v27  ;;  %v7315_v38 = vadd.f32 %v5257_v33, %v301_v36  ;;  %v7317_v39 = vadd.f32 %v5257_v33, %v300_v37 }
 0x2e9   :  { %vm498_vm4 = vcmp.ge.f32.partialorder %v494_v14, 0.0  ;;  %v502_v17 = vmul.f32 0.15, %v494_v14  ;;  %v486_v18 = vmul.f32 %v5264_v60, %v476_v15  ;;  %6245 = vmatprep.subr.bf16.mxu0 %v6244_v30 }
 0x2ea   :  { %vm499_vm5 = vcmp.ge.f32.partialorder %v495_v16, 0.0  ;;  %v503_v19 = vmul.f32 0.15, %v495_v16  ;;  %v737_v40 = vpack.c.bf16 %v7315_v38, %v7317_v39 }
 0x2eb   :  { %v506_v20 = vsel %vm498_vm4, %v494_v14, %v502_v17  ;;  %v496_v21 = vadd.f32 %v5265_v62, %v486_v18 }
 0x2ec   :  { %5801 = vmatmul.mubr.msk.f32.vlgmr.msra.gmra.mrb[0].mxu1 %vm423_vm2, %v506_v20  ;;  %v507_v22 = vsel %vm499_vm5, %v495_v16, %v503_v19  ;;  %6247 = vmatpush3.bf16.msra.mxu0 %v6244_v30 }
 0x2ed   :  { %5803 = vmatprep.mubr.msk.f32.mxu1 %vm423_vm2, %v507_v22  ;;  %vm500_vm6 = vcmp.ge.f32.partialorder %v496_v21, 0.0  ;;  %v504_v23 = vmul.f32 0.15, %v496_v21  ;;  %5820 = vmatprep.subr.bf16.mxu1 %v737_v40 }
 0x2ee   :  { %5821 = vmatpush3.bf16.msra.mxu1 %v737_v40  ;;  %5826 = vmatprep.subr.bf16.mxu0 %v6981_v63 }
 0x2ef   :  { %v508_v24 = vsel %vm500_vm6, %v496_v21, %v504_v23  ;;  %6249 = vmatprep.subr.bf16.mxu1 %v6248_v6 }
 0x2f0   :  { %5804 = vmatmul.mubr.msk.f32.gmra.mrb[2].mxu1 %vm423_vm2, %v508_v24 }
 0x2f1   :  { %5822 = vmatprep.mubr.msk.bf16.mxu1 %vm748_vm7, %v7311_v35 }
 0x2f4   :  { %5823 = vmatmul.mubr.msk.bf16.vlgmr.msra.gmra.mrb[4].mxu1 %vm748_vm7, %v7322_v41 }
 0x2f5   :  { %6251 = vmatpush3.bf16.msra.mxu1 %v6248_v6 }
 0x3bf   :  { %v5802_v43 = vpop.f32.mrb[0].mxu1 }
 0x3c0   :  { %v604_v44 = vadd.f32 %v5802_v43, %v5266_v42  ;;  %v598_v45 = vpop.f32.mrb[1].mxu1 }
 0x3c1   :  { %v599_v46 = vadd.f32 %v5266_v42, %v598_v45 }
 0x3c2   :  { %v622_v47 = vmul.f32 0.15, %v604_v44  ;;  %vm618_vm8 = vcmp.ge.f32.partialorder %v604_v44, 0.0 }
 0x3c3   :  { %vm617_vm9 = vcmp.ge.f32.partialorder %v599_v46, 0.0  ;;  %v621_v48 = vmul.f32 0.15, %v599_v46  ;;  %v5805_v49 = vpop.f32.mrb[2].mxu1 }
 0x3c4   :  { %v614_v50 = vadd.f32 %v5805_v49, %v5266_v42  ;;  %v608_v51 = vpop.f32.mrb[3].mxu1  ;;  %v626_v54 = vsel %vm618_vm8, %v604_v44, %v622_v47 }
 0x3c5   :  { %v609_v52 = vadd.f32 %v5266_v42, %v608_v51  ;;  %v625_v53 = vsel %vm617_vm9, %v599_v46, %v621_v48 }
 0x3c6   :  { %v624_v55 = vmul.f32 0.15, %v614_v50  ;;  %5814 = vmatprep.mubr.msk.f32.mxu0 %vm423_vm2, %v625_v53  ;;  %vm620_vm10 = vcmp.ge.f32.partialorder %v614_v50, 0.0  ;;  %v7337_v53 = vld [vmem:[%s8017_s12] sm:$0xff]  }
 0x3c7   :  { %vm619_vm11 = vcmp.ge.f32.partialorder %v609_v52, 0.0  ;;  %v623_v56 = vmul.f32 0.15, %v609_v52  ;;  %5815 = vmatmul.mubr.msk.f32.vlgmr.msra.gmra.mrb[4].mxu0 %vm423_vm2, %v626_v54  ;;  %v5824_v59 = vpop.f32.mrb[4].mxu1 }
 0x3c8   :  { %v628_v58 = vsel %vm620_vm10, %v614_v50, %v624_v55  ;;  %v789_v60 = vpop.f32.mrb[5].mxu1  ;;  %v904_v55 = vld [vmem:[%s8015_s5 + $0x10] sm:$0xff] }
 0x3c9   :  { %v627_v57 = vsel %vm619_vm11, %v609_v52, %v623_v56  ;;  %v5825_v61 = vpop.f32.mrb[6].mxu1  ;;  %v905_v56 = vld [vmem:[%s8015_s5 + $0x18] sm:$0xff] }
 0x3ca   :  { %5817 = vmatprep.mubr.msk.f32.mxu0 %vm423_vm2, %v627_v57  ;;  %v792_v62 = vpop.f32.mrb[7].mxu1  ;;  %v6252_v57 = vpack.c.bf16 %v905_v56, %v904_v55 }
 0x3cb   :  { %5818 = vmatmul.mubr.msk.f32.gmra.mrb[6].mxu0 %vm423_vm2, %v628_v58  ;;  %v5296_v58 = vld [vmem:[%s7043_s14 + $0x8] sm:$0x7f] }
 0x3cc   :  { %5830 = vmatprep.mubr.msk.bf16.mxu0 %vm6982_vm12, %v6981_v63  ;;  %6253 = vmatprep.subr.bf16.mxu1 %v6252_v57 }
 0x3cd   :  { %6255 = vmatpush3.bf16.msra.mxu1 %v6252_v57 }
 0x3ce   :  { %5864 = vmatprep.subr.msk.mxu1 %vm332_vm0, %v5296_v58 }
 0x49a   :  { %v5816_v8 = vpop.f32.mrb[4].mxu0 }
 0x49b   :  { %v724_v9 = vadd.f32 %v5816_v8, %v5271_v7  ;;  %v718_v10 = vpop.f32.mrb[5].mxu0 }
 0x49c   :  { %v719_v11 = vadd.f32 %v5271_v7, %v718_v10 }
 0x49d   :  { %v5281_v12 = vmul.f32 -1.442695, %v724_v9 }
 0x49e   :  { %v5280_v13 = vmul.f32 -1.442695, %v719_v11  ;;  %v5819_v14 = vpop.f32.mrb[6].mxu0 }
 0x49f   :  { %6570 = vpow2.f32 %v5281_v12  ;;  %v734_v15 = vadd.f32 %v5819_v14, %v5271_v7  ;;  %v728_v16 = vpop.f32.mrb[7].mxu0 }
 0x4a0   :  { %6572 = vpow2.f32 %v5280_v13  ;;  %v729_v17 = vadd.f32 %v5271_v7, %v728_v16 }
 0x4a1   :  { %v5283_v18 = vmul.f32 -1.442695, %v734_v15 }
 0x4a2   :  { %v5282_v19 = vmul.f32 -1.442695, %v729_v17 }
 0x4a3   :  { %6574 = vpow2.f32 %v5283_v18 }
 0x4a4   :  { %6576 = vpow2.f32 %v5282_v19 }
 0x4a9   :  { %v6571_v20 = vpop.eup %6570 }
 0x4aa   :  { %v6573_v21 = vpop.eup %6572  ;;  %v817_v22 = vadd.f32 1.0, %v6571_v20 }
 0x4ab   :  { %v816_v23 = vadd.f32 1.0, %v6573_v21 }
 0x4ac   :  { %6578 = vrcp.f32 %v817_v22 }
 0x4ad   :  { %v6575_v24 = vpop.eup %6574  ;;  %6580 = vrcp.f32 %v816_v23  ;;  %v5298_v23 = vld [vmem:[%s7048_s19 + $0x1] ss:$0 sm:$0xff] }
 0x4ae   :  { %v6577_v25 = vpop.eup %6576  ;;  %v819_v26 = vadd.f32 1.0, %v6575_v24 }
 0x4af   :  { %v818_v27 = vadd.f32 1.0, %v6577_v25 }
 0x4b0   :  { %6582 = vrcp.f32 %v819_v26 }
 0x4b1   :  { %6584 = vrcp.f32 %v818_v27 }
 0x4b6   :  { %v6579_v28 = vpop.eup %6578 }
 0x4b7   :  { %v6581_v29 = vpop.eup %6580  ;;  %v833_v30 = vsub.f32 1.0, %v6579_v28  ;;  %v829_v31 = vmul.f32 %v6579_v28, %v792_v62 }
 0x4b8   :  { %v832_v32 = vsub.f32 1.0, %v6581_v29  ;;  %v828_v33 = vmul.f32 %v6581_v29, %v789_v60 }
 0x4b9   :  { %v837_v34 = vmul.f32 %v833_v30, %v724_v9  ;;  %v5286_v9 = vld [vmem:[%s8018_s1] ss:$0 sm:$0xff] }
 0x4ba   :  { %v6583_v36 = vpop.eup %6582  ;;  %v836_v37 = vmul.f32 %v832_v32, %v719_v11 }
 0x4bb   :  { %v6585_v40 = vpop.eup %6584  ;;  %v835_v42 = vsub.f32 1.0, %v6583_v36  ;;  %v831_v43 = vmul.f32 %v6583_v36, %v5825_v61  ;;  %v841_v44 = vadd.f32 %v837_v34, %v829_v31  ;;  %v1046_v36 = vld [vmem:[%s8019_s2] sm:$0xff] }
 0x4bc   :  { %v834_v45 = vsub.f32 1.0, %v6585_v40  ;;  %v830_v46 = vmul.f32 %v6585_v40, %v5824_v59  ;;  %v840_v47 = vadd.f32 %v836_v37, %v828_v33  ;;  %v897_v59 = vstv %s896_s28  ;;  %v1047_v37 = vld [vmem:[%s8019_s2 + $0x8] sm:$0xff]  ;;  %s8032_s28 = sld [smem:[#allocation42_spill]] }
 0x4bd   :  { %v839_v48 = vmul.f32 %v835_v42, %v734_v15  ;;  %v898_v60 = vmul.f32 %v897_v59, %v7317_v39  ;;  %v899_v5 = vmul.f32 %v897_v59, %v7315_v38  ;;  %v6256_v40 = vpack.c.bf16 %v1047_v37, %v1046_v36  ;;  %v1048_v42 = vld [vmem:[%s8019_s2 + $0x10] sm:$0xff] }
 0x4be   :  { %v838_v49 = vmul.f32 %v834_v45, %v729_v17  ;;  %v844_v50 = vpack.c.bf16 %v841_v44, %v840_v47  ;;  %v1050_v45 = vld [vmem:[%s8019_s2 + $0x20] sm:$0xff] }
 0x4bf   :  { %v843_v51 = vadd.f32 %v839_v48, %v831_v43  ;;  %v1049_v43 = vld [vmem:[%s8019_s2 + $0x18] sm:$0xff]  ;;  %v1052_v48 = vld [vmem:[%s8019_s2 + $0x30] sm:$0xff] }
 0x4c0   :  { %v842_v52 = vadd.f32 %v838_v49, %v830_v46  ;;  %5827 = vmatpush3.bf16.msra.mxu0 %v844_v50  ;;  %v6260_v44 = vpack.c.bf16 %v1049_v43, %v1048_v42  ;;  %v1051_v46 = vld [vmem:[%s8019_s2 + $0x28] sm:$0xff]  ;;  %v1053_v49 = vld [vmem:[%s8019_s2 + $0x38] sm:$0xff] }
 0x4c1   :  { %5828 = vmatprep.subr.bf16.mxu0 %v6981_v63  ;;  %v6264_v47 = vpack.c.bf16 %v1051_v46, %v1050_v45  ;;  %v6268_v50 = vpack.c.bf16 %v1053_v49, %v1052_v48 }
 0x4c2   :  { %v845_v54 = vpack.c.bf16 %v843_v51, %v842_v52 }
 0x4c4   :  { %5829 = vmatpush3.bf16.msra.mxu0 %v845_v54 }
 0x4c5   :  { %6257 = vmatprep.subr.bf16.mxu0 %v6256_v40 }
 0x4c7   :  { %5831 = vmatmul.mubr.msk.bf16.vlgmr.msra.gmra.mrb[8].mxu0 %vm423_vm2, %v7337_v53 }
 0x4c8   :  { %6259 = vmatpush3.bf16.msra.mxu0 %v6256_v40 }
 0x4c9   :  { %6261 = vmatprep.subr.bf16.mxu0 %v6260_v44 }
 0x4cc   :  { %6263 = vmatpush3.bf16.msra.mxu0 %v6260_v44 }
 0x4cd   :  { %6265 = vmatprep.subr.bf16.mxu0 %v6264_v47 }
 0x4d0   :  { %6267 = vmatpush3.bf16.msra.mxu0 %v6264_v47 }
 0x4d1   :  { %6269 = vmatprep.subr.bf16.mxu0 %v6268_v50 }
 0x4d4   :  { %6271 = vmatpush3.bf16.msra.mxu0 %v6268_v50 }
 0x59a   :  { %v888_v61 = vpop.f32.mrb[8].mxu0 }
 0x59b   :  { %v900_v62 = vadd.f32 %v898_v60, %v888_v61  ;;  %v5832_v0 = vpop.f32.mrb[9].mxu0 }
 0x59c   :  { %v891_v6 = vpop.f32.mrb[10].mxu0 }
 0x59d   :  { %v901_v7 = vadd.f32 %v899_v5, %v891_v6  ;;  %v5833_v8 = vpop.f32.mrb[11].mxu0  ;;  %5842 = vmatprep.mubr.msk.f32.mxu1 %vm423_vm2, %v900_v62 }
 0x59e   :  { %v5289_v8 = vld [vmem:[%s8020_s10] ss:$0 sm:$0xff] }
 0x59f   :  { %5843 = vmatmul.mubr.msk.f32.vlgmr.msra.gmra.mrb[8].mxu1 %vm423_vm2, %v901_v7 }
 0x5a0   :  { %5865 = vmatpush3.msk.msra.mxu1 %vm332_vm0, %v5296_v58  ;;  %5866 = vmatprep.mubr.msk.f32.mxu1 %vm319_vm1, %v7266_v1 }
 0x5a3   :  { %5867 = vmatmul.mubr.msk.f32.vlgmr.msra.gmra.mrb[10].mxu1 %vm319_vm1, %v7269_v2 }
 0x5a4   :  { %5869 = vmatprep.mubr.msk.f32.mxu1 %vm319_vm1, %v7275_v3 }
 0x5a7   :  { %5870 = vmatmul.mubr.msk.f32.gmra.mrb[12].mxu1 %vm319_vm1, %v7283_v4 }
 0x672   :  { %v5844_v10 = vpop.f32.mrb[8].mxu1 }
 0x673   :  { %v991_v11 = vadd.f32 %v5844_v10, %v5286_v9  ;;  %v985_v12 = vpop.f32.mrb[9].mxu1 }
 0x674   :  { %v986_v13 = vadd.f32 %v5286_v9, %v985_v12 }
 0x675   :  { %v1000_v14 = vsel %vm996_vm13, %v991_v11, 0.0 }
 0x676   :  { %1001 = vadd.xlane.f32.xlu0 %v1000_v14  ;;  %v997_v1 = vsel %vm996_vm13, %v986_v13, 0.0  ;;  %v5868_v2 = vpop.f32.mrb[10].mxu1 }
 0x677   :  { %998 = vadd.xlane.f32.xlu1 %v997_v1  ;;  %v1267_v15 = vpop.f32.mrb[11].mxu1  ;;  %v1273_v28 = vadd.f32 %v5868_v2, %v5298_v23 }
 0x678   :  { %v1268_v26 = vadd.f32 %v5298_v23, %v1267_v15 }
 0x679   :  { %v1293_v31 = vsel %vm423_vm2, %v1273_v28, 0.0 }
 0x67a   :  { %v5871_v16 = vpop.f32.mrb[12].mxu1  ;;  %v1290_v29 = vsel %vm423_vm2, %v1268_v26, 0.0 }
 0x67b   :  { %v1277_v3 = vpop.f32.mrb[13].mxu1  ;;  %v1283_v32 = vadd.f32 %v5871_v16, %v5298_v23 }
 0x67c   :  { %v1278_v30 = vadd.f32 %v5298_v23, %v1277_v3 }
 0x67d   :  { %v1299_v34 = vsel %vm423_vm2, %v1283_v32, 0.0 }
 0x67e   :  { %v1296_v33 = vsel %vm423_vm2, %v1278_v30, 0.0 }
 0x703   :  { %v1002_v17 = vpop.xlane.xlu0 %1001 }
 0x704   :  { %v1005_v18 = vmul.f32 0.015625, %v1002_v17  ;;  %v999_v4 = vpop.xlane.xlu1 %998 }
 0x705   :  { %v1004_v19 = vmul.f32 0.015625, %v999_v4 }
 0x706   :  { %v7362_v20 = vsub.f32 %v991_v11, %v1005_v18 }
 0x707   :  { %v1006_v21 = vsub.f32 %v986_v13, %v1004_v19  ;;  %v5290_v13 = vld [vmem:[%s8021_s24] ss:$0 sm:$0xff] }
 0x708   :  { %v1009_v25 = vmul.f32 %v7362_v20, %v7362_v20 }
 0x709   :  { %v1008_v22 = vmul.f32 %v1006_v21, %v1006_v21 }
 0x70a   :  { %v1013_v27 = vsel %vm996_vm13, %v1009_v25, 0.0 }
 0x70b   :  { %v1010_v24 = vsel %vm996_vm13, %v1008_v22, 0.0 }
 0x70c   :  { %1011 = vadd.xlane.f32.xlu1 %v1010_v24 }
 0x710   :  { %1014 = vadd.xlane.f32.xlu1 %v1013_v27 }
 0x714   :  { %1291 = vadd.xlane.f32.xlu1 %v1290_v29  ;;  %v5306_v29 = vld [vmem:[%s7063_s6 + $0x20] sm:$0xff] }
 0x718   :  { %1294 = vadd.xlane.f32.xlu1 %v1293_v31 }
 0x71c   :  { %1297 = vadd.xlane.f32.xlu1 %v1296_v33  ;;  %v5309_v33 = vld [vmem:[%s7063_s6 + $0x38] sm:$0xff] }
 0x720   :  { %1300 = vadd.xlane.f32.xlu1 %v1299_v34 }
 0x799   :  { %v1012_v51 = vpop.xlane.xlu1 %1011 }
 0x79a   :  { %v1016_v52 = vmul.f32 0.015625, %v1012_v51 }
 0x79c   :  { %v1018_v54 = vadd.f32 1e-05, %v1016_v52  ;;  %v5304_v52 = vld [vmem:[#allocation11 + $0x1] ss:$0 sm:$0xff] }
 0x79d   :  { %v1015_v55 = vpop.xlane.xlu1 %1014 }
 0x79e   :  { %6586 = vrsqrt.f32 %v1018_v54  ;;  %v1017_v56 = vmul.f32 0.015625, %v1015_v55  ;;  %v5305_v55 = vld [vmem:[#allocation13 + $0x1] ss:$0 sm:$0xff] }
 0x7a0   :  { %v1019_v57 = vadd.f32 1e-05, %v1017_v56 }
 0x7a1   :  { %v1292_v58 = vpop.xlane.xlu1 %1291 }
 0x7a2   :  { %6588 = vrsqrt.f32 %v1019_v57  ;;  %v1302_v59 = vmul.f32 0.03125, %v1292_v58 }
 0x7a4   :  { %v7381_v60 = vsub.f32 %v1268_v26, %v1302_v59 }
 0x7a5   :  { %v1295_v61 = vpop.xlane.xlu1 %1294 }
 0x7a6   :  { %v1303_v62 = vmul.f32 0.03125, %v1295_v61  ;;  %v1310_v0 = vmul.f32 %v7381_v60, %v7381_v60 }
 0x7a8   :  { %v6587_v5 = vpop.eup %6586  ;;  %v7385_v6 = vsub.f32 %v1273_v28, %v1303_v62  ;;  %v1314_v7 = vsel %vm423_vm2, %v1310_v0, 0.0 }
 0x7a9   :  { %1315 = vadd.xlane.f32.xlu0 %v1314_v7  ;;  %v1298_v9 = vpop.xlane.xlu1 %1297  ;;  %v1022_v10 = vmul.f32 %v6587_v5, %v1006_v21 }
 0x7aa   :  { %v1304_v11 = vmul.f32 0.03125, %v1298_v9  ;;  %v1311_v12 = vmul.f32 %v7385_v6, %v7385_v6 }
 0x7ab   :  { %v1030_v14 = vmul.f32 %v5289_v8, %v1022_v10 }
 0x7ac   :  { %v6589_v1 = vpop.eup %6588  ;;  %v7392_v2 = vsub.f32 %v1278_v30, %v1304_v11  ;;  %v1317_v15 = vsel %vm423_vm2, %v1311_v12, 0.0  ;;  %v5307_v30 = vld [vmem:[%s7063_s6 + $0x28] sm:$0xff] }
 0x7ad   :  { %v1023_v16 = vmul.f32 %v6589_v1, %v7362_v20  ;;  %1318 = vadd.xlane.f32.xlu1 %v1317_v15  ;;  %v1301_v3 = vpop.xlane.xlu1 %1300  ;;  %v1038_v17 = vadd.f32 %v5290_v13, %v1030_v14  ;;  %v6272_v31 = vpack.c.bf16 %v5307_v30, %v5306_v29 }
 0x7ae   :  { %v1305_v18 = vmul.f32 0.03125, %v1301_v3  ;;  %v1312_v4 = vmul.f32 %v7392_v2, %v7392_v2  ;;  %v5291_v3 = vld [vmem:[%s8022_s7] ss:$0 sm:$0xff] }
 0x7af   :  { %v1031_v19 = vmul.f32 %v5289_v8, %v1023_v16  ;;  %vm1040_vm14 = vcmp.ge.f32.partialorder %v1038_v17, 0.0  ;;  %v1042_v21 = vmul.f32 0.15, %v1038_v17  ;;  %6273 = vmatprep.subr.bf16.mxu1 %v6272_v31 }
 0x7b0   :  { %v1309_v22 = vsub.f32 %v1283_v32, %v1305_v18  ;;  %v1320_v23 = vsel %vm423_vm2, %v1312_v4, 0.0  ;;  %v5308_v32 = vld [vmem:[%s7063_s6 + $0x30] sm:$0xff]  ;;  %6275 = vmatpush3.bf16.msra.mxu1 %v6272_v31 }
 0x7b1   :  { %1321 = vadd.xlane.f32.xlu0 %v1320_v23  ;;  %v1039_v24 = vadd.f32 %v5290_v13, %v1031_v19  ;;  %v1044_v20 = vsel %vm1040_vm14, %v1038_v17, %v1042_v21  ;;  %v6276_v34 = vpack.c.bf16 %v5309_v33, %v5308_v32  ;;  %v5315_v23 = vld [vmem:[%s7073_s20 + $0x20] sm:$0xff] }
 0x7b2   :  { %5861 = vmatprep.mubr.msk.f32.mxu0 %vm996_vm13, %v1044_v20  ;;  %v1313_v25 = vmul.f32 %v1309_v22, %v1309_v22 }
 0x7b3   :  { %vm1041_vm15 = vcmp.ge.f32.partialorder %v1039_v24, 0.0  ;;  %v1043_v26 = vmul.f32 0.15, %v1039_v24  ;;  %6277 = vmatprep.subr.bf16.mxu1 %v6276_v34 }
 0x7b4   :  { %v1323_v27 = vsel %vm423_vm2, %v1313_v25, 0.0  ;;  %6279 = vmatpush3.bf16.msra.mxu1 %v6276_v34  ;;  %v5317_v25 = vld [vmem:[%s7073_s20 + $0x30] sm:$0xff] }
 0x7b5   :  { %1324 = vadd.xlane.f32.xlu1 %v1323_v27  ;;  %v1045_v28 = vsel %vm1041_vm15, %v1039_v24, %v1043_v26  ;;  %v5316_v24 = vld [vmem:[%s7073_s20 + $0x28] sm:$0xff]  ;;  %v5318_v26 = vld [vmem:[%s7073_s20 + $0x38] sm:$0xff] }
 0x7b6   :  { %5862 = vmatmul.mubr.msk.f32.vlgmr.msra.gmra.mrb[12].mxu0 %vm996_vm13, %v1045_v28  ;;  %v6280_v20 = vpack.c.bf16 %v5316_v24, %v5315_v23 }
 0x7b8   :  { %6281 = vmatprep.subr.bf16.mxu0 %v6280_v20 }
 0x7b9   :  { %6283 = vmatpush3.bf16.msra.mxu0 %v6280_v20 }
 0x836   :  { %v1316_v36 = vpop.xlane.xlu0 %1315 }
 0x837   :  { %v1326_v37 = vmul.f32 0.03125, %v1316_v36 }
 0x839   :  { %v1330_v40 = vadd.f32 1e-05, %v1326_v37 }
 0x83a   :  { %v1319_v42 = vpop.xlane.xlu1 %1318 }
 0x83b   :  { %6590 = vrsqrt.f32 %v1330_v40  ;;  %v1327_v43 = vmul.f32 0.03125, %v1319_v42  ;;  %v5310_v40 = vld [vmem:[#allocation14 + $0x1] ss:$0 sm:$0xff] }
 0x83d   :  { %v1331_v44 = vadd.f32 1e-05, %v1327_v43 }
 0x83e   :  { %v1322_v45 = vpop.xlane.xlu0 %1321 }
 0x83f   :  { %6592 = vrsqrt.f32 %v1331_v44  ;;  %v1328_v46 = vmul.f32 0.03125, %v1322_v45 }
 0x841   :  { %v1332_v47 = vadd.f32 1e-05, %v1328_v46 }
 0x842   :  { %v1325_v48 = vpop.xlane.xlu1 %1324 }
 0x843   :  { %6594 = vrsqrt.f32 %v1332_v47  ;;  %v1329_v49 = vmul.f32 0.03125, %v1325_v48 }
 0x845   :  { %v6591_v50 = vpop.eup %6590  ;;  %v1333_v51 = vadd.f32 1e-05, %v1329_v49 }
 0x846   :  { %v1338_v54 = vmul.f32 %v6591_v50, %v7381_v60 }
 0x847   :  { %6596 = vrsqrt.f32 %v1333_v51 }
 0x848   :  { %v1348_v56 = vmul.f32 %v5304_v52, %v1338_v54 }
 0x849   :  { %v6593_v57 = vpop.eup %6592 }
 0x84a   :  { %v1339_v58 = vmul.f32 %v6593_v57, %v7385_v6  ;;  %v1358_v59 = vadd.f32 %v5305_v55, %v1348_v56 }
 0x84c   :  { %vm1362_vm3 = vcmp.ge.f32.partialorder %v1358_v59, 0.0  ;;  %v1366_v61 = vmul.f32 0.15, %v1358_v59  ;;  %v1349_v62 = vmul.f32 %v5304_v52, %v1339_v58 }
 0x84d   :  { %v6595_v0 = vpop.eup %6594 }
 0x84e   :  { %v1370_v5 = vsel %vm1362_vm3, %v1358_v59, %v1366_v61  ;;  %v1359_v7 = vadd.f32 %v5305_v55, %v1349_v62  ;;  %v1340_v8 = vmul.f32 %v6595_v0, %v7392_v2 }
 0x84f   :  { %5880 = vmatprep.mubr.msk.f32.mxu1 %vm423_vm2, %v1370_v5 }
 0x850   :  { %vm1363_vm4 = vcmp.ge.f32.partialorder %v1359_v7, 0.0  ;;  %v1367_v9 = vmul.f32 0.15, %v1359_v7  ;;  %v1350_v60 = vmul.f32 %v5304_v52, %v1340_v8 }
 0x851   :  { %v6597_v10 = vpop.eup %6596 }
 0x852   :  { %v1371_v11 = vsel %vm1363_vm4, %v1359_v7, %v1367_v9  ;;  %v1360_v12 = vadd.f32 %v5305_v55, %v1350_v60  ;;  %v1341_v13 = vmul.f32 %v6597_v10, %v1309_v22  ;;  %v5294_v9 = vld [vmem:[%s8023_s0] ss:$0 sm:$0xff] }
 0x853   :  { %5881 = vmatmul.mubr.msk.f32.vlgmr.msra.gmra.mrb[14].mxu1 %vm423_vm2, %v1371_v11 }
 0x854   :  { %vm1364_vm5 = vcmp.ge.f32.partialorder %v1360_v12, 0.0  ;;  %v1368_v6 = vmul.f32 0.15, %v1360_v12  ;;  %v1351_v14 = vmul.f32 %v5304_v52, %v1341_v13 }
 0x856   :  { %v1372_v1 = vsel %vm1364_vm5, %v1360_v12, %v1368_v6  ;;  %v1361_v15 = vadd.f32 %v5305_v55, %v1351_v14  ;;  %v5295_v12 = vld [vmem:[%s8024_s9] ss:$0 sm:$0xff] }
 0x857   :  { %5883 = vmatprep.mubr.msk.f32.mxu1 %vm423_vm2, %v1372_v1 }
 0x858   :  { %vm1365_vm6 = vcmp.ge.f32.partialorder %v1361_v15, 0.0  ;;  %v1369_v2 = vmul.f32 0.15, %v1361_v15 }
 0x85a   :  { %v1373_v16 = vsel %vm1365_vm6, %v1361_v15, %v1369_v2 }
 0x85b   :  { %5884 = vmatmul.mubr.msk.f32.gmra.mrb[16].mxu1 %vm423_vm2, %v1373_v16 }
 0x85c   :  { %5902 = vmatprep.mubr.msk.bf16.mxu1 %vm748_vm7, %v7311_v35  ;;  %v6284_v35 = vpack.c.bf16 %v5318_v26, %v5317_v25 }
 0x85e   :  { %6285 = vmatprep.subr.bf16.mxu0 %v6284_v35 }
 0x85f   :  { %6287 = vmatpush3.bf16.msra.mxu0 %v6284_v35 }
 0x860   :  { %5906 = vmatprep.subr.bf16.mxu0 %v6981_v63 }
 0x889   :  { %v5863_v17 = vpop.f32.mrb[12].mxu0 }
 0x88a   :  { %v1139_v18 = vadd.f32 %v5863_v17, %v5291_v3  ;;  %v1133_v4 = vpop.f32.mrb[13].mxu0 }
 0x88b   :  { %v1134_v19 = vadd.f32 %v5291_v3, %v1133_v4 }
 0x88c   :  { %v1147_v21 = vsel %vm423_vm2, %v1139_v18, 0.0 }
 0x88d   :  { %1148 = vadd.xlane.f32.xlu1 %v1147_v21  ;;  %v1144_v22 = vsel %vm423_vm2, %v1134_v19, 0.0  ;;  %v5334_v21 = vld [vmem:[%s8015_s5 + $0x28] sm:$0xff] }
 0x88e   :  { %1145 = vadd.xlane.f32.xlu0 %v1144_v22 }
 0x91a   :  { %v1149_v27 = vpop.xlane.xlu1 %1148 }
 0x91b   :  { %v1151_v28 = vmul.f32 0.03125, %v1149_v27  ;;  %v1146_v29 = vpop.xlane.xlu0 %1145 }
 0x91c   :  { %v1150_v30 = vmul.f32 0.03125, %v1146_v29 }
 0x91d   :  { %v1153_v31 = vsub.f32 %v1139_v18, %v1151_v28 }
 0x91e   :  { %v1152_v32 = vsub.f32 %v1134_v19, %v1150_v30  ;;  %v5333_v19 = vld [vmem:[%s8015_s5 + $0x20] sm:$0xff] }
 0x91f   :  { %v1155_v33 = vmul.f32 %v1153_v31, %v1153_v31  ;;  %v6288_v22 = vpack.c.bf16 %v5334_v21, %v5333_v19 }
 0x920   :  { %v1154_v34 = vmul.f32 %v1152_v32, %v1152_v32 }
 0x921   :  { %v1159_v36 = vsel %vm423_vm2, %v1155_v33, 0.0 }
 0x922   :  { %1160 = vadd.xlane.f32.xlu1 %v1159_v36  ;;  %v1156_v37 = vsel %vm423_vm2, %v1154_v34, 0.0 }
 0x923   :  { %1157 = vadd.xlane.f32.xlu0 %v1156_v37 }
 0x926   :  { %v5882_v42 = vpop.f32.mrb[14].mxu1 }
 0x927   :  { %v1471_v43 = vadd.f32 %v5882_v42, %v5310_v40  ;;  %v1465_v44 = vpop.f32.mrb[15].mxu1 }
 0x928   :  { %v1466_v45 = vadd.f32 %v5310_v40, %v1465_v44 }
 0x929   :  { %v1489_v46 = vmul.f32 0.15, %v1471_v43  ;;  %vm1485_vm8 = vcmp.ge.f32.partialorder %v1471_v43, 0.0 }
 0x92a   :  { %vm1484_vm9 = vcmp.ge.f32.partialorder %v1466_v45, 0.0  ;;  %v1488_v47 = vmul.f32 0.15, %v1466_v45 }
 0x92b   :  { %v1493_v49 = vsel %vm1485_vm8, %v1471_v43, %v1489_v46 }
 0x92c   :  { %v1492_v48 = vsel %vm1484_vm9, %v1466_v45, %v1488_v47 }
 0x92d   :  { %5894 = vmatprep.mubr.msk.f32.mxu0 %vm423_vm2, %v1492_v48 }
 0x92e   :  { %v5885_v50 = vpop.f32.mrb[16].mxu1  ;;  %5895 = vmatmul.mubr.msk.f32.vlgmr.msra.gmra.mrb[14].mxu0 %vm423_vm2, %v1493_v49 }
 0x92f   :  { %v1481_v51 = vadd.f32 %v5885_v50, %v5310_v40  ;;  %v1475_v52 = vpop.f32.mrb[17].mxu1 }
 0x930   :  { %v1476_v54 = vadd.f32 %v5310_v40, %v1475_v52 }
 0x931   :  { %v1491_v55 = vmul.f32 0.15, %v1481_v51  ;;  %vm1487_vm10 = vcmp.ge.f32.partialorder %v1481_v51, 0.0 }
 0x932   :  { %vm1486_vm11 = vcmp.ge.f32.partialorder %v1476_v54, 0.0  ;;  %v1490_v56 = vmul.f32 0.15, %v1476_v54 }
 0x933   :  { %v1495_v58 = vsel %vm1487_vm10, %v1481_v51, %v1491_v55  ;;  %vm7584_vm10 = vmpackc.low %vm748_vm7, %vm748_vm7 }
 0x934   :  { %v1494_v57 = vsel %vm1486_vm11, %v1476_v54, %v1490_v56  ;;  %vm3023_vm11 = vcmask 261248  }
 0x935   :  { %5897 = vmatprep.mubr.msk.f32.mxu0 %vm423_vm2, %v1494_v57 }
 0x936   :  { %5898 = vmatmul.mubr.msk.f32.gmra.mrb[16].mxu0 %vm423_vm2, %v1495_v58 }
 0x937   :  { %5910 = vmatprep.mubr.msk.bf16.mxu0 %vm6982_vm12, %v6981_v63 }
 0x9af   :  { %v1161_v59 = vpop.xlane.xlu1 %1160 }
 0x9b0   :  { %v1163_v61 = vmul.f32 0.03125, %v1161_v59  ;;  %v1158_v62 = vpop.xlane.xlu0 %1157 }
 0x9b1   :  { %v1162_v0 = vmul.f32 0.03125, %v1158_v62 }
 0x9b2   :  { %v1165_v5 = vadd.f32 1e-05, %v1163_v61 }
 0x9b3   :  { %v1164_v7 = vadd.f32 1e-05, %v1162_v0 }
 0x9b4   :  { %6598 = vrsqrt.f32 %v1165_v5 }
 0x9b5   :  { %6600 = vrsqrt.f32 %v1164_v7 }
 0x9be   :  { %v6599_v8 = vpop.eup %6598 }
 0x9bf   :  { %v6601_v60 = vpop.eup %6600  ;;  %v1169_v10 = vmul.f32 %v6599_v8, %v1153_v31 }
 0x9c0   :  { %v1168_v11 = vmul.f32 %v6601_v60, %v1152_v32  ;;  %v5336_v60 = vld [vmem:[%s8015_s5 + $0x38] sm:$0xff] }
 0x9c1   :  { %v1177_v13 = vmul.f32 %v5294_v9, %v1169_v10 }
 0x9c2   :  { %v1176_v6 = vmul.f32 %v5294_v9, %v1168_v11  ;;  %v5335_v9 = vld [vmem:[%s8015_s5 + $0x30] sm:$0xff]  ;;  %v1741_v11 = vstv %s1740_s15  ;;  %s6983_s15 = smov 64  }
 0x9c3   :  { %v1185_v14 = vadd.f32 %v5295_v12, %v1177_v13  ;;  %v6292_v10 = vpack.c.bf16 %v5336_v60, %v5335_v9 }
 0x9c4   :  { %v1184_v1 = vadd.f32 %v5295_v12, %v1176_v6 }
 0x9c5   :  { %v7434_v15 = vadd.f32 %v1185_v14, %v7315_v38  ;;  %v5320_v38 = vld [vmem:[%s8016_s30 + $0x1] ss:$0 sm:$0xff] }
 0x9c6   :  { %v7437_v2 = vadd.f32 %v1184_v1, %v7317_v39 }
 0x9c7   :  { %v1743_v1 = vmul.f32 %v1741_v11, %v7434_v15 }
 0x9c8   :  { %v1606_v16 = vpack.c.bf16 %v7434_v15, %v7437_v2  ;;  %v1742_v12 = vmul.f32 %v1741_v11, %v7437_v2  ;;  %v7481_v11 = vld [vmem:[%s7013_s17 + $0x8] sm:$0xff] }
 0x9ca   :  { %5900 = vmatprep.subr.bf16.mxu1 %v1606_v16 }
 0x9cb   :  { %5901 = vmatpush3.bf16.msra.mxu1 %v1606_v16 }
 0x9cc   :  { %6289 = vmatprep.subr.bf16.mxu1 %v6288_v22 }
 0x9ce   :  { %5903 = vmatmul.mubr.msk.bf16.vlgmr.msra.gmra.mrb[20].mxu1 %vm748_vm7, %v7322_v41 }
 0x9cf   :  { %6291 = vmatpush3.bf16.msra.mxu1 %v6288_v22 }
 0x9d0   :  { %6293 = vmatprep.subr.bf16.mxu1 %v6292_v10 }
 0x9d3   :  { %6295 = vmatpush3.bf16.msra.mxu1 %v6292_v10  ;;  %v2062_v10 = vld [vmem:[%s8025_s16] sm:$0x7f]  ;;  %s6984_s16 = smov 96  }
 0x9d4   :  { %5944 = vmatprep.subr.msk.mxu1 %vm332_vm0, %v2062_v10 }
 0xa01   :  { %v5896_v3 = vpop.f32.mrb[14].mxu0 }
 0xa02   :  { %v1587_v17 = vpop.f32.mrb[15].mxu0  ;;  %v1593_v20 = vadd.f32 %v5896_v3, %v5320_v38 }
 0xa03   :  { %v1588_v23 = vadd.f32 %v5320_v38, %v1587_v17 }
 0xa04   :  { %v5328_v27 = vmul.f32 -1.442695, %v1593_v20 }
 0xa05   :  { %v5327_v26 = vmul.f32 -1.442695, %v1588_v23 }
 0xa09   :  { %v5899_v18 = vpop.f32.mrb[16].mxu0 }
 0xa0a   :  { %v1597_v4 = vpop.f32.mrb[17].mxu0  ;;  %v1603_v24 = vadd.f32 %v5899_v18, %v5320_v38  ;;  %v7456_v18 = vld [vmem:[%s7013_s17] sm:$0xff] }
 0xa0b   :  { %v1598_v39 = vadd.f32 %v5320_v38, %v1597_v4  ;;  %v5338_v4 = vld [vmem:[%s8018_s1 + $0x1] ss:$0 sm:$0xff] }
 0xa0c   :  { %v5330_v35 = vmul.f32 -1.442695, %v1603_v24 }
 0xa0d   :  { %v5329_v25 = vmul.f32 -1.442695, %v1598_v39 }
 0xa0f   :  { %6602 = vpow2.f32 %v5329_v25 }
 0xa10   :  { %6604 = vpow2.f32 %v5327_v26 }
 0xa11   :  { %6606 = vpow2.f32 %v5330_v35 }
 0xa12   :  { %6608 = vpow2.f32 %v5328_v27 }
 0xa19   :  { %v6603_v41 = vpop.eup %6602 }
 0xa1a   :  { %v6605_v28 = vpop.eup %6604  ;;  %v1670_v31 = vadd.f32 1.0, %v6603_v41 }
 0xa1b   :  { %v6607_v29 = vpop.eup %6606  ;;  %v1668_v32 = vadd.f32 1.0, %v6605_v28 }
 0xa1c   :  { %v6609_v30 = vpop.eup %6608  ;;  %v1671_v33 = vadd.f32 1.0, %v6607_v29  ;;  %6610 = vrcp.f32 %v1670_v31  ;;  %v5345_v31 = vld [vmem:[%s8019_s2 + $0x40] sm:$0xff] }
 0xa1d   :  { %v1669_v34 = vadd.f32 1.0, %v6609_v30  ;;  %6612 = vrcp.f32 %v1668_v32  ;;  %v5346_v32 = vld [vmem:[%s8019_s2 + $0x48] sm:$0xff] }
 0xa1e   :  { %6614 = vrcp.f32 %v1671_v33  ;;  %v6296_v33 = vpack.c.bf16 %v5346_v32, %v5345_v31  ;;  %v2172_v31 = vld [vmem:[%s8026_s22 + $0x10] sm:$0xff]  ;;  %v2173_v32 = vld [vmem:[%s8026_s22 + $0x18] sm:$0xff] }
 0xa1f   :  { %6616 = vrcp.f32 %v1669_v34  ;;  %v5347_v34 = vld [vmem:[%s8019_s2 + $0x50] sm:$0xff] }
 0xa26   :  { %v6611_v36 = vpop.eup %6610 }
 0xa27   :  { %v6613_v37 = vpop.eup %6612  ;;  %v1686_v43 = vsub.f32 1.0, %v6611_v36 }
 0xa28   :  { %v6615_v40 = vpop.eup %6614  ;;  %v1684_v44 = vsub.f32 1.0, %v6613_v37 }
 0xa29   :  { %v6617_v42 = vpop.eup %6616  ;;  %v1687_v45 = vsub.f32 1.0, %v6615_v40  ;;  %v1690_v48 = vmul.f32 %v1686_v43, %v1598_v39  ;;  %v5351_v43 = vld [vmem:[%s8019_s2 + $0x70] sm:$0xff] }
 0xa2a   :  { %v1685_v46 = vsub.f32 1.0, %v6617_v42  ;;  %v1688_v51 = vmul.f32 %v1684_v44, %v1588_v23 }
 0xa2b   :  { %v1691_v55 = vmul.f32 %v1687_v45, %v1603_v24  ;;  %v5352_v45 = vld [vmem:[%s8019_s2 + $0x78] sm:$0xff] }
 0xa2c   :  { %v1689_v59 = vmul.f32 %v1685_v46, %v1593_v20  ;;  %v6308_v46 = vpack.c.bf16 %v5352_v45, %v5351_v43 }
 0xaa1   :  { %v5904_v47 = vpop.f32.mrb[20].mxu1 }
 0xaa2   :  { %v1682_v49 = vmul.f32 %v6611_v36, %v5904_v47  ;;  %v1641_v50 = vpop.f32.mrb[21].mxu1  ;;  %v5348_v36 = vld [vmem:[%s8019_s2 + $0x58] sm:$0xff] }
 0xaa3   :  { %v1680_v52 = vmul.f32 %v6613_v37, %v1641_v50  ;;  %v5905_v54 = vpop.f32.mrb[22].mxu1  ;;  %v6300_v37 = vpack.c.bf16 %v5348_v36, %v5347_v34  ;;  %v6316_v34 = vpack.c.bf16 %v2173_v32, %v2172_v31 }
 0xaa4   :  { %v1694_v56 = vadd.f32 %v1690_v48, %v1682_v49  ;;  %v1683_v57 = vmul.f32 %v6615_v40, %v5905_v54  ;;  %v1644_v58 = vpop.f32.mrb[23].mxu1  ;;  %v5349_v40 = vld [vmem:[%s8019_s2 + $0x60] sm:$0xff] }
 0xaa5   :  { %v1692_v61 = vadd.f32 %v1688_v51, %v1680_v52  ;;  %v1681_v62 = vmul.f32 %v6617_v42, %v1644_v58  ;;  %v5350_v42 = vld [vmem:[%s8019_s2 + $0x68] sm:$0xff]  ;;  %v5344_v58 = vld [vmem:[%s8021_s24 + $0x1] ss:$0 sm:$0xff] }
 0xaa6   :  { %v1695_v0 = vadd.f32 %v1691_v55, %v1683_v57  ;;  %v6304_v44 = vpack.c.bf16 %v5350_v42, %v5349_v40  ;;  %v5343_v55 = vld [vmem:[%s8020_s10 + $0x1] ss:$0 sm:$0xff] }
 0xaa7   :  { %v1693_v5 = vadd.f32 %v1689_v59, %v1681_v62 }
 0xaa8   :  { %v1697_v7 = vpack.c.bf16 %v1695_v0, %v1694_v56 }
 0xaa9   :  { %v1696_v8 = vpack.c.bf16 %v1693_v5, %v1692_v61 }
 0xaab   :  { %5907 = vmatpush3.bf16.msra.mxu0 %v1696_v8 }
 0xaac   :  { %5908 = vmatprep.subr.bf16.mxu0 %v6981_v63 }
 0xaaf   :  { %5909 = vmatpush3.bf16.msra.mxu0 %v1697_v7 }
 0xab0   :  { %6297 = vmatprep.subr.bf16.mxu0 %v6296_v33 }
 0xab2   :  { %5911 = vmatmul.mubr.msk.bf16.vlgmr.msra.gmra.mrb[20].mxu0 %vm423_vm2, %v7337_v53 }
 0xab3   :  { %6299 = vmatpush3.bf16.msra.mxu0 %v6296_v33 }
 0xab4   :  { %6301 = vmatprep.subr.bf16.mxu0 %v6300_v37 }
 0xab7   :  { %6303 = vmatpush3.bf16.msra.mxu0 %v6300_v37 }
 0xab8   :  { %6305 = vmatprep.subr.bf16.mxu0 %v6304_v44 }
 0xabb   :  { %6307 = vmatpush3.bf16.msra.mxu0 %v6304_v44 }
 0xabc   :  { %6309 = vmatprep.subr.bf16.mxu0 %v6308_v46 }
 0xabf   :  { %6311 = vmatpush3.bf16.msra.mxu0 %v6308_v46 }
 0xb85   :  { %v1732_v13 = vpop.f32.mrb[20].mxu0 }
 0xb86   :  { %v1744_v6 = vadd.f32 %v1742_v12, %v1732_v13  ;;  %v5912_v14 = vpop.f32.mrb[21].mxu0  ;;  %v7486_v12 = vld [vmem:[%s7013_s17 + $0x10] sm:$0xff]  ;;  %v7491_v13 = vld [vmem:[%s7013_s17 + $0x18] sm:$0xff] }
 0xb87   :  { %v1735_v16 = vpop.f32.mrb[22].mxu0 }
 0xb88   :  { %v1745_v3 = vadd.f32 %v1743_v1, %v1735_v16  ;;  %v5913_v17 = vpop.f32.mrb[23].mxu0  ;;  %5922 = vmatprep.mubr.msk.f32.mxu1 %vm423_vm2, %v1744_v6  ;;  %v5354_v6 = vld [vmem:[%s8022_s7 + $0x1] ss:$0 sm:$0xff] }
 0xb8a   :  { %5923 = vmatmul.mubr.msk.f32.vlgmr.msra.gmra.mrb[18].mxu1 %vm423_vm2, %v1745_v3 }
 0xb8b   :  { %5946 = vmatprep.mubr.msk.f32.mxu1 %vm319_vm1, %v7456_v18  ;;  %5945 = vmatpush3.msk.msra.mxu1 %vm332_vm0, %v2062_v10 }
 0xb8e   :  { %5947 = vmatmul.mubr.msk.f32.vlgmr.msra.gmra.mrb[24].mxu1 %vm319_vm1, %v7481_v11 }
 0xb8f   :  { %5949 = vmatprep.mubr.msk.f32.mxu1 %vm319_vm1, %v7486_v12 }
 0xb92   :  { %5950 = vmatmul.mubr.msk.f32.gmra.mrb[26].mxu1 %vm319_vm1, %v7491_v13 }
 0xc5d   :  { %v5924_v19 = vpop.f32.mrb[18].mxu1 }
 0xc5e   :  { %v1837_v21 = vadd.f32 %v5924_v19, %v5338_v4  ;;  %v1831_v22 = vpop.f32.mrb[19].mxu1 }
 0xc5f   :  { %v1832_v38 = vadd.f32 %v5338_v4, %v1831_v22 }
 0xc60   :  { %v1847_v39 = vsel %vm996_vm13, %v1837_v21, 0.0 }
 0xc61   :  { %1848 = vadd.xlane.f32.xlu1 %v1847_v39  ;;  %v1844_v23 = vsel %vm996_vm13, %v1832_v38, 0.0 }
 0xc62   :  { %1845 = vadd.xlane.f32.xlu0 %v1844_v23 }
 0xcee   :  { %v1849_v24 = vpop.xlane.xlu1 %1848 }
 0xcef   :  { %v1851_v20 = vmul.f32 0.015625, %v1849_v24  ;;  %v1846_v25 = vpop.xlane.xlu0 %1845 }
 0xcf0   :  { %v1850_v26 = vmul.f32 0.015625, %v1846_v25 }
 0xcf1   :  { %v1853_v35 = vsub.f32 %v1837_v21, %v1851_v20 }
 0xcf2   :  { %v1852_v27 = vsub.f32 %v1832_v38, %v1850_v26 }
 0xcf3   :  { %v1855_v41 = vmul.f32 %v1853_v35, %v1853_v35 }
 0xcf4   :  { %v1854_v28 = vmul.f32 %v1852_v27, %v1852_v27 }
 0xcf5   :  { %v1859_v29 = vsel %vm996_vm13, %v1855_v41, 0.0 }
 0xcf6   :  { %1860 = vadd.xlane.f32.xlu1 %v1859_v29  ;;  %v1856_v30 = vsel %vm996_vm13, %v1854_v28, 0.0  ;;  %v5948_v28 = vpop.f32.mrb[24].mxu1  ;;  %v5363_v29 = vld [vmem:[%s8027_s23] ss:$0 sm:$0xff]  ;;  %s6986_s23 = smov 32  }
 0xcf7   :  { %1857 = vadd.xlane.f32.xlu0 %v1856_v30  ;;  %v2139_v30 = vpop.f32.mrb[25].mxu1  ;;  %v2145_v36 = vadd.f32 %v5948_v28, %v5363_v29 }
 0xcf8   :  { %v2140_v33 = vadd.f32 %v5363_v29, %v2139_v30  ;;  %v5951_v40 = vpop.f32.mrb[26].mxu1 }
 0xcf9   :  { %v2163_v42 = vmul.f32 0.15, %v2145_v36  ;;  %v2149_v43 = vpop.f32.mrb[27].mxu1  ;;  %vm2159_vm4 = vcmp.ge.f32.partialorder %v2145_v36, 0.0 }
 0xcfa   :  { %v2162_v37 = vmul.f32 0.15, %v2140_v33  ;;  %vm2158_vm3 = vcmp.ge.f32.partialorder %v2140_v33, 0.0  ;;  %v2150_v44 = vadd.f32 %v5363_v29, %v2149_v43 }
 0xcfb   :  { %v2167_v46 = vsel %vm2159_vm4, %v2145_v36, %v2163_v42 }
 0xcfc   :  { %v2166_v45 = vsel %vm2158_vm3, %v2140_v33, %v2162_v37  ;;  %vm2160_vm5 = vcmp.ge.f32.partialorder %v2150_v44, 0.0 }
 0xcfd   :  { %5960 = vmatprep.mubr.msk.f32.mxu1 %vm423_vm2, %v2166_v45 }
 0xd83   :  { %v1861_v47 = vpop.xlane.xlu1 %1860 }
 0xd84   :  { %v1863_v48 = vmul.f32 0.015625, %v1861_v47  ;;  %v1858_v49 = vpop.xlane.xlu0 %1857  ;;  %v2155_v47 = vadd.f32 %v5951_v40, %v5363_v29 }
 0xd85   :  { %v1862_v50 = vmul.f32 0.015625, %v1858_v49  ;;  %v2278_v49 = vld [vmem:[%s8028_s29] sm:$0xff] }
 0xd86   :  { %v1865_v51 = vadd.f32 1e-05, %v1863_v48  ;;  %v2164_v48 = vmul.f32 0.15, %v2150_v44  ;;  %vm2161_vm6 = vcmp.ge.f32.partialorder %v2155_v47, 0.0 }
 0xd87   :  { %v1864_v52 = vadd.f32 1e-05, %v1862_v50  ;;  %v2279_v50 = vld [vmem:[%s8028_s29 + $0x8] sm:$0xff] }
 0xd88   :  { %6618 = vrsqrt.f32 %v1865_v51  ;;  %v2280_v51 = vld [vmem:[%s8028_s29 + $0x10] sm:$0xff] }
 0xd89   :  { %6620 = vrsqrt.f32 %v1864_v52  ;;  %v2165_v52 = vmul.f32 0.15, %v2155_v47 }
 0xd92   :  { %v6619_v54 = vpop.eup %6618 }
 0xd93   :  { %v6621_v56 = vpop.eup %6620  ;;  %v1869_v57 = vmul.f32 %v6619_v54, %v1853_v35  ;;  %v2170_v35 = vld [vmem:[%s8026_s22] sm:$0xff]  ;;  %v6320_v54 = vpack.c.bf16 %v2279_v50, %v2278_v49 }
 0xd94   :  { %v1868_v59 = vmul.f32 %v6621_v56, %v1852_v27  ;;  %v2171_v27 = vld [vmem:[%s8026_s22 + $0x8] sm:$0xff]  ;;  %v2168_v56 = vsel %vm2160_vm5, %v2150_v44, %v2164_v48  ;;  %v5374_v44 = vld [vmem:[%s8033_s11] ss:$0 sm:$0xff]  ;;  %s6985_s22 = smov 112  }
 0xd95   :  { %v1877_v61 = vmul.f32 %v5343_v55, %v1869_v57  ;;  %v6312_v41 = vpack.c.bf16 %v2171_v27, %v2170_v35  ;;  %v5362_v35 = vld [vmem:[%s8031_s13] ss:$0 sm:$0xff] }
 0xd96   :  { %v1876_v62 = vmul.f32 %v5343_v55, %v1868_v59  ;;  %v2281_v55 = vld [vmem:[%s8028_s29 + $0x18] sm:$0xff]  ;;  %v2370_v59 = vld [vmem:[%s8029_s8] sm:$0xff]  ;;  %s8038_s29 = sld [smem:[#allocation48_spill]] }
 0xd97   :  { %v1885_v0 = vadd.f32 %v5344_v58, %v1877_v61  ;;  %6313 = vmatprep.subr.bf16.mxu1 %v6312_v41  ;;  %v6324_v57 = vpack.c.bf16 %v2281_v55, %v2280_v51  ;;  %v2371_v61 = vld [vmem:[%s8029_s8 + $0x8] sm:$0xff] }
 0xd98   :  { %v1884_v5 = vadd.f32 %v5344_v58, %v1876_v62  ;;  %6315 = vmatpush3.bf16.msra.mxu1 %v6312_v41  ;;  %v2169_v58 = vsel %vm2161_vm6, %v2155_v47, %v2165_v52  ;;  %v6328_v62 = vpack.c.bf16 %v2371_v61, %v2370_v59 }
 0xd99   :  { %v1889_v7 = vmul.f32 0.15, %v1885_v0  ;;  %vm1887_vm15 = vcmp.ge.f32.partialorder %v1885_v0, 0.0  ;;  %6317 = vmatprep.subr.bf16.mxu1 %v6316_v34 }
 0xd9a   :  { %vm1886_vm14 = vcmp.ge.f32.partialorder %v1884_v5, 0.0  ;;  %v1888_v8 = vmul.f32 0.15, %v1884_v5  ;;  %6329 = vmatprep.subr.bf16.mxu0 %v6328_v62 }
 0xd9b   :  { %v1891_v60 = vsel %vm1887_vm15, %v1885_v0, %v1889_v7  ;;  %v2372_v0 = vld [vmem:[%s8029_s8 + $0x10] sm:$0xff] }
 0xd9c   :  { %v1890_v9 = vsel %vm1886_vm14, %v1884_v5, %v1888_v8  ;;  %6319 = vmatpush3.bf16.msra.mxu1 %v6316_v34  ;;  %v2373_v5 = vld [vmem:[%s8029_s8 + $0x18] sm:$0xff]  ;;  %s5443_s8 = sld [smem:[#allocation10 + $0x2]] }
 0xd9d   :  { %5941 = vmatprep.mubr.msk.f32.mxu0 %vm996_vm13, %v1890_v9  ;;  %6321 = vmatprep.subr.bf16.mxu1 %v6320_v54  ;;  %v6332_v7 = vpack.c.bf16 %v2373_v5, %v2372_v0 }
 0xd9e   :  { %5942 = vmatmul.mubr.msk.f32.vlgmr.msra.gmra.mrb[18].mxu0 %vm996_vm13, %v1891_v60 }
 0xd9f   :  { %5961 = vmatmul.mubr.msk.f32.vlgmr.msra.gmra.mrb[28].mxu1 %vm423_vm2, %v2167_v46  ;;  %6331 = vmatpush3.bf16.msra.mxu0 %v6328_v62 }
 0xda0   :  { %5963 = vmatprep.mubr.msk.f32.mxu1 %vm423_vm2, %v2168_v56  ;;  %6323 = vmatpush3.bf16.msra.mxu1 %v6320_v54 }
 0xda1   :  { %6325 = vmatprep.subr.bf16.mxu1 %v6324_v57  ;;  %6333 = vmatprep.subr.bf16.mxu0 %v6332_v7 }
 0xda3   :  { %5964 = vmatmul.mubr.msk.f32.gmra.mrb[30].mxu1 %vm423_vm2, %v2169_v58  ;;  %6335 = vmatpush3.bf16.msra.mxu0 %v6332_v7 }
 0xda4   :  { %6327 = vmatpush3.bf16.msra.mxu1 %v6324_v57  ;;  %v7562_v57 = vld [vmem:[%s7018_s21 + $0x8] sm:$0xff]  }
 0xe71   :  { %v5943_v14 = vpop.f32.mrb[18].mxu0 }
 0xe72   :  { %v1987_v1 = vadd.f32 %v5943_v14, %v5354_v6  ;;  %v1981_v16 = vpop.f32.mrb[19].mxu0  ;;  %v5962_v32 = vpop.f32.mrb[28].mxu1 }
 0xe73   :  { %v1982_v3 = vadd.f32 %v5354_v6, %v1981_v16  ;;  %v5359_v16 = vld [vmem:[%s8023_s0 + $0x1] ss:$0 sm:$0xff]  ;;  %v2259_v34 = vpop.f32.mrb[29].mxu1 }
 0xe74   :  { %v1997_v17 = vsel %vm423_vm2, %v1987_v1, 0.0 }
 0xe75   :  { %1998 = vadd.xlane.f32.xlu1 %v1997_v17  ;;  %v1994_v4 = vsel %vm423_vm2, %v1982_v3, 0.0 }
 0xe76   :  { %1995 = vadd.xlane.f32.xlu0 %v1994_v4  ;;  %v5965_v37 = vpop.f32.mrb[30].mxu1 }
 0xe77   :  { %v2269_v42 = vpop.f32.mrb[31].mxu1 }
 0xf02   :  { %v1999_v19 = vpop.xlane.xlu1 %1998 }
 0xf03   :  { %v2001_v21 = vmul.f32 0.03125, %v1999_v19  ;;  %v1996_v22 = vpop.xlane.xlu0 %1995  ;;  %v5360_v19 = vld [vmem:[%s8024_s9 + $0x1] ss:$0 sm:$0xff] }
 0xf04   :  { %v2000_v38 = vmul.f32 0.03125, %v1996_v22 }
 0xf05   :  { %v7498_v39 = vsub.f32 %v1987_v1, %v2001_v21 }
 0xf06   :  { %v7500_v23 = vsub.f32 %v1982_v3, %v2000_v38 }
 0xf07   :  { %v2005_v24 = vmul.f32 %v7498_v39, %v7498_v39 }
 0xf08   :  { %v2004_v20 = vmul.f32 %v7500_v23, %v7500_v23 }
 0xf09   :  { %v2009_v25 = vsel %vm423_vm2, %v2005_v24, 0.0 }
 0xf0a   :  { %2010 = vadd.xlane.f32.xlu1 %v2009_v25  ;;  %v2006_v26 = vsel %vm423_vm2, %v2004_v20, 0.0  ;;  %v5361_v20 = vld [vmem:[%s8030_s26] ss:$0 sm:$0xff]  ;;  %s3697_s26 = sadd.f32 1.0, %s5443_s8 }
 0xf0b   :  { %2007 = vadd.xlane.f32.xlu0 %v2006_v26 }
 0xf97   :  { %v2011_v8 = vpop.xlane.xlu1 %2010 }
 0xf98   :  { %v2013_v9 = vmul.f32 0.03125, %v2011_v8  ;;  %v2008_v60 = vpop.xlane.xlu0 %2007 }
 0xf99   :  { %v2012_v10 = vmul.f32 0.03125, %v2008_v60 }
 0xf9a   :  { %v2015_v6 = vadd.f32 1e-05, %v2013_v9 }
 0xf9b   :  { %v2014_v14 = vadd.f32 1e-05, %v2012_v10 }
 0xf9c   :  { %6622 = vrsqrt.f32 %v2015_v6 }
 0xf9d   :  { %6624 = vrsqrt.f32 %v2014_v14 }
 0xfa6   :  { %v6623_v1 = vpop.eup %6622 }
 0xfa7   :  { %v6625_v3 = vpop.eup %6624  ;;  %v2019_v17 = vmul.f32 %v6623_v1, %v7498_v39 }
 0xfa8   :  { %v2018_v4 = vmul.f32 %v6625_v3, %v7500_v23 }
 0xfa9   :  { %v2027_v21 = vmul.f32 %v5359_v16, %v2019_v17 }
 0xfaa   :  { %v2026_v22 = vmul.f32 %v5359_v16, %v2018_v4 }
 0xfab   :  { %v2035_v38 = vadd.f32 %v5360_v19, %v2027_v21 }
 0xfac   :  { %v2034_v24 = vadd.f32 %v5360_v19, %v2026_v22 }
 0xfad   :  { %v2037_v25 = vadd.f32 %v2035_v38, %v7434_v15  ;;  %v7542_v15 = vld [vmem:[%s7018_s21] sm:$0xff]  }
 0xfae   :  { %v2036_v26 = vadd.f32 %v2034_v24, %v7437_v2  ;;  %v5369_v2 = vld [vmem:[%s8032_s28] ss:$0 sm:$0xff] }
 0xfaf   :  { %v2046_v27 = vmul.f32 %v5361_v20, %v2037_v25  ;;  %v2265_v33 = vadd.f32 %v5962_v32, %v5369_v2  ;;  %v2260_v36 = vadd.f32 %v5369_v2, %v2259_v34  ;;  %v2275_v40 = vadd.f32 %v5965_v37, %v5369_v2 }
 0xfb0   :  { %v2045_v41 = vmul.f32 %v5361_v20, %v2036_v26  ;;  %v2270_v43 = vadd.f32 %v5369_v2, %v2269_v42  ;;  %v6720_v26 = vld [vmem:[%s8017_s12] sm:$0xff]   ;;  %s8036_s12 = sld [smem:[#allocation46_spill]] }
 0xfb1   :  { %v2055_v28 = vadd.f32 %v5362_v35, %v2046_v27  ;;  %5985 = vmatprep.mubr.msk.f32.mxu0 %vm423_vm2, %v2260_v36  ;;  %v2577_v27 = vunpack.c.l.bf16 %v6720_v26 }
 0xfb2   :  { %v2054_v29 = vadd.f32 %v5362_v35, %v2045_v41  ;;  %5986 = vmatmul.mubr.msk.f32.vlgmr.msra.gmra.mrb[24].mxu0 %vm423_vm2, %v2265_v33  ;;  %v2578_v35 = vunpack.c.h.bf16 %v6720_v26 }
 0xfb3   :  { %v2059_v39 = vmul.f32 0.15, %v2055_v28  ;;  %vm2057_vm9 = vcmp.ge.f32.partialorder %v2055_v28, 0.0  ;;  %5988 = vmatprep.mubr.msk.f32.mxu0 %vm423_vm2, %v2270_v43 }
 0xfb4   :  { %vm2056_vm8 = vcmp.ge.f32.partialorder %v2054_v29, 0.0  ;;  %v2058_v23 = vmul.f32 0.15, %v2054_v29  ;;  %v5386_v41 = vadd.f32 -1.0, %v2578_v35 }
 0xfb5   :  { %v7537_v31 = vsel %vm2057_vm9, %v2055_v28, %v2059_v39  ;;  %v5385_v28 = vadd.f32 -1.0, %v2577_v27 }
 0xfb6   :  { %v7533_v30 = vsel %vm2056_vm8, %v2054_v29, %v2058_v23  ;;  %5989 = vmatmul.mubr.msk.f32.gmra.mrb[26].mxu0 %vm423_vm2, %v2275_v40  ;;  %v2582_v29 = vmul.f32 1e+30, %v5386_v41 }
 0xfb7   :  { %5974 = vmatprep.mubr.msk.f32.mxu1 %vm423_vm2, %v7533_v30  ;;  %5999 = vmatprep.mubr.msk.bf16.mxu0 %vm748_vm7, %v7542_v15  ;;  %v2581_v23 = vmul.f32 1e+30, %v5385_v28 }
 0xfb8   :  { %5975 = vmatmul.mubr.msk.f32.vlgmr.msra.gmra.mrb[32].mxu1 %vm423_vm2, %v7537_v31 }
 0xfb9   :  { %5993 = vmatprep.mubr.msk.bf16.mxu1 %vm748_vm7, %v7542_v15 }
0x1085   :  { %v5987_v50 = vpop.f32.mrb[24].mxu0 }
0x1086   :  { %v2452_v51 = vpop.f32.mrb[25].mxu0 }
0x1089   :  { %v5990_v52 = vpop.f32.mrb[26].mxu0 }
0x108a   :  { %v2462_v54 = vpop.f32.mrb[27].mxu0 }
0x108b   :  { %v5976_v45 = vpop.f32.mrb[32].mxu1 }
0x108c   :  { %v7554_v46 = vadd.f32 %v5976_v45, %v5374_v44  ;;  %v2361_v47 = vpop.f32.mrb[33].mxu1 }
0x108d   :  { %v7556_v48 = vadd.f32 %v5374_v44, %v2361_v47 }
0x108f   :  { %v2471_v49 = vpack.c.bf16 %v7554_v46, %v7556_v48 }
0x1091   :  { %2525 = vrot.lane.b32.xlu1 %v2471_v49, %s6983_s15  ;;  %2473 = vrot.lane.b32.xlu0 %v2471_v49, %s6984_s16 }
0x1103   :  { %v2526_v55 = vpop.permute.xlu1 %2525  ;;  %v2474_v56 = vpop.permute.xlu0 %2473 }
0x1104   :  { %5991 = vmatprep.subr.bf16.mxu1 %v2474_v56  ;;  %5997 = vmatprep.subr.bf16.mxu0 %v2526_v55 }
0x1105   :  { %5992 = vmatpush3.bf16.msra.mxu1 %v2474_v56  ;;  %5998 = vmatpush3.bf16.msra.mxu0 %v2526_v55 }
0x1108   :  { %5994 = vmatmul.mubr.msk.bf16.vlgmr.msra.gmra.mrb[36].mxu1 %vm748_vm7, %v7562_v57  ;;  %6000 = vmatmul.mubr.msk.bf16.vlgmr.msra.gmra.mrb[28].mxu0 %vm748_vm7, %v7562_v57 }
0x1109   :  { %6011 = vmatprep.mubr.msk.f32.mxu1 %vm748_vm7, %v7556_v48 }
0x11db   :  { %v5995_v58 = vpop.f32.mrb[36].mxu1  ;;  %v6001_v59 = vpop.f32.mrb[28].mxu0 }
0x11dc   :  { %v2519_v61 = vadd.f32 %v5995_v58, %v2462_v54  ;;  %v7570_v62 = vadd.f32 %v6001_v59, %v2462_v54  ;;  %v2510_v0 = vpop.f32.mrb[37].mxu1  ;;  %v2562_v5 = vpop.f32.mrb[29].mxu0 }
0x11dd   :  { %v2511_v7 = vadd.f32 %v2510_v0, %v2452_v51  ;;  %v7572_v8 = vadd.f32 %v2562_v5, %v2452_v51  ;;  %v5996_v9 = vpop.f32.mrb[38].mxu1  ;;  %v6002_v60 = vpop.f32.mrb[30].mxu0 }
0x11de   :  { %v2522_v10 = vadd.f32 %v5996_v9, %v5990_v52  ;;  %v7574_v6 = vadd.f32 %v6002_v60, %v5990_v52  ;;  %v2513_v14 = vpop.f32.mrb[39].mxu1  ;;  %v2565_v1 = vpop.f32.mrb[31].mxu0 }
0x11df   :  { %v2514_v16 = vadd.f32 %v5987_v50, %v2513_v14  ;;  %v7576_v3 = vadd.f32 %v5987_v50, %v2565_v1 }
0x11e0   :  { %v6538_v17 = vpack.i.bf16 %v2522_v10, %v2519_v61  ;;  %v6342_v4 = vpack.c.bf16 %v2522_v10, %v2519_v61  ;;  %v6548_v19 = vpack.i.bf16 %v7574_v6, %v7570_v62  ;;  %v6352_v21 = vpack.c.bf16 %v7574_v6, %v7570_v62 }
0x11e1   :  { %v6533_v38 = vpack.i.bf16 %v2514_v16, %v2511_v7  ;;  %v6336_v24 = vpack.c.bf16 %v2514_v16, %v2511_v7  ;;  %v6543_v20 = vpack.i.bf16 %v7576_v3, %v7572_v8  ;;  %v6348_v25 = vpack.c.bf16 %v7576_v3, %v7572_v8  ;;  %v5407_v8 = vld [vmem:[%s7043_s14 + $0x10] sm:$0x7f] }
0x11e3   :  { %6338 = vmatprep.subr.msk.bf16.mxu1 %vm7584_vm10, %v6336_v24  ;;  %6349 = vmatprep.subr.bf16.mxu0 %v6348_v25 }
0x11e4   :  { %6341 = vmatpush3.bf16.xpose.msk.msra.mxu1 %vm7584_vm10, %v6336_v24  ;;  %6351 = vmatpush3.bf16.msra.mxu0 %v6348_v25 }
0x11e5   :  { %6344 = vmatprep.subr.msk.bf16.mxu1 %vm7584_vm10, %v6342_v4  ;;  %6353 = vmatprep.subr.bf16.mxu0 %v6352_v21 }
0x11e8   :  { %6355 = vmatpush3.bf16.msra.mxu0 %v6352_v21 }
0x11ec   :  { %6347 = vmatpush3.bf16.xpose.msk.msra.mxu1 %vm7584_vm10, %v6342_v4 }
0x11f3   :  { %6012 = vmatmul.mubr.msk.f32.vlgmr.msra.gmra.mrb[34].mxu1 %vm748_vm7, %v7554_v46 }
0x12c6   :  { %v6013_v39 = vpop.f32.mrb[34].mxu1 }
0x12c7   :  { %v2677_v2 = vmul.f32 0.25, %v6013_v39  ;;  %v2667_v32 = vpop.f32.mrb[35].mxu1 }
0x12c8   :  { %v2676_v33 = vmul.f32 0.25, %v2667_v32 }
0x12c9   :  { %v2679_v34 = vadd.f32 %v2677_v2, %v2582_v29 }
0x12ca   :  { %v2678_v36 = vadd.f32 %v2676_v33, %v2581_v23 }
0x12cb   :  { %v2683_v37 = vsel %vm423_vm2, %v2679_v34, -inf }
0x12cc   :  { %2684 = vmax.xlane.f32.xlu0 %v2683_v37  ;;  %v2680_v40 = vsel %vm423_vm2, %v2678_v36, -inf }
0x12cd   :  { %2681 = vmax.xlane.f32.xlu1 %v2680_v40  ;;  %v5409_v40 = vld [vmem:[%s7048_s19 + $0x2] ss:$0 sm:$0xff] }
0x12de   :  { %6539 = vrot.lane.b32.xlu1 %v6538_v17, %s6985_s22 }
0x12e2   :  { %6534 = vrot.lane.b32.xlu0 %v6533_v38, %s6985_s22  ;;  %2789 = vrot.lane.b32.xlu1 %v7556_v48, %s6985_s22 }
0x12e6   :  { %2791 = vrot.lane.b32.xlu0 %v7554_v46, %s6985_s22 }
0x1359   :  { %v2685_v42 = vpop.xlane.xlu0 %2684 }
0x135a   :  { %v2687_v43 = vmax.f32 %v2685_v42, -1e+20  ;;  %v2682_v44 = vpop.xlane.xlu1 %2681 }
0x135b   :  { %v2686_v45 = vmax.f32 %v2682_v44, -1e+20 }
0x135c   :  { %v2689_v47 = vsub.f32 %v2679_v34, %v2687_v43 }
0x135d   :  { %v2688_v49 = vsub.f32 %v2678_v36, %v2686_v45  ;;  %v6535_v50 = vpop.permute.xlu0 %6534 }
0x135e   :  { %v2692_v51 = vmul.f32 1.442695, %v2689_v47  ;;  %v6537_v52 = vunpack.i.h.bf16 %v6535_v50  ;;  %v6536_v54 = vunpack.i.l.bf16 %v6535_v50  ;;  %v6540_v58 = vpop.permute.xlu1 %6539 }
0x135f   :  { %v2690_v55 = vmul.f32 1.442695, %v2688_v49  ;;  %v6542_v59 = vunpack.i.h.bf16 %v6540_v58  ;;  %v6541_v61 = vunpack.i.l.bf16 %v6540_v58 }
0x1360   :  { %v6356_v56 = vpack.c.bf16 %v6537_v52, %v6536_v54 }
0x1361   :  { %6626 = vpow2.f32 %v2690_v55  ;;  %v6362_v7 = vpack.c.bf16 %v6542_v59, %v6541_v61  ;;  %v2792_v60 = vpop.permute.xlu0 %2791  ;;  %v7669_v61 = vld [vmem:[%s8036_s12] sm:$0x7] }
0x1362   :  { %6628 = vpow2.f32 %v2692_v51  ;;  %6358 = vmatprep.subr.msk.bf16.mxu0 %vm7584_vm10, %v6356_v56  ;;  %v2790_v9 = vpop.permute.xlu1 %2789 }
0x136b   :  { %v7613_v0 = vpop.eup %6626 }
0x136c   :  { %v7615_v5 = vpop.eup %6628  ;;  %6022 = vmatprep.mubr.msk.f32.mxu0 %vm423_vm2, %v7613_v0  ;;  %v2694_v55 = vsel %vm423_vm2, %v7613_v0, 0.0 }
0x136d   :  { %6023 = vmatmul.mubr.msk.f32.vlgmr.msra.gmra.mrb[32].mxu0 %vm423_vm2, %v7615_v5 }
0x136e   :  { %6361 = vmatpush3.bf16.xpose.msk.msra.mxu0 %vm7584_vm10, %v6356_v56  ;;  %6033 = vmatprep.mubr.msk.f32.mxu0 %vm748_vm7, %v2790_v9  ;;  %v3029_v56 = vlaneseq  ;;  %v2697_v9 = vsel %vm423_vm2, %v7615_v5, 0.0 }
0x136f   :  { %6364 = vmatprep.subr.msk.bf16.mxu0 %vm7584_vm10, %v6362_v7 }
0x1370   :  { %v7665_v58 = vshrl.u32 %v3029_v56, 7 }
0x1372   :  { %v3037_v59 = vsub.s32 1, %v7665_v58 }
0x1376   :  { %6367 = vmatpush3.bf16.xpose.msk.msra.mxu0 %vm7584_vm10, %v6362_v7  ;;  %v3038_v7 = vrot.slane %v7669_v61, %v3037_v59 }
0x137d   :  { %6034 = vmatmul.mubr.msk.f32.vlgmr.msra.gmra.mrb[34].mxu0 %vm748_vm7, %v2792_v60 }
0x1440   :  { %v7629_v10 = vpop.f32.mrb[32].mxu0 }
0x1441   :  { %v7631_v14 = vpop.f32.mrb[33].mxu0 }
0x1450   :  { %v6035_v1 = vpop.f32.mrb[34].mxu0 }
0x1451   :  { %v2889_v16 = vmul.f32 0.25, %v6035_v1  ;;  %v2879_v17 = vpop.f32.mrb[35].mxu0 }
0x1452   :  { %v2888_v4 = vmul.f32 0.25, %v2879_v17 }
0x1453   :  { %v2891_v21 = vadd.f32 %v2889_v16, %v2582_v29 }
0x1454   :  { %v2890_v38 = vadd.f32 %v2888_v4, %v2581_v23 }
0x1455   :  { %v2895_v24 = vsel %vm423_vm2, %v2891_v21, -inf }
0x1456   :  { %2896 = vmax.xlane.f32.xlu0 %v2895_v24  ;;  %v2892_v25 = vsel %vm423_vm2, %v2890_v38, -inf }
0x1457   :  { %2893 = vmax.xlane.f32.xlu1 %v2892_v25 }
0x1468   :  { %6549 = vrot.lane.b32.xlu1 %v6548_v19, %s6985_s22 }
0x146c   :  { %6544 = vrot.lane.b32.xlu0 %v6543_v20, %s6985_s22 }
0x14e3   :  { %v2897_v22 = vpop.xlane.xlu0 %2896 }
0x14e4   :  { %v2899_v26 = vmax.f32 %v2897_v22, -1e+20  ;;  %v2894_v35 = vpop.xlane.xlu1 %2893 }
0x14e5   :  { %v2898_v27 = vmax.f32 %v2894_v35, -1e+20 }
0x14e6   :  { %v2901_v41 = vsub.f32 %v2891_v21, %v2899_v26 }
0x14e7   :  { %v2900_v28 = vsub.f32 %v2890_v38, %v2898_v27  ;;  %v6545_v29 = vpop.permute.xlu0 %6544 }
0x14e8   :  { %v2904_v39 = vmul.f32 1.442695, %v2901_v41  ;;  %v6547_v23 = vunpack.i.h.bf16 %v6545_v29  ;;  %v6546_v2 = vunpack.i.l.bf16 %v6545_v29  ;;  %v6550_v32 = vpop.permute.xlu1 %6549 }
0x14e9   :  { %v2902_v33 = vmul.f32 1.442695, %v2900_v28  ;;  %v6552_v62 = vunpack.i.h.bf16 %v6550_v32  ;;  %v6551_v6 = vunpack.i.l.bf16 %v6550_v32 }
0x14ea   :  { %v6368_v19 = vpack.c.bf16 %v6547_v23, %v6546_v2 }
0x14eb   :  { %6630 = vpow2.f32 %v2902_v33  ;;  %v6372_v34 = vpack.c.bf16 %v6552_v62, %v6551_v6 }
0x14ec   :  { %6632 = vpow2.f32 %v2904_v39  ;;  %6369 = vmatprep.subr.bf16.mxu1 %v6368_v19 }
0x14ed   :  { %6371 = vmatpush3.bf16.msra.mxu1 %v6368_v19 }
0x14ee   :  { %6373 = vmatprep.subr.bf16.mxu1 %v6372_v34 }
0x14f1   :  { %6375 = vmatpush3.bf16.msra.mxu1 %v6372_v34 }
0x14f2   :  { %6047 = vmatprep.subr.msk.mxu1 %vm332_vm0, %v5407_v8 }
0x14f5   :  { %v6631_v3 = vpop.eup %6630 }
0x14f6   :  { %v6633_v20 = vpop.eup %6632  ;;  %6044 = vmatprep.mubr.msk.f32.mxu1 %vm423_vm2, %v6631_v3  ;;  %v2906_v52 = vsel %vm423_vm2, %v6631_v3, 0.0 }
0x14f7   :  { %6045 = vmatmul.mubr.msk.f32.vlgmr.msra.gmra.mrb[40].mxu1 %vm423_vm2, %v6633_v20  ;;  %v2909_v54 = vsel %vm423_vm2, %v6633_v20, 0.0 }
0x14f8   :  { %6048 = vmatpush3.msk.msra.mxu1 %vm332_vm0, %v5407_v8  ;;  %6049 = vmatprep.mubr.msk.f32.mxu1 %vm319_vm1, %v7456_v18 }
0x14fb   :  { %6050 = vmatmul.mubr.msk.f32.vlgmr.msra.gmra.mrb[42].mxu1 %vm319_vm1, %v7481_v11 }
0x14fc   :  { %6052 = vmatprep.mubr.msk.f32.mxu1 %vm319_vm1, %v7486_v12 }
0x14ff   :  { %6053 = vmatmul.mubr.msk.f32.gmra.mrb[44].mxu1 %vm319_vm1, %v7491_v13 }
0x15ca   :  { %v6046_v36 = vpop.f32.mrb[40].mxu1 }
0x15cb   :  { %v3002_v37 = vpop.f32.mrb[41].mxu1 }
0x15ce   :  { %v6051_v42 = vpop.f32.mrb[42].mxu1 }
0x15cf   :  { %v3226_v43 = vadd.f32 %v6051_v42, %v5409_v40  ;;  %v3220_v44 = vpop.f32.mrb[43].mxu1 }
0x15d0   :  { %v3221_v45 = vadd.f32 %v5409_v40, %v3220_v44 }
0x15d1   :  { %v3246_v47 = vsel %vm423_vm2, %v3226_v43, 0.0 }
0x15d2   :  { %3247 = vadd.xlane.f32.xlu0 %v3246_v47  ;;  %v6054_v18 = vpop.f32.mrb[44].mxu1  ;;  %v3243_v49 = vsel %vm423_vm2, %v3221_v45, 0.0  ;;  %v5417_v47 = vld [vmem:[%s7063_s6 + $0x40] sm:$0xff] }
0x15d3   :  { %v3236_v11 = vadd.f32 %v6054_v18, %v5409_v40  ;;  %v3230_v50 = vpop.f32.mrb[45].mxu1  ;;  %3244 = vadd.xlane.f32.xlu1 %v3243_v49  ;;  %v5418_v18 = vld [vmem:[%s7063_s6 + $0x48] sm:$0xff] }
0x15d4   :  { %v3231_v12 = vadd.f32 %v5409_v40, %v3230_v50  ;;  %v6376_v49 = vpack.c.bf16 %v5418_v18, %v5417_v47  ;;  %v5419_v50 = vld [vmem:[%s7063_s6 + $0x50] sm:$0xff] }
0x15d5   :  { %v3252_v13 = vsel %vm423_vm2, %v3236_v11, 0.0 }
0x15d6   :  { %v3249_v51 = vsel %vm423_vm2, %v3231_v12, 0.0  ;;  %6377 = vmatprep.subr.bf16.mxu1 %v6376_v49 }
0x15d7   :  { %3250 = vadd.xlane.f32.xlu0 %v3249_v51  ;;  %3253 = vadd.xlane.f32.xlu1 %v3252_v13 }
0x15d8   :  { %6379 = vmatpush3.bf16.msra.mxu1 %v6376_v49 }
0x15db   :  { %2907 = vadd.xlane.f32.xlu0 %v2906_v52  ;;  %2910 = vadd.xlane.f32.xlu1 %v2909_v54 }
0x15df   :  { %2695 = vadd.xlane.f32.xlu1 %v2694_v55 }
0x15f1   :  { %3040 = vrot.lane.b32.xlu0 %v3038_v7, %s6984_s16 }
0x1610   :  { %2698 = vadd.xlane.f32.xlu0 %v2697_v9 }
0x165f   :  { %v3248_v60 = vpop.xlane.xlu0 %3247 }
0x1660   :  { %v3245_v1 = vpop.xlane.xlu1 %3244  ;;  %v3256_v39 = vmul.f32 0.03125, %v3248_v60 }
0x1661   :  { %v3255_v2 = vmul.f32 0.03125, %v3245_v1 }
0x1662   :  { %v3260_v23 = vsub.f32 %v3226_v43, %v3256_v39 }
0x1663   :  { %v7681_v32 = vsub.f32 %v3221_v45, %v3255_v2 }
0x1664   :  { %v3251_v16 = vpop.xlane.xlu0 %3250  ;;  %v3254_v0 = vpop.xlane.xlu1 %3253  ;;  %v3264_v62 = vmul.f32 %v3260_v23, %v3260_v23 }
0x1665   :  { %v3258_v33 = vmul.f32 0.03125, %v3254_v0  ;;  %v3257_v34 = vmul.f32 0.03125, %v3251_v16 }
0x1666   :  { %v3270_v3 = vsel %vm423_vm2, %v3264_v62, 0.0 }
0x1667   :  { %v7683_v8 = vsub.f32 %v3236_v11, %v3258_v33  ;;  %v7688_v20 = vsub.f32 %v3231_v12, %v3257_v34 }
0x1668   :  { %v2908_v17 = vpop.xlane.xlu0 %2907  ;;  %v2911_v4 = vpop.xlane.xlu1 %2910 }
0x1669   :  { %v2912_v21 = vadd.f32 1e-16, %v2908_v17  ;;  %v2913_v38 = vadd.f32 1e-16, %v2911_v4  ;;  %v3265_v42 = vmul.f32 %v7688_v20, %v7688_v20  ;;  %v3031_v17 = vsub.s32 0, %v7665_v58 }
0x166b   :  { %6634 = vrcp.f32 %v2912_v21  ;;  %v3273_v44 = vsel %vm423_vm2, %v3265_v42, 0.0 }
0x166c   :  { %v3041_v24 = vpop.permute.xlu0 %3040  ;;  %v2696_v25 = vpop.xlane.xlu1 %2695  ;;  %6636 = vrcp.f32 %v2913_v38  ;;  %v5415_v38 = vld [vmem:[#allocation11 + $0x2] ss:$0 sm:$0xff] }
0x166d   :  { %v3044_v22 = vmul.f32 %v3041_v24, %v7554_v46  ;;  %v2700_v26 = vadd.f32 1e-16, %v2696_v25  ;;  %v3043_v11 = vmul.f32 %v3041_v24, %v7556_v48 }
0x166f   :  { %6638 = vrcp.f32 %v2700_v26  ;;  %3049 = vrot.lane.b32.xlu0 %v3044_v22, %s6986_s23  ;;  %v3065_v26 = vsub.s32 2, %v7665_v58 }
0x1675   :  { %v6635_v5 = vpop.eup %6634 }
0x1676   :  { %v3013_v35 = vmul.f32 %v6635_v5, %v3002_v37  ;;  %v6637_v27 = vpop.eup %6636  ;;  %v3266_v37 = vmul.f32 %v7683_v8, %v7683_v8  ;;  %v3032_v5 = vrot.slane %v7669_v61, %v3031_v17 }
0x1677   :  { %v3014_v28 = vmul.f32 %v6637_v27, %v6046_v36 }
0x1678   :  { %3017 = vrot.lane.b32.xlu1 %v3013_v35, %s6973_s18  ;;  %v3276_v40 = vsel %vm423_vm2, %v3266_v37, 0.0  ;;  %v5416_v35 = vld [vmem:[#allocation13 + $0x2] ss:$0 sm:$0xff] }
0x1679   :  { %v6639_v41 = vpop.eup %6638 }
0x167a   :  { %v2785_v29 = vmul.f32 %v6639_v41, %v7631_v14  ;;  %v3263_v14 = vmul.f32 %v7681_v32, %v7681_v32 }
0x167c   :  { %3019 = vrot.lane.b32.xlu1 %v3014_v28, %s6973_s18  ;;  %2787 = vst.msk [vmem:[#allocation2] sm:$0xff] %vm748_vm7, %v2785_v29  ;;  %v3267_v36 = vsel %vm423_vm2, %v3263_v14, 0.0  ;;  %s8037_s18 = sld [smem:[#allocation47_spill]] }
0x169d   :  { %v2699_v6 = vpop.xlane.xlu0 %2698 }
0x169e   :  { %v2701_v19 = vadd.f32 1e-16, %v2699_v6 }
0x16a0   :  { %6640 = vrcp.f32 %v2701_v19  ;;  %3271 = vadd.xlane.f32.xlu1 %v3270_v3 }
0x16a4   :  { %3268 = vadd.xlane.f32.xlu1 %v3267_v36 }
0x16a8   :  { %3277 = vadd.xlane.f32.xlu1 %v3276_v40 }
0x16aa   :  { %v6641_v43 = vpop.eup %6640 }
0x16ab   :  { %v2786_v45 = vmul.f32 %v6641_v43, %v7629_v10  ;;  %v5420_v10 = vld [vmem:[%s7063_s6 + $0x58] sm:$0xff] }
0x16ac   :  { %3274 = vadd.xlane.f32.xlu1 %v3273_v44  ;;  %v6380_v12 = vpack.c.bf16 %v5420_v10, %v5419_v50 }
0x16ad   :  { %2788 = vst.msk [vmem:[#allocation2 + $0x8] sm:$0xff] %vm748_vm7, %v2786_v45 }
0x16ae   :  { %6381 = vmatprep.subr.bf16.mxu1 %v6380_v12 }
0x16af   :  { %6383 = vmatpush3.bf16.msra.mxu1 %v6380_v12 }
0x16bd   :  { %3055 = vrot.lane.b32.xlu1 %v7556_v48, %s6986_s23 }
0x16c1   :  { %3057 = vrot.lane.b32.xlu1 %v7554_v46, %s6986_s23 }
0x16c5   :  { %3047 = vrot.lane.b32.xlu1 %v3043_v11, %s6986_s23 }
0x16e1   :  { %v3050_v58 = vpop.permute.xlu0 %3049 }
0x16ea   :  { %v3018_v13 = vpop.permute.xlu1 %3017 }
0x16eb   :  { %3024 = vst.msk [vmem:[#allocation2] sm:$0xff] %vm3023_vm11, %v3018_v13 }
0x16ee   :  { %v3020_v51 = vpop.permute.xlu1 %3019 }
0x16ef   :  { %3025 = vst.msk [vmem:[#allocation2 + $0x8] sm:$0xff] %vm3023_vm11, %v3020_v51 }
0x16f2   :  { %v7715_v29 = vld [vmem:[#allocation2] sm:$0xff] }
0x16f3   :  { %v3033_v14 = vmul.f32 %v3032_v5, %v7715_v29 }
0x16f6   :  { %v7710_v22 = vld [vmem:[#allocation2 + $0x8] sm:$0xff] }
0x16f7   :  { %v3034_v28 = vmul.f32 %v3032_v5, %v7710_v22 }
0x16f9   :  { %v3054_v36 = vadd.f32 %v3050_v58, %v3034_v28 }
0x172d   :  { %v3272_v52 = vpop.xlane.xlu1 %3271 }
0x172e   :  { %v3280_v54 = vmul.f32 0.03125, %v3272_v52 }
0x1730   :  { %v3284_v55 = vadd.f32 1e-05, %v3280_v54 }
0x1731   :  { %v3269_v56 = vpop.xlane.xlu1 %3268 }
0x1732   :  { %6642 = vrsqrt.f32 %v3284_v55  ;;  %v3279_v59 = vmul.f32 0.03125, %v3269_v56 }
0x1734   :  { %v3283_v7 = vadd.f32 1e-05, %v3279_v59  ;;  %v5405_v59 = vld [vmem:[%s8037_s18] ss:$0 sm:$0xff] }
0x1735   :  { %v3278_v9 = vpop.xlane.xlu1 %3277 }
0x1736   :  { %6644 = vrsqrt.f32 %v3283_v7  ;;  %v3282_v60 = vmul.f32 0.03125, %v3278_v9  ;;  %v5426_v7 = vld [vmem:[%s7073_s20 + $0x40] sm:$0xff]  ;;  %v5427_v9 = vld [vmem:[%s7073_s20 + $0x48] sm:$0xff] }
0x1738   :  { %v3286_v1 = vadd.f32 1e-05, %v3282_v60  ;;  %v6384_v60 = vpack.c.bf16 %v5427_v9, %v5426_v7 }
0x1739   :  { %v3275_v16 = vpop.xlane.xlu1 %3274 }
0x173a   :  { %6646 = vrsqrt.f32 %v3286_v1  ;;  %v3281_v0 = vmul.f32 0.03125, %v3275_v16  ;;  %6385 = vmatprep.subr.bf16.mxu0 %v6384_v60  ;;  %v5428_v1 = vld [vmem:[%s7073_s20 + $0x50] sm:$0xff]  ;;  %v5429_v16 = vld [vmem:[%s7073_s20 + $0x58] sm:$0xff] }
0x173b   :  { %6387 = vmatpush3.bf16.msra.mxu0 %v6384_v60 }
0x173c   :  { %v6643_v4 = vpop.eup %6642  ;;  %v3285_v21 = vadd.f32 1e-05, %v3281_v0  ;;  %v6388_v0 = vpack.c.bf16 %v5429_v16, %v5428_v1  ;;  %v5431_v1 = vld [vmem:[%s8016_s30 + $0x2] ss:$0 sm:$0xff] }
0x173d   :  { %v3292_v24 = vmul.f32 %v6643_v4, %v3260_v23  ;;  %v3056_v25 = vpop.permute.xlu1 %3055  ;;  %v3066_v23 = vrot.slane %v7669_v61, %v3065_v26 }
0x173e   :  { %6648 = vrsqrt.f32 %v3285_v21  ;;  %v3061_v33 = vsub.f32 %v7715_v29, %v3056_v25  ;;  %6389 = vmatprep.subr.bf16.mxu0 %v6388_v0 }
0x173f   :  { %v3302_v27 = vmul.f32 %v5415_v38, %v3292_v24  ;;  %6391 = vmatpush3.bf16.msra.mxu0 %v6388_v0 }
0x1740   :  { %v6645_v41 = vpop.eup %6644  ;;  %v3067_v43 = vmul.f32 %v3066_v23, %v3061_v33  ;;  %6089 = vmatprep.subr.bf16.mxu0 %v6981_v63 }
0x1741   :  { %v3058_v39 = vpop.permute.xlu1 %3057  ;;  %v3291_v2 = vmul.f32 %v6645_v41, %v7681_v32  ;;  %v3312_v6 = vadd.f32 %v5416_v35, %v3302_v27 }
0x1742   :  { %v3062_v62 = vsub.f32 %v7710_v22, %v3058_v39 }
0x1743   :  { %v3301_v19 = vmul.f32 %v5415_v38, %v3291_v2  ;;  %v3320_v61 = vmul.f32 0.15, %v3312_v6  ;;  %vm3316_vm15 = vcmp.ge.f32.partialorder %v3312_v6, 0.0  ;;  %v5406_v2 = vld [vmem:[%s8038_s29] ss:$0 sm:$0xff] }
0x1744   :  { %v6647_v34 = vpop.eup %6646  ;;  %v3068_v3 = vmul.f32 %v3066_v23, %v3062_v62  ;;  %v5421_v23 = vld [vmem:[#allocation14 + $0x2] ss:$0 sm:$0xff] }
0x1745   :  { %v3048_v37 = vpop.permute.xlu1 %3047  ;;  %v3311_v40 = vadd.f32 %v5416_v35, %v3301_v19  ;;  %v3294_v42 = vmul.f32 %v6647_v34, %v7683_v8  ;;  %v3324_v12 = vsel %vm3316_vm15, %v3312_v6, %v3320_v61 }
0x1746   :  { %v3053_v32 = vadd.f32 %v3048_v37, %v3033_v14  ;;  %v3070_v44 = vadd.f32 %v3068_v3, %v3054_v36 }
0x1747   :  { %vm3315_vm14 = vcmp.ge.f32.partialorder %v3311_v40, 0.0  ;;  %v3319_v45 = vmul.f32 0.15, %v3311_v40  ;;  %v3304_v47 = vmul.f32 %v5415_v38, %v3294_v42 }
0x1748   :  { %v6649_v18 = vpop.eup %6648  ;;  %v3074_v49 = vsel %vm423_vm2, %v3070_v44, 0.0  ;;  %v3069_v11 = vadd.f32 %v3067_v43, %v3053_v32 }
0x1749   :  { %3075 = vadd.xlane.f32.xlu0 %v3074_v49  ;;  %v3323_v50 = vsel %vm3315_vm14, %v3311_v40, %v3319_v45  ;;  %v3293_v10 = vmul.f32 %v6649_v18, %v7688_v20  ;;  %v3314_v13 = vadd.f32 %v5416_v35, %v3304_v47 }
0x174a   :  { %6063 = vmatprep.mubr.msk.f32.mxu1 %vm423_vm2, %v3323_v50  ;;  %v3071_v8 = vsel %vm423_vm2, %v3069_v11, 0.0 }
0x174b   :  { %6064 = vmatmul.mubr.msk.f32.vlgmr.msra.gmra.mrb[46].mxu1 %vm423_vm2, %v3324_v12  ;;  %3072 = vadd.xlane.f32.xlu1 %v3071_v8  ;;  %v3303_v51 = vmul.f32 %v5415_v38, %v3293_v10  ;;  %v3322_v54 = vmul.f32 0.15, %v3314_v13  ;;  %vm3318_vm4 = vcmp.ge.f32.partialorder %v3314_v13, 0.0 }
0x174d   :  { %v3313_v52 = vadd.f32 %v5416_v35, %v3303_v51  ;;  %v3326_v56 = vsel %vm3318_vm4, %v3314_v13, %v3322_v54 }
0x174f   :  { %vm3317_vm3 = vcmp.ge.f32.partialorder %v3313_v52, 0.0  ;;  %v3321_v55 = vmul.f32 0.15, %v3313_v52 }
0x1751   :  { %v3325_v20 = vsel %vm3317_vm3, %v3313_v52, %v3321_v55 }
0x1752   :  { %6066 = vmatprep.mubr.msk.f32.mxu1 %vm423_vm2, %v3325_v20 }
0x1753   :  { %6067 = vmatmul.mubr.msk.f32.gmra.mrb[48].mxu1 %vm423_vm2, %v3326_v56 }
0x1754   :  { %6085 = vmatprep.mubr.msk.bf16.mxu1 %vm748_vm7, %v7542_v15 }
0x175c   :  { %3111 = vrot.lane.b32.xlu1 %v5405_v59, %s6984_s16 }
0x17d6   :  { %v3076_v17 = vpop.xlane.xlu0 %3075 }
0x17d7   :  { %v5404_v4 = vmul.f32 -1.442695, %v3076_v17 }
0x17d8   :  { %v3073_v21 = vpop.xlane.xlu1 %3072 }
0x17d9   :  { %6650 = vpow2.f32 %v5404_v4  ;;  %v5403_v15 = vmul.f32 -1.442695, %v3073_v21 }
0x17db   :  { %6652 = vpow2.f32 %v5403_v15 }
0x17dc   :  { %v3112_v43 = vpop.permute.xlu1 %3111 }
0x17e3   :  { %v6651_v38 = vpop.eup %6650 }
0x17e4   :  { %v3084_v24 = vadd.f32 1.0, %v6651_v38 }
0x17e5   :  { %v6653_v25 = vpop.eup %6652 }
0x17e6   :  { %6654 = vrcp.f32 %v3084_v24  ;;  %v3083_v26 = vadd.f32 1.0, %v6653_v25 }
0x17e8   :  { %6656 = vrcp.f32 %v3083_v26 }
0x17f0   :  { %v6655_v5 = vpop.eup %6654 }
0x17f1   :  { %v3092_v35 = vsub.f32 1.0, %v6655_v5  ;;  %v3090_v32 = vmul.f32 %v6655_v5, %v7554_v46 }
0x17f2   :  { %v6657_v27 = vpop.eup %6656 }
0x17f3   :  { %v3094_v41 = vmul.f32 %v3092_v35, %v7710_v22  ;;  %v3091_v28 = vsub.f32 1.0, %v6657_v27  ;;  %v3089_v45 = vmul.f32 %v6657_v27, %v7556_v48 }
0x17f5   :  { %3099 = vrot.lane.b32.xlu0 %v3094_v41, %s6984_s16  ;;  %v3093_v39 = vmul.f32 %v3091_v28, %v7715_v29 }
0x17f7   :  { %3097 = vrot.lane.b32.xlu1 %v3093_v39, %s6984_s16 }
0x17fb   :  { %3122 = vrot.lane.b32.xlu1 %v5406_v2, %s6984_s16 }
0x17ff   :  { %3133 = vrot.lane.b32.xlu1 %v7533_v30, %s6984_s16 }
0x1803   :  { %3135 = vrot.lane.b32.xlu1 %v7537_v31, %s6984_s16 }
0x181e   :  { %v6065_v33 = vpop.f32.mrb[46].mxu1 }
0x181f   :  { %v3424_v62 = vadd.f32 %v6065_v33, %v5421_v23  ;;  %v3418_v22 = vpop.f32.mrb[47].mxu1 }
0x1820   :  { %v3419_v6 = vadd.f32 %v5421_v23, %v3418_v22 }
0x1821   :  { %v3442_v58 = vmul.f32 0.15, %v3424_v62  ;;  %vm3438_vm5 = vcmp.ge.f32.partialorder %v3424_v62, 0.0 }
0x1822   :  { %vm3437_vm6 = vcmp.ge.f32.partialorder %v3419_v6, 0.0  ;;  %v3441_v29 = vmul.f32 0.15, %v3419_v6 }
0x1823   :  { %v3446_v34 = vsel %vm3438_vm5, %v3424_v62, %v3442_v58 }
0x1824   :  { %v3445_v19 = vsel %vm3437_vm6, %v3419_v6, %v3441_v29 }
0x1825   :  { %6077 = vmatprep.mubr.msk.f32.mxu0 %vm423_vm2, %v3445_v19 }
0x1826   :  { %v6068_v3 = vpop.f32.mrb[48].mxu1  ;;  %6078 = vmatmul.mubr.msk.f32.vlgmr.msra.gmra.mrb[36].mxu0 %vm423_vm2, %v3446_v34 }
0x1827   :  { %v3434_v30 = vadd.f32 %v6068_v3, %v5421_v23  ;;  %v3428_v14 = vpop.f32.mrb[49].mxu1 }
0x1828   :  { %v3429_v36 = vadd.f32 %v5421_v23, %v3428_v14 }
0x1829   :  { %v3444_v31 = vmul.f32 0.15, %v3434_v30  ;;  %vm3440_vm8 = vcmp.ge.f32.partialorder %v3434_v30, 0.0 }
0x182a   :  { %vm3439_vm9 = vcmp.ge.f32.partialorder %v3429_v36, 0.0  ;;  %v3443_v37 = vmul.f32 0.15, %v3429_v36 }
0x182b   :  { %v3448_v42 = vsel %vm3440_vm8, %v3434_v30, %v3444_v31 }
0x182c   :  { %v3447_v40 = vsel %vm3439_vm9, %v3429_v36, %v3443_v37 }
0x182d   :  { %6080 = vmatprep.mubr.msk.f32.mxu0 %vm423_vm2, %v3447_v40 }
0x182e   :  { %6081 = vmatmul.mubr.msk.f32.gmra.mrb[38].mxu0 %vm423_vm2, %v3448_v42 }
0x182f   :  { %6093 = vmatprep.mubr.msk.bf16.mxu0 %vm6982_vm12, %v6981_v63 }
0x1867   :  { %v3100_v44 = vpop.permute.xlu0 %3099 }
0x1868   :  { %v3104_v61 = vadd.f32 %v3100_v44, %v3090_v32 }
0x1869   :  { %v3098_v47 = vpop.permute.xlu1 %3097 }
0x186a   :  { %v3103_v18 = vadd.f32 %v3098_v47, %v3089_v45  ;;  %v3115_v49 = vmul.f32 %v3112_v43, %v3104_v61 }
0x186c   :  { %v3114_v11 = vmul.f32 %v3112_v43, %v3103_v18 }
0x186d   :  { %v3123_v50 = vpop.permute.xlu1 %3122 }
0x186e   :  { %v3125_v10 = vadd.f32 %v3123_v50, %v3114_v11  ;;  %v3126_v12 = vadd.f32 %v3123_v50, %v3115_v49  ;;  %v5444_v49 = vld [vmem:[%s8015_s5 + $0x40] sm:$0xff]  ;;  %v5445_v11 = vld [vmem:[%s8015_s5 + $0x48] sm:$0xff]  ;;  %v5446_v50 = vld [vmem:[%s8015_s5 + $0x50] sm:$0xff] }
0x1870   :  { %vm3127_vm10 = vcmp.ge.f32.partialorder %v3125_v10, 0.0  ;;  %v3129_v8 = vmul.f32 0.15, %v3125_v10  ;;  %v3130_v51 = vmul.f32 0.15, %v3126_v12  ;;  %vm3128_vm11 = vcmp.ge.f32.partialorder %v3126_v12, 0.0 }
0x1871   :  { %v3134_v13 = vpop.permute.xlu1 %3133 }
0x1872   :  { %v3131_v52 = vsel %vm3127_vm10, %v3125_v10, %v3129_v8  ;;  %v3132_v54 = vsel %vm3128_vm11, %v3126_v12, %v3130_v51  ;;  %v6392_v10 = vpack.c.bf16 %v5445_v11, %v5444_v49  ;;  %v5447_v12 = vld [vmem:[%s8015_s5 + $0x58] sm:$0xff] }
0x1873   :  { %v7757_v55 = vadd.f32 %v3134_v13, %v3131_v52  ;;  %v6396_v8 = vpack.c.bf16 %v5447_v12, %v5446_v50  ;;  %v5456_v12 = vld [vmem:[%s8019_s2 + $0x80] sm:$0xff] }
0x1875   :  { %v3136_v46 = vpop.permute.xlu1 %3135 }
0x1876   :  { %v7759_v20 = vadd.f32 %v3136_v46, %v3132_v54  ;;  %v5472_v46 = vld [vmem:[%s7043_s14 + $0x18] sm:$0x7f]  ;;  %s8039_s14 = sld [smem:[#allocation49_spill]] }
0x1878   :  { %v3559_v48 = vpack.c.bf16 %v7759_v20, %v7757_v55 }
0x187a   :  { %3561 = vrot.lane.b32.xlu1 %v3559_v48, %s6986_s23  ;;  %v3698_v48 = vstv %s3697_s26 }
0x18ec   :  { %v3562_v56 = vpop.permute.xlu1 %3561 }
0x18ed   :  { %6083 = vmatprep.subr.bf16.mxu1 %v3562_v56 }
0x18ee   :  { %6084 = vmatpush3.bf16.msra.mxu1 %v3562_v56  ;;  %v3699_v56 = vmul.f32 %v3698_v48, %v7757_v55 }
0x18ef   :  { %6393 = vmatprep.subr.bf16.mxu1 %v6392_v10 }
0x18f1   :  { %6086 = vmatmul.mubr.msk.bf16.vlgmr.msra.gmra.mrb[52].mxu1 %vm748_vm7, %v7562_v57 }
0x18f2   :  { %6395 = vmatpush3.bf16.msra.mxu1 %v6392_v10 }
0x18f3   :  { %6397 = vmatprep.subr.bf16.mxu1 %v6396_v8 }
0x18f6   :  { %6399 = vmatpush3.bf16.msra.mxu1 %v6396_v8  ;;  %v5457_v8 = vld [vmem:[%s8019_s2 + $0x88] sm:$0xff] }
0x18f7   :  { %6127 = vmatprep.subr.msk.mxu1 %vm332_vm0, %v5472_v46 }
0x18f9   :  { %v6079_v59 = vpop.f32.mrb[36].mxu0 }
0x18fa   :  { %v3540_v7 = vpop.f32.mrb[37].mxu0  ;;  %v3546_v4 = vadd.f32 %v6079_v59, %v5431_v1 }
0x18fb   :  { %v3541_v0 = vadd.f32 %v5431_v1, %v3540_v7 }
0x18fc   :  { %v5439_v24 = vmul.f32 -1.442695, %v3546_v4 }
0x18fd   :  { %v5438_v15 = vmul.f32 -1.442695, %v3541_v0 }
0x1901   :  { %v6082_v9 = vpop.f32.mrb[38].mxu0 }
0x1902   :  { %v3550_v60 = vpop.f32.mrb[39].mxu0  ;;  %v3556_v17 = vadd.f32 %v6082_v9, %v5431_v1  ;;  %v3700_v9 = vmul.f32 %v3698_v48, %v7759_v20  ;;  %v5461_v48 = vld [vmem:[%s8019_s2 + $0xa8] sm:$0xff] }
0x1903   :  { %v3551_v16 = vadd.f32 %v5431_v1, %v3550_v60 }
0x1904   :  { %v5441_v38 = vmul.f32 -1.442695, %v3556_v17 }
0x1905   :  { %v5440_v21 = vmul.f32 -1.442695, %v3551_v16 }
0x1907   :  { %6658 = vpow2.f32 %v5440_v21  ;;  %v6723_v21 = vld [vmem:[%s7013_s17 + $0x10] sm:$0xff] }
0x1908   :  { %6660 = vpow2.f32 %v5438_v15  ;;  %v6724_v15 = vld [vmem:[%s7013_s17 + $0x18] sm:$0xff] }
0x1909   :  { %6662 = vpow2.f32 %v5441_v38  ;;  %v5449_v38 = vld [vmem:[%s8018_s1 + $0x2] ss:$0 sm:$0xff] }
0x190a   :  { %6664 = vpow2.f32 %v5439_v24 }
0x1911   :  { %v6659_v25 = vpop.eup %6658 }
0x1912   :  { %v6661_v26 = vpop.eup %6660  ;;  %v3627_v35 = vadd.f32 1.0, %v6659_v25 }
0x1913   :  { %v6663_v57 = vpop.eup %6662  ;;  %v3625_v27 = vadd.f32 1.0, %v6661_v26 }
0x1914   :  { %v6665_v5 = vpop.eup %6664  ;;  %v3628_v41 = vadd.f32 1.0, %v6663_v57  ;;  %6666 = vrcp.f32 %v3627_v35  ;;  %v5474_v35 = vld [vmem:[%s7048_s19 + $0x3] ss:$0 sm:$0xff]  ;;  %s8040_s19 = sld [smem:[#allocation50_spill]] }
0x1915   :  { %v3626_v28 = vadd.f32 1.0, %v6665_v5  ;;  %6668 = vrcp.f32 %v3625_v27 }
0x1916   :  { %6670 = vrcp.f32 %v3628_v41 }
0x1917   :  { %6672 = vrcp.f32 %v3626_v28 }
0x191e   :  { %v6667_v39 = vpop.eup %6666 }
0x191f   :  { %v6669_v2 = vpop.eup %6668  ;;  %v3643_v62 = vsub.f32 1.0, %v6667_v39 }
0x1920   :  { %v6671_v23 = vpop.eup %6670  ;;  %v3641_v22 = vsub.f32 1.0, %v6669_v2 }
0x1921   :  { %v6673_v33 = vpop.eup %6672  ;;  %v3644_v6 = vsub.f32 1.0, %v6671_v23  ;;  %v3647_v19 = vmul.f32 %v3643_v62, %v3551_v16 }
0x1922   :  { %v3642_v58 = vsub.f32 1.0, %v6673_v33  ;;  %v3645_v30 = vmul.f32 %v3641_v22, %v3541_v0 }
0x1923   :  { %v3648_v31 = vmul.f32 %v3644_v6, %v3556_v17  ;;  %v6721_v17 = vld [vmem:[%s7013_s17] sm:$0xff] }
0x1924   :  { %v3646_v43 = vmul.f32 %v3642_v58, %v3546_v4  ;;  %v6722_v4 = vld [vmem:[%s7013_s17 + $0x8] sm:$0xff]  ;;  %s5508_s17 = sld [smem:[#allocation10 + $0x3]] }
0x19c4   :  { %v6087_v29 = vpop.f32.mrb[52].mxu1 }
0x19c5   :  { %v3639_v34 = vmul.f32 %v6667_v39, %v6087_v29  ;;  %v3598_v3 = vpop.f32.mrb[53].mxu1 }
0x19c6   :  { %v3637_v14 = vmul.f32 %v6669_v2, %v3598_v3  ;;  %v6088_v36 = vpop.f32.mrb[54].mxu1 }
0x19c7   :  { %v3651_v37 = vadd.f32 %v3647_v19, %v3639_v34  ;;  %v3640_v40 = vmul.f32 %v6671_v23, %v6088_v36  ;;  %v3601_v42 = vpop.f32.mrb[55].mxu1 }
0x19c8   :  { %v3649_v32 = vadd.f32 %v3645_v30, %v3637_v14  ;;  %v3638_v44 = vmul.f32 %v6673_v33, %v3601_v42 }
0x19c9   :  { %v3652_v61 = vadd.f32 %v3648_v31, %v3640_v40 }
0x19ca   :  { %v3650_v45 = vadd.f32 %v3646_v43, %v3638_v44 }
0x19cb   :  { %v3654_v47 = vpack.c.bf16 %v3652_v61, %v3651_v37 }
0x19cc   :  { %v3653_v18 = vpack.c.bf16 %v3650_v45, %v3649_v32 }
0x19ce   :  { %6090 = vmatpush3.bf16.msra.mxu0 %v3653_v18 }
0x19cf   :  { %6091 = vmatprep.subr.bf16.mxu0 %v6981_v63 }
0x19d2   :  { %6092 = vmatpush3.bf16.msra.mxu0 %v3654_v47 }
0x19d5   :  { %6094 = vmatmul.mubr.msk.bf16.vlgmr.msra.gmra.mrb[40].mxu0 %vm423_vm2, %v7337_v53 }
0x1aa8   :  { %v3689_v13 = vpop.f32.mrb[40].mxu0 }
0x1aa9   :  { %3703 = vrot.lane.b32.xlu0 %v3689_v13, %s6984_s16  ;;  %v6095_v51 = vpop.f32.mrb[41].mxu0  ;;  %v6400_v13 = vpack.c.bf16 %v5457_v8, %v5456_v12 }
0x1aaa   :  { %v3692_v52 = vpop.f32.mrb[42].mxu0  ;;  %v5458_v51 = vld [vmem:[%s8019_s2 + $0x90] sm:$0xff] }
0x1aab   :  { %3705 = vrot.lane.b32.xlu1 %v3692_v52, %s6984_s16  ;;  %v6096_v54 = vpop.f32.mrb[43].mxu0  ;;  %6401 = vmatprep.subr.bf16.mxu0 %v6400_v13  ;;  %v5459_v52 = vld [vmem:[%s8019_s2 + $0x98] sm:$0xff] }
0x1aac   :  { %6403 = vmatpush3.bf16.msra.mxu0 %v6400_v13  ;;  %v6404_v54 = vpack.c.bf16 %v5459_v52, %v5458_v51 }
0x1aae   :  { %6405 = vmatprep.subr.bf16.mxu0 %v6404_v54 }
0x1ab0   :  { %6407 = vmatpush3.bf16.msra.mxu0 %v6404_v54 }
0x1b1b   :  { %v3704_v59 = vpop.permute.xlu0 %3703 }
0x1b1c   :  { %v3709_v7 = vadd.f32 %v3704_v59, %v3699_v56  ;;  %v5462_v59 = vld [vmem:[%s8019_s2 + $0xb0] sm:$0xff] }
0x1b1d   :  { %v3706_v60 = vpop.permute.xlu1 %3705 }
0x1b1e   :  { %v3710_v1 = vadd.f32 %v3706_v60, %v3700_v9  ;;  %3726 = vrot.lane.b32.xlu0 %v3709_v7, %s6986_s23  ;;  %v5463_v7 = vld [vmem:[%s8019_s2 + $0xb8] sm:$0xff] }
0x1b1f   :  { %v6412_v9 = vpack.c.bf16 %v5463_v7, %v5462_v59 }
0x1b20   :  { %3728 = vrot.lane.b32.xlu1 %v3710_v1, %s6986_s23 }
0x1b90   :  { %v3727_v16 = vpop.permute.xlu0 %3726 }
0x1b91   :  { %6105 = vmatprep.mubr.msk.f32.mxu1 %vm423_vm2, %v3727_v16 }
0x1b92   :  { %v3729_v0 = vpop.permute.xlu1 %3728 }
0x1b93   :  { %6106 = vmatmul.mubr.msk.f32.vlgmr.msra.gmra.mrb[50].mxu1 %vm423_vm2, %v3729_v0 }
0x1b94   :  { %6128 = vmatpush3.msk.msra.mxu1 %vm332_vm0, %v5472_v46  ;;  %6129 = vmatprep.mubr.msk.f32.mxu1 %vm319_vm1, %v6721_v17  ;;  %v5460_v46 = vld [vmem:[%s8019_s2 + $0xa0] sm:$0xff] }
0x1b95   :  { %v6408_v56 = vpack.c.bf16 %v5461_v48, %v5460_v46 }
0x1b97   :  { %6130 = vmatmul.mubr.msk.f32.vlgmr.msra.gmra.mrb[56].mxu1 %vm319_vm1, %v6722_v4  ;;  %6409 = vmatprep.subr.bf16.mxu0 %v6408_v56 }
0x1b98   :  { %6132 = vmatprep.mubr.msk.f32.mxu1 %vm319_vm1, %v6723_v21  ;;  %6411 = vmatpush3.bf16.msra.mxu0 %v6408_v56 }
0x1b99   :  { %6413 = vmatprep.subr.bf16.mxu0 %v6412_v9 }
0x1b9b   :  { %6133 = vmatmul.mubr.msk.f32.gmra.mrb[58].mxu1 %vm319_vm1, %v6724_v15 }
0x1b9c   :  { %6415 = vmatpush3.bf16.msra.mxu0 %v6412_v9 }
0x1c66   :  { %v6107_v24 = vpop.f32.mrb[50].mxu1 }
0x1c67   :  { %v3806_v25 = vadd.f32 %v6107_v24, %v5449_v38  ;;  %v3800_v26 = vpop.f32.mrb[51].mxu1 }
0x1c68   :  { %v3801_v57 = vadd.f32 %v5449_v38, %v3800_v26 }
0x1c69   :  { %v3816_v5 = vsel %vm996_vm13, %v3806_v25, 0.0 }
0x1c6a   :  { %3817 = vadd.xlane.f32.xlu1 %v3816_v5  ;;  %v3813_v27 = vsel %vm996_vm13, %v3801_v57, 0.0  ;;  %v6131_v41 = vpop.f32.mrb[56].mxu1 }
0x1c6b   :  { %3814 = vadd.xlane.f32.xlu0 %v3813_v27  ;;  %v7797_v28 = vadd.f32 %v6131_v41, %v5474_v35  ;;  %v4094_v39 = vpop.f32.mrb[57].mxu1 }
0x1c6c   :  { %v4095_v2 = vadd.f32 %v5474_v35, %v4094_v39 }
0x1c6d   :  { %v4120_v49 = vsel %vm423_vm2, %v7797_v28, 0.0 }
0x1c6e   :  { %v6134_v23 = vpop.f32.mrb[58].mxu1  ;;  %v4117_v33 = vsel %vm423_vm2, %v4095_v2, 0.0 }
0x1c6f   :  { %v7800_v62 = vadd.f32 %v6134_v23, %v5474_v35  ;;  %v4104_v22 = vpop.f32.mrb[59].mxu1  ;;  %4118 = vadd.xlane.f32.xlu1 %v4117_v33 }
0x1c70   :  { %v4105_v6 = vadd.f32 %v5474_v35, %v4104_v22 }
0x1c71   :  { %v4126_v10 = vsel %vm423_vm2, %v7800_v62, 0.0 }
0x1c72   :  { %v4123_v58 = vsel %vm423_vm2, %v4105_v6, 0.0 }
0x1c73   :  { %4124 = vadd.xlane.f32.xlu1 %v4123_v58 }
0x1cf7   :  { %v3818_v29 = vpop.xlane.xlu1 %3817 }
0x1cf8   :  { %v3820_v19 = vmul.f32 0.015625, %v3818_v29  ;;  %v3815_v34 = vpop.xlane.xlu0 %3814 }
0x1cf9   :  { %v3819_v3 = vmul.f32 0.015625, %v3815_v34  ;;  %v5480_v34 = vld [vmem:[#allocation11 + $0x3] ss:$0 sm:$0xff] }
0x1cfa   :  { %v7803_v30 = vsub.f32 %v3806_v25, %v3820_v19 }
0x1cfb   :  { %v7805_v14 = vsub.f32 %v3801_v57, %v3819_v3 }
0x1cfc   :  { %v4119_v36 = vpop.xlane.xlu1 %4118  ;;  %v3824_v42 = vmul.f32 %v7803_v30, %v7803_v30 }
0x1cfd   :  { %v3823_v31 = vmul.f32 %v7805_v14, %v7805_v14  ;;  %v4129_v37 = vmul.f32 0.03125, %v4119_v36 }
0x1cfe   :  { %v3828_v45 = vsel %vm996_vm13, %v3824_v42, 0.0 }
0x1cff   :  { %v3825_v40 = vsel %vm996_vm13, %v3823_v31, 0.0  ;;  %v7812_v43 = vsub.f32 %v4095_v2, %v4129_v37  ;;  %v5454_v2 = vld [vmem:[%s8020_s10 + $0x2] ss:$0 sm:$0xff]  ;;  %v5481_v31 = vld [vmem:[#allocation13 + $0x3] ss:$0 sm:$0xff] }
0x1d00   :  { %3826 = vadd.xlane.f32.xlu0 %v3825_v40  ;;  %v4125_v32 = vpop.xlane.xlu1 %4124 }
0x1d01   :  { %v4131_v44 = vmul.f32 0.03125, %v4125_v32  ;;  %v4137_v61 = vmul.f32 %v7812_v43, %v7812_v43 }
0x1d03   :  { %v7817_v47 = vsub.f32 %v4105_v6, %v4131_v44  ;;  %v4141_v18 = vsel %vm423_vm2, %v4137_v61, 0.0 }
0x1d04   :  { %3829 = vadd.xlane.f32.xlu0 %v3828_v45  ;;  %4142 = vadd.xlane.f32.xlu1 %v4141_v18  ;;  %v5482_v45 = vld [vmem:[%s7063_s6 + $0x60] sm:$0xff]  ;;  %v5483_v18 = vld [vmem:[%s7063_s6 + $0x68] sm:$0xff] }
0x1d05   :  { %v4139_v11 = vmul.f32 %v7817_v47, %v7817_v47 }
0x1d07   :  { %v4147_v50 = vsel %vm423_vm2, %v4139_v11, 0.0  ;;  %v5484_v11 = vld [vmem:[%s7063_s6 + $0x70] sm:$0xff] }
0x1d08   :  { %4121 = vadd.xlane.f32.xlu0 %v4120_v49  ;;  %4148 = vadd.xlane.f32.xlu1 %v4147_v50  ;;  %v6416_v49 = vpack.c.bf16 %v5483_v18, %v5482_v45  ;;  %v5485_v50 = vld [vmem:[%s7063_s6 + $0x78] sm:$0xff]  ;;  %s8041_s6 = sld [smem:[#allocation27_spill]] }
0x1d0a   :  { %6417 = vmatprep.subr.bf16.mxu1 %v6416_v49 }
0x1d0b   :  { %6419 = vmatpush3.bf16.msra.mxu1 %v6416_v49 }
0x1d0c   :  { %4127 = vadd.xlane.f32.xlu0 %v4126_v10  ;;  %v6420_v10 = vpack.c.bf16 %v5485_v50, %v5484_v11 }
0x1d0e   :  { %6421 = vmatprep.subr.bf16.mxu1 %v6420_v10 }
0x1d0f   :  { %6423 = vmatpush3.bf16.msra.mxu1 %v6420_v10 }
0x1d8d   :  { %v3827_v60 = vpop.xlane.xlu0 %3826 }
0x1d8e   :  { %v3831_v1 = vmul.f32 0.015625, %v3827_v60 }
0x1d90   :  { %v3833_v16 = vadd.f32 1e-05, %v3831_v1 }
0x1d91   :  { %v3830_v0 = vpop.xlane.xlu0 %3829  ;;  %v4143_v17 = vpop.xlane.xlu1 %4142 }
0x1d92   :  { %6674 = vrsqrt.f32 %v3833_v16  ;;  %v3832_v4 = vmul.f32 0.015625, %v3830_v0  ;;  %v4153_v21 = vmul.f32 0.03125, %v4143_v17 }
0x1d94   :  { %v3834_v15 = vadd.f32 1e-05, %v3832_v4  ;;  %v4157_v38 = vadd.f32 1e-05, %v4153_v21 }
0x1d95   :  { %v4122_v24 = vpop.xlane.xlu0 %4121  ;;  %v4149_v12 = vpop.xlane.xlu1 %4148 }
0x1d96   :  { %6676 = vrsqrt.f32 %v3834_v15  ;;  %v4130_v25 = vmul.f32 0.03125, %v4122_v24  ;;  %v4155_v8 = vmul.f32 0.03125, %v4149_v12 }
0x1d97   :  { %6678 = vrsqrt.f32 %v4157_v38 }
0x1d98   :  { %v7836_v26 = vsub.f32 %v7797_v28, %v4130_v25  ;;  %v5455_v28 = vld [vmem:[%s8021_s24 + $0x2] ss:$0 sm:$0xff]  ;;  %v4159_v13 = vadd.f32 1e-05, %v4155_v8 }
0x1d99   :  { %v4128_v57 = vpop.xlane.xlu0 %4127 }
0x1d9a   :  { %v4132_v5 = vmul.f32 0.03125, %v4128_v57  ;;  %v4138_v35 = vmul.f32 %v7836_v26, %v7836_v26  ;;  %6680 = vrsqrt.f32 %v4159_v13 }
0x1d9c   :  { %v6675_v27 = vpop.eup %6674  ;;  %v7841_v41 = vsub.f32 %v7800_v62, %v4132_v5  ;;  %v4144_v39 = vsel %vm423_vm2, %v4138_v35, 0.0  ;;  %v6725_v35 = vld [vmem:[%s7018_s21] sm:$0xff]  }
0x1d9d   :  { %4145 = vadd.xlane.f32.xlu0 %v4144_v39  ;;  %v3837_v23 = vmul.f32 %v6675_v27, %v7805_v14  ;;  %v5465_v27 = vld [vmem:[%s8022_s7 + $0x2] ss:$0 sm:$0xff] }
0x1d9e   :  { %v4140_v33 = vmul.f32 %v7841_v41, %v7841_v41 }
0x1d9f   :  { %v3845_v22 = vmul.f32 %v5454_v2, %v3837_v23 }
0x1da0   :  { %v6677_v6 = vpop.eup %6676  ;;  %v4150_v58 = vsel %vm423_vm2, %v4140_v33, 0.0 }
0x1da1   :  { %v6679_v29 = vpop.eup %6678  ;;  %v3838_v19 = vmul.f32 %v6677_v6, %v7803_v30  ;;  %4151 = vadd.xlane.f32.xlu0 %v4150_v58  ;;  %v3853_v62 = vadd.f32 %v5455_v28, %v3845_v22  ;;  %v5491_v22 = vld [vmem:[%s7073_s20 + $0x60] sm:$0xff]  ;;  %v5492_v6 = vld [vmem:[%s7073_s20 + $0x68] sm:$0xff] }
0x1da2   :  { %v4165_v3 = vmul.f32 %v6679_v29, %v7812_v43  ;;  %v6424_v58 = vpack.c.bf16 %v5492_v6, %v5491_v22  ;;  %v5493_v29 = vld [vmem:[%s7073_s20 + $0x70] sm:$0xff]  ;;  %v5496_v22 = vld [vmem:[%s8016_s30 + $0x3] ss:$0 sm:$0xff]  ;;  %s6988_s30 = smov [#allocation17]  }
0x1da3   :  { %v3846_v36 = vmul.f32 %v5454_v2, %v3838_v19  ;;  %vm3855_vm0 = vcmp.ge.f32.partialorder %v3853_v62, 0.0  ;;  %v3857_v14 = vmul.f32 0.15, %v3853_v62  ;;  %v5494_v19 = vld [vmem:[%s7073_s20 + $0x78] sm:$0xff]  ;;  %s8042_s20 = sld [smem:[#allocation51_spill]] }
0x1da4   :  { %v4175_v37 = vmul.f32 %v5480_v34, %v4165_v3  ;;  %v6681_v56 = vpop.eup %6680  ;;  %6425 = vmatprep.subr.bf16.mxu0 %v6424_v58 }
0x1da5   :  { %v3854_v40 = vadd.f32 %v5455_v28, %v3846_v36  ;;  %v3859_v42 = vsel %vm3855_vm0, %v3853_v62, %v3857_v14  ;;  %v4167_v7 = vmul.f32 %v6681_v56, %v7817_v47  ;;  %v6428_v62 = vpack.c.bf16 %v5494_v19, %v5493_v29 }
0x1da6   :  { %6124 = vmatprep.mubr.msk.f32.mxu0 %vm996_vm13, %v3859_v42  ;;  %v4185_v32 = vadd.f32 %v5481_v31, %v4175_v37  ;;  %v5486_v42 = vld [vmem:[#allocation14 + $0x3] ss:$0 sm:$0xff] }
0x1da7   :  { %vm3856_vm1 = vcmp.ge.f32.partialorder %v3854_v40, 0.0  ;;  %v3858_v30 = vmul.f32 0.15, %v3854_v40  ;;  %v4177_v9 = vmul.f32 %v5480_v34, %v4167_v7 }
0x1da8   :  { %vm4189_vm14 = vcmp.ge.f32.partialorder %v4185_v32, 0.0  ;;  %v4193_v44 = vmul.f32 0.15, %v4185_v32 }
0x1da9   :  { %v3860_v61 = vsel %vm3856_vm1, %v3854_v40, %v3858_v30  ;;  %v4187_v16 = vadd.f32 %v5481_v31, %v4177_v9  ;;  %vm5006_vm1 = vcmask 254976  }
0x1daa   :  { %6125 = vmatmul.mubr.msk.f32.vlgmr.msra.gmra.mrb[44].mxu0 %vm996_vm13, %v3860_v61  ;;  %v4197_v43 = vsel %vm4189_vm14, %v4185_v32, %v4193_v44 }
0x1dab   :  { %6143 = vmatprep.mubr.msk.f32.mxu1 %vm423_vm2, %v4197_v43  ;;  %v4195_v15 = vmul.f32 0.15, %v4187_v16  ;;  %vm4191_vm3 = vcmp.ge.f32.partialorder %v4187_v16, 0.0  ;;  %6427 = vmatpush3.bf16.msra.mxu0 %v6424_v58 }
0x1dac   :  { %6429 = vmatprep.subr.bf16.mxu0 %v6428_v62 }
0x1dad   :  { %v4199_v47 = vsel %vm4191_vm3, %v4187_v16, %v4195_v15 }
0x1daf   :  { %6431 = vmatpush3.bf16.msra.mxu0 %v6428_v62 }
0x1db0   :  { %6169 = vmatprep.subr.bf16.mxu0 %v6981_v63 }
0x1e2a   :  { %v4146_v51 = vpop.xlane.xlu0 %4145 }
0x1e2b   :  { %v4154_v52 = vmul.f32 0.03125, %v4146_v51 }
0x1e2d   :  { %v4158_v54 = vadd.f32 1e-05, %v4154_v52 }
0x1e2e   :  { %v4152_v46 = vpop.xlane.xlu0 %4151 }
0x1e2f   :  { %6682 = vrsqrt.f32 %v4158_v54  ;;  %v4156_v48 = vmul.f32 0.03125, %v4152_v46 }
0x1e31   :  { %v4160_v59 = vadd.f32 1e-05, %v4156_v48 }
0x1e33   :  { %6684 = vrsqrt.f32 %v4160_v59 }
0x1e39   :  { %v6683_v60 = vpop.eup %6682 }
0x1e3a   :  { %v4166_v1 = vmul.f32 %v6683_v60, %v7836_v26 }
0x1e3c   :  { %v4176_v0 = vmul.f32 %v5480_v34, %v4166_v1 }
0x1e3d   :  { %v6685_v17 = vpop.eup %6684 }
0x1e3e   :  { %v4186_v4 = vadd.f32 %v5481_v31, %v4176_v0  ;;  %v4168_v21 = vmul.f32 %v6685_v17, %v7841_v41  ;;  %v5470_v0 = vld [vmem:[%s8023_s0 + $0x2] ss:$0 sm:$0xff] }
0x1e40   :  { %vm4190_vm15 = vcmp.ge.f32.partialorder %v4186_v4, 0.0  ;;  %v4194_v38 = vmul.f32 0.15, %v4186_v4  ;;  %v4178_v24 = vmul.f32 %v5480_v34, %v4168_v21  ;;  %v5471_v21 = vld [vmem:[%s8024_s9 + $0x2] ss:$0 sm:$0xff] }
0x1e42   :  { %v4198_v25 = vsel %vm4190_vm15, %v4186_v4, %v4194_v38  ;;  %v4188_v57 = vadd.f32 %v5481_v31, %v4178_v24 }
0x1e43   :  { %6144 = vmatmul.mubr.msk.f32.vlgmr.msra.gmra.mrb[60].mxu1 %vm423_vm2, %v4198_v25 }
0x1e44   :  { %6146 = vmatprep.mubr.msk.f32.mxu1 %vm423_vm2, %v4199_v47  ;;  %vm4192_vm4 = vcmp.ge.f32.partialorder %v4188_v57, 0.0  ;;  %v4196_v26 = vmul.f32 0.15, %v4188_v57 }
0x1e46   :  { %v4200_v5 = vsel %vm4192_vm4, %v4188_v57, %v4196_v26 }
0x1e47   :  { %6147 = vmatmul.mubr.msk.f32.gmra.mrb[62].mxu1 %vm423_vm2, %v4200_v5 }
0x1e48   :  { %6165 = vmatprep.mubr.msk.bf16.mxu1 %vm748_vm7, %v6725_v35 }
0x1e7d   :  { %v6126_v41 = vpop.f32.mrb[44].mxu0 }
0x1e7e   :  { %v3956_v39 = vadd.f32 %v6126_v41, %v5465_v27  ;;  %v3950_v2 = vpop.f32.mrb[45].mxu0 }
0x1e7f   :  { %v3951_v23 = vadd.f32 %v5465_v27, %v3950_v2 }
0x1e80   :  { %v3966_v33 = vsel %vm423_vm2, %v3956_v39, 0.0 }
0x1e81   :  { %3967 = vadd.xlane.f32.xlu0 %v3966_v33  ;;  %v3963_v28 = vsel %vm423_vm2, %v3951_v23, 0.0 }
0x1e82   :  { %3964 = vadd.xlane.f32.xlu1 %v3963_v28  ;;  %v6726_v28 = vld [vmem:[%s7018_s21 + $0x8] sm:$0xff]   ;;  %s4571_s21 = sadd.f32 1.0, %s5508_s17 }
0x1f0e   :  { %v3968_v34 = vpop.xlane.xlu0 %3967 }
0x1f0f   :  { %v3970_v3 = vmul.f32 0.03125, %v3968_v34  ;;  %v3965_v36 = vpop.xlane.xlu1 %3964 }
0x1f10   :  { %v3969_v14 = vmul.f32 0.03125, %v3965_v36 }
0x1f11   :  { %v3972_v31 = vsub.f32 %v3956_v39, %v3970_v3 }
0x1f12   :  { %v3971_v37 = vsub.f32 %v3951_v23, %v3969_v14 }
0x1f13   :  { %v3974_v40 = vmul.f32 %v3972_v31, %v3972_v31 }
0x1f14   :  { %v3973_v32 = vmul.f32 %v3971_v37, %v3971_v37 }
0x1f15   :  { %v3978_v30 = vsel %vm423_vm2, %v3974_v40, 0.0 }
0x1f16   :  { %v6145_v44 = vpop.f32.mrb[60].mxu1  ;;  %3979 = vadd.xlane.f32.xlu0 %v3978_v30  ;;  %v3975_v61 = vsel %vm423_vm2, %v3973_v32, 0.0 }
0x1f17   :  { %v4298_v43 = vadd.f32 %v6145_v44, %v5486_v42  ;;  %v4292_v45 = vpop.f32.mrb[61].mxu1  ;;  %3976 = vadd.xlane.f32.xlu1 %v3975_v61 }
0x1f18   :  { %v4293_v18 = vadd.f32 %v5486_v42, %v4292_v45 }
0x1f19   :  { %v4316_v49 = vmul.f32 0.15, %v4298_v43  ;;  %vm4312_vm5 = vcmp.ge.f32.partialorder %v4298_v43, 0.0 }
0x1f1a   :  { %vm4311_vm6 = vcmp.ge.f32.partialorder %v4293_v18, 0.0  ;;  %v4315_v11 = vmul.f32 0.15, %v4293_v18  ;;  %v6148_v50 = vpop.f32.mrb[62].mxu1 }
0x1f1b   :  { %v4308_v10 = vadd.f32 %v6148_v50, %v5486_v42  ;;  %v4302_v12 = vpop.f32.mrb[63].mxu1  ;;  %v4320_v51 = vsel %vm4312_vm5, %v4298_v43, %v4316_v49 }
0x1f1c   :  { %v4303_v8 = vadd.f32 %v5486_v42, %v4302_v12  ;;  %v4319_v13 = vsel %vm4311_vm6, %v4293_v18, %v4315_v11 }
0x1f1d   :  { %v4318_v52 = vmul.f32 0.15, %v4308_v10  ;;  %6157 = vmatprep.mubr.msk.f32.mxu0 %vm423_vm2, %v4319_v13  ;;  %vm4314_vm8 = vcmp.ge.f32.partialorder %v4308_v10, 0.0 }
0x1f1e   :  { %vm4313_vm9 = vcmp.ge.f32.partialorder %v4303_v8, 0.0  ;;  %v4317_v54 = vmul.f32 0.15, %v4303_v8  ;;  %6158 = vmatmul.mubr.msk.f32.vlgmr.msra.gmra.mrb[46].mxu0 %vm423_vm2, %v4320_v51 }
0x1f1f   :  { %v4322_v48 = vsel %vm4314_vm8, %v4308_v10, %v4318_v52 }
0x1f20   :  { %v4321_v46 = vsel %vm4313_vm9, %v4303_v8, %v4317_v54 }
0x1f21   :  { %6160 = vmatprep.mubr.msk.f32.mxu0 %vm423_vm2, %v4321_v46 }
0x1f22   :  { %6161 = vmatmul.mubr.msk.f32.gmra.mrb[48].mxu0 %vm423_vm2, %v4322_v48 }
0x1f23   :  { %6173 = vmatprep.mubr.msk.bf16.mxu0 %vm6982_vm12, %v6981_v63 }
0x1fa3   :  { %v3980_v56 = vpop.xlane.xlu0 %3979 }
0x1fa4   :  { %v3982_v59 = vmul.f32 0.03125, %v3980_v56  ;;  %v3977_v7 = vpop.xlane.xlu1 %3976 }
0x1fa5   :  { %v3981_v9 = vmul.f32 0.03125, %v3977_v7 }
0x1fa6   :  { %v3984_v60 = vadd.f32 1e-05, %v3982_v59 }
0x1fa7   :  { %v3983_v1 = vadd.f32 1e-05, %v3981_v9 }
0x1fa8   :  { %6686 = vrsqrt.f32 %v3984_v60 }
0x1fa9   :  { %6688 = vrsqrt.f32 %v3983_v1 }
0x1fb2   :  { %v6687_v16 = vpop.eup %6686 }
0x1fb3   :  { %v6689_v17 = vpop.eup %6688  ;;  %v3988_v4 = vmul.f32 %v6687_v16, %v3972_v31 }
0x1fb4   :  { %v3987_v15 = vmul.f32 %v6689_v17, %v3971_v37  ;;  %v5509_v17 = vld [vmem:[%s8015_s5 + $0x60] sm:$0xff] }
0x1fb5   :  { %v3996_v38 = vmul.f32 %v5470_v0, %v3988_v4  ;;  %v5510_v4 = vld [vmem:[%s8015_s5 + $0x68] sm:$0xff] }
0x1fb6   :  { %v3995_v24 = vmul.f32 %v5470_v0, %v3987_v15  ;;  %v6432_v15 = vpack.c.bf16 %v5510_v4, %v5509_v17 }
0x1fb7   :  { %v4004_v25 = vadd.f32 %v5471_v21, %v3996_v38  ;;  %v5512_v38 = vld [vmem:[%s8015_s5 + $0x78] sm:$0xff] }
0x1fb8   :  { %v4003_v57 = vadd.f32 %v5471_v21, %v3995_v24  ;;  %v5511_v21 = vld [vmem:[%s8015_s5 + $0x70] sm:$0xff]  ;;  %s8043_s5 = sld [smem:[#allocation52_spill]] }
0x1fb9   :  { %4009 = vrot.lane.b32.xlu0 %v4004_v25, %s6984_s16  ;;  %v6436_v24 = vpack.c.bf16 %v5512_v38, %v5511_v21 }
0x1fba   :  { %4007 = vrot.lane.b32.xlu1 %v4003_v57, %s6984_s16 }
0x1ff1   :  { %v6159_v47 = vpop.f32.mrb[46].mxu0 }
0x1ff2   :  { %v4414_v26 = vpop.f32.mrb[47].mxu0  ;;  %v4420_v29 = vadd.f32 %v6159_v47, %v5496_v22 }
0x1ff3   :  { %v4415_v58 = vadd.f32 %v5496_v22, %v4414_v26 }
0x1ff4   :  { %v5504_v34 = vmul.f32 -1.442695, %v4420_v29 }
0x1ff5   :  { %v6162_v5 = vpop.f32.mrb[48].mxu0  ;;  %v5503_v62 = vmul.f32 -1.442695, %v4415_v58 }
0x1ff6   :  { %v4424_v35 = vpop.f32.mrb[49].mxu0 }
0x1ff7   :  { %v4425_v6 = vadd.f32 %v5496_v22, %v4424_v35 }
0x1ff9   :  { %v5505_v19 = vmul.f32 -1.442695, %v4425_v6 }
0x1ffb   :  { %6690 = vpow2.f32 %v5505_v19 }
0x1ffc   :  { %6692 = vpow2.f32 %v5503_v62 }
0x2005   :  { %v6691_v3 = vpop.eup %6690 }
0x2006   :  { %v6693_v36 = vpop.eup %6692  ;;  %v4501_v37 = vadd.f32 1.0, %v6691_v3 }
0x2007   :  { %v4499_v40 = vadd.f32 1.0, %v6693_v36 }
0x202b   :  { %v4010_v27 = vpop.permute.xlu0 %4009 }
0x202c   :  { %v7888_v41 = vadd.f32 %v4010_v27, %v7759_v20  ;;  %v4008_v39 = vpop.permute.xlu1 %4007  ;;  %v4430_v20 = vadd.f32 %v6162_v5, %v5496_v22 }
0x202d   :  { %v7891_v2 = vadd.f32 %v4008_v39, %v7757_v55 }
0x202e   :  { %v5506_v55 = vmul.f32 -1.442695, %v4430_v20 }
0x202f   :  { %v4433_v23 = vpack.c.bf16 %v7888_v41, %v7891_v2 }
0x2030   :  { %6694 = vpow2.f32 %v5506_v55 }
0x2031   :  { %4435 = vrot.lane.b32.xlu1 %v4433_v23, %s6986_s23  ;;  %6696 = vpow2.f32 %v5504_v34 }
0x2032   :  { %6698 = vrcp.f32 %v4501_v37 }
0x2033   :  { %6700 = vrcp.f32 %v4499_v40 }
0x203a   :  { %v6695_v14 = vpop.eup %6694 }
0x203b   :  { %v6697_v31 = vpop.eup %6696  ;;  %v4502_v42 = vadd.f32 1.0, %v6695_v14 }
0x203c   :  { %v4500_v32 = vadd.f32 1.0, %v6697_v31  ;;  %v6699_v30 = vpop.eup %6698 }
0x203d   :  { %6702 = vrcp.f32 %v4502_v42  ;;  %v6701_v44 = vpop.eup %6700  ;;  %v4517_v45 = vsub.f32 1.0, %v6699_v30 }
0x203e   :  { %6704 = vrcp.f32 %v4500_v32  ;;  %v4515_v18 = vsub.f32 1.0, %v6701_v44 }
0x203f   :  { %v4521_v10 = vmul.f32 %v4517_v45, %v4425_v6  ;;  %v5514_v6 = vld [vmem:[%s8018_s1 + $0x3] ss:$0 sm:$0xff]  ;;  %v5523_v45 = vld [vmem:[%s8019_s2 + $0xd0] sm:$0xff]  ;;  %s5195_s1 = sshll.u32 %s6988_s30, 4  ;;  %s5196_s1 = int_to_ptr.vmem [resolvable:$true] %s5195_s1 }
0x2040   :  { %v4519_v13 = vmul.f32 %v4515_v18, %v4415_v58  ;;  %v5524_v18 = vld [vmem:[%s8019_s2 + $0xd8] sm:$0xff]  ;;  %p6874_p10 = scmp.lt.s32.totalorder %s5196_s1, %s5196_s1 }
0x2047   :  { %v6703_v61 = vpop.eup %6702 }
0x2048   :  { %v6705_v43 = vpop.eup %6704  ;;  %v4518_v49 = vsub.f32 1.0, %v6703_v61 }
0x2049   :  { %v4516_v11 = vsub.f32 1.0, %v6705_v43 }
0x204a   :  { %v4522_v54 = vmul.f32 %v4518_v49, %v4430_v20  ;;  %v6444_v49 = vpack.c.bf16 %v5524_v18, %v5523_v45  ;;  %v5537_v18 = vld [vmem:[%s8039_s14] ss:$0 sm:$0xff] }
0x204b   :  { %v4520_v59 = vmul.f32 %v4516_v11, %v4420_v29  ;;  %v5525_v11 = vld [vmem:[%s8019_s2 + $0xe0] sm:$0xff] }
0x20a3   :  { %v4436_v33 = vpop.permute.xlu1 %4435 }
0x20a4   :  { %6163 = vmatprep.subr.bf16.mxu1 %v4436_v33 }
0x20a5   :  { %6164 = vmatpush3.bf16.msra.mxu1 %v4436_v33 }
0x20a6   :  { %6433 = vmatprep.subr.bf16.mxu1 %v6432_v15 }
0x20a8   :  { %6166 = vmatmul.mubr.msk.bf16.vlgmr.msra.gmra.mrb[64].mxu1 %vm748_vm7, %v6726_v28 }
0x20a9   :  { %6435 = vmatpush3.bf16.msra.mxu1 %v6432_v15 }
0x20aa   :  { %6437 = vmatprep.subr.bf16.mxu1 %v6436_v24 }
0x20ad   :  { %6439 = vmatpush3.bf16.msra.mxu1 %v6436_v24 }
0x217b   :  { %v6167_v50 = vpop.f32.mrb[64].mxu1 }
0x217c   :  { %v4513_v12 = vmul.f32 %v6699_v30, %v6167_v50  ;;  %v4472_v8 = vpop.f32.mrb[65].mxu1  ;;  %v5526_v50 = vld [vmem:[%s8019_s2 + $0xe8] sm:$0xff] }
0x217d   :  { %v4511_v51 = vmul.f32 %v6701_v44, %v4472_v8  ;;  %v6168_v52 = vpop.f32.mrb[66].mxu1  ;;  %v5521_v44 = vld [vmem:[%s8019_s2 + $0xc0] sm:$0xff]  ;;  %v5528_v8 = vld [vmem:[%s8019_s2 + $0xf8] sm:$0xff] }
0x217e   :  { %v4525_v46 = vadd.f32 %v4521_v10, %v4513_v12  ;;  %v4514_v48 = vmul.f32 %v6703_v61, %v6168_v52  ;;  %v4475_v56 = vpop.f32.mrb[67].mxu1  ;;  %v5522_v61 = vld [vmem:[%s8019_s2 + $0xc8] sm:$0xff]  ;;  %v5527_v10 = vld [vmem:[%s8019_s2 + $0xf0] sm:$0xff]  ;;  %v6448_v12 = vpack.c.bf16 %v5526_v50, %v5525_v11  ;;  %v4999_v11 = vld [vmem:[%s8041_s6] sm:$0x3]  ;;  %s6869_s2 = scalar_lea.vmem %s5196_s1, 32 }
0x217f   :  { %v4523_v7 = vadd.f32 %v4519_v13, %v4511_v51  ;;  %v4512_v9 = vmul.f32 %v6705_v43, %v4475_v56  ;;  %v6440_v43 = vpack.c.bf16 %v5522_v61, %v5521_v44  ;;  %v6452_v13 = vpack.c.bf16 %v5528_v8, %v5527_v10  ;;  %p6870_p9 = scmp.ne.s32.totalorder %s5196_s1, %s6869_s2  ;;  %p6875_p11 = scmp.lt.s32.totalorder %s6869_s2, %s6869_s2 }
0x2180   :  { %v4526_v60 = vadd.f32 %v4522_v54, %v4514_v48 }
0x2181   :  { %v4524_v1 = vadd.f32 %v4520_v59, %v4512_v9  ;;  %p6876_p12 = por %p6875_p11, %p6874_p10 }
0x2182   :  { %v4528_v16 = vpack.c.bf16 %v4526_v60, %v4525_v46 }
0x2183   :  { %v4527_v0 = vpack.c.bf16 %v4524_v1, %v4523_v7  ;;  %v5519_v7 = vld [vmem:[%s8020_s10 + $0x3] ss:$0 sm:$0xff]  ;;  %p6877_p13 = pnand %p6876_p12, %p6870_p9 }
0x2184   :  { %v5520_v1 = vld [vmem:[%s8021_s24 + $0x3] ss:$0 sm:$0xff] }
0x2185   :  { %6170 = vmatpush3.bf16.msra.mxu0 %v4527_v0 }
0x2186   :  { %6171 = vmatprep.subr.bf16.mxu0 %v6981_v63 }
0x2189   :  { %6172 = vmatpush3.bf16.msra.mxu0 %v4528_v16 }
0x218a   :  { %6441 = vmatprep.subr.bf16.mxu0 %v6440_v43 }
0x218c   :  { %6174 = vmatmul.mubr.msk.bf16.vlgmr.msra.gmra.mrb[52].mxu0 %vm423_vm2, %v7337_v53  ;;  %v4572_v53 = vstv %s4571_s21 }
0x218d   :  { %v4573_v5 = vmul.f32 %v4572_v53, %v7891_v2  ;;  %v4574_v39 = vmul.f32 %v4572_v53, %v7888_v41  ;;  %6443 = vmatpush3.bf16.msra.mxu0 %v6440_v43 }
0x218e   :  { %6445 = vmatprep.subr.bf16.mxu0 %v6444_v49 }
0x2191   :  { %6447 = vmatpush3.bf16.msra.mxu0 %v6444_v49  ;;  %v5538_v49 = vld [vmem:[%s8040_s19] ss:$0 sm:$0xff] }
0x2192   :  { %6449 = vmatprep.subr.bf16.mxu0 %v6448_v12 }
0x2195   :  { %6451 = vmatpush3.bf16.msra.mxu0 %v6448_v12 }
0x2196   :  { %6453 = vmatprep.subr.bf16.mxu0 %v6452_v13 }
0x2199   :  { %6455 = vmatpush3.bf16.msra.mxu0 %v6452_v13 }
0x225f   :  { %v4563_v25 = vpop.f32.mrb[52].mxu0 }
0x2260   :  { %4577 = vrot.lane.b32.xlu1 %v4563_v25, %s6984_s16  ;;  %v6175_v57 = vpop.f32.mrb[53].mxu0 }
0x2261   :  { %v4566_v47 = vpop.f32.mrb[54].mxu0  ;;  %v5530_v57 = vld [vmem:[%s8022_s7 + $0x3] ss:$0 sm:$0xff] }
0x2262   :  { %4579 = vrot.lane.b32.xlu0 %v4566_v47, %s6984_s16  ;;  %v6176_v26 = vpop.f32.mrb[55].mxu0 }
0x22d2   :  { %v4578_v35 = vpop.permute.xlu1 %4577 }
0x22d3   :  { %v4583_v27 = vadd.f32 %v4578_v35, %v4573_v5 }
0x22d4   :  { %v4580_v23 = vpop.permute.xlu0 %4579 }
0x22d5   :  { %v4584_v33 = vadd.f32 %v4580_v23, %v4574_v39  ;;  %4600 = vrot.lane.b32.xlu1 %v4583_v27, %s6986_s23 }
0x22d7   :  { %4602 = vrot.lane.b32.xlu0 %v4584_v33, %s6986_s23 }
0x2347   :  { %v4601_v28 = vpop.permute.xlu1 %4600 }
0x2348   :  { %6185 = vmatprep.mubr.msk.f32.mxu1 %vm423_vm2, %v4601_v28 }
0x2349   :  { %v4603_v22 = vpop.permute.xlu0 %4602 }
0x234a   :  { %6186 = vmatmul.mubr.msk.f32.vlgmr.msra.gmra.mrb[68].mxu1 %vm423_vm2, %v4603_v22 }
0x234b   :  { %6211 = vmatprep.mubr.msk.f32.mxu1 %vm6982_vm12, %v6981_v63 }
0x241d   :  { %v6187_v58 = vpop.f32.mrb[68].mxu1 }
0x241e   :  { %v4680_v20 = vadd.f32 %v6187_v58, %v5514_v6  ;;  %v4674_v29 = vpop.f32.mrb[69].mxu1 }
0x241f   :  { %v4675_v19 = vadd.f32 %v5514_v6, %v4674_v29 }
0x2420   :  { %v4690_v62 = vsel %vm996_vm13, %v4680_v20, 0.0 }
0x2421   :  { %4691 = vadd.xlane.f32.xlu0 %v4690_v62  ;;  %v4687_v55 = vsel %vm996_vm13, %v4675_v19, 0.0 }
0x2422   :  { %4688 = vadd.xlane.f32.xlu1 %v4687_v55 }
0x24ae   :  { %v4692_v34 = vpop.xlane.xlu0 %4691 }
0x24af   :  { %v4694_v3 = vmul.f32 0.015625, %v4692_v34  ;;  %v4689_v36 = vpop.xlane.xlu1 %4688 }
0x24b0   :  { %v4693_v14 = vmul.f32 0.015625, %v4689_v36 }
0x24b1   :  { %v4696_v31 = vsub.f32 %v4680_v20, %v4694_v3 }
0x24b2   :  { %v4695_v37 = vsub.f32 %v4675_v19, %v4693_v14 }
0x24b3   :  { %v4698_v40 = vmul.f32 %v4696_v31, %v4696_v31 }
0x24b4   :  { %v4697_v42 = vmul.f32 %v4695_v37, %v4695_v37 }
0x24b5   :  { %v4702_v32 = vsel %vm996_vm13, %v4698_v40, 0.0 }
0x24b6   :  { %4703 = vadd.xlane.f32.xlu1 %v4702_v32  ;;  %v4699_v30 = vsel %vm996_vm13, %v4697_v42, 0.0  ;;  %v5536_v32 = vld [vmem:[%s8024_s9 + $0x3] ss:$0 sm:$0xff] }
0x24b7   :  { %4700 = vadd.xlane.f32.xlu0 %v4699_v30 }
0x2543   :  { %v4704_v51 = vpop.xlane.xlu1 %4703 }
0x2544   :  { %v4706_v52 = vmul.f32 0.015625, %v4704_v51  ;;  %v4701_v54 = vpop.xlane.xlu0 %4700  ;;  %v6987_v51 = vmov 0.0|0.0  }
0x2545   :  { %v4705_v46 = vmul.f32 0.015625, %v4701_v54  ;;  %6456 = vmatprep.subr.bf16.mxu1 %v6987_v51 }
0x2546   :  { %v4708_v48 = vadd.f32 1e-05, %v4706_v52 }
0x2547   :  { %v4707_v56 = vadd.f32 1e-05, %v4705_v46 }
0x2548   :  { %6706 = vrsqrt.f32 %v4708_v48 }
0x2549   :  { %6708 = vrsqrt.f32 %v4707_v56 }
0x2552   :  { %v6707_v59 = vpop.eup %6706 }
0x2553   :  { %v6709_v9 = vpop.eup %6708  ;;  %v4712_v60 = vmul.f32 %v6707_v59, %v4696_v31 }
0x2554   :  { %v4711_v16 = vmul.f32 %v6709_v9, %v4695_v37  ;;  %v5535_v37 = vld [vmem:[%s8023_s0 + $0x3] ss:$0 sm:$0xff] }
0x2555   :  { %v4720_v0 = vmul.f32 %v5519_v7, %v4712_v60 }
0x2556   :  { %v4719_v17 = vmul.f32 %v5519_v7, %v4711_v16 }
0x2557   :  { %v4728_v4 = vadd.f32 %v5520_v1, %v4720_v0  ;;  %v5008_v0 = vld [vmem:[%s8042_s20] sm:$0xff] }
0x2558   :  { %v4727_v21 = vadd.f32 %v5520_v1, %v4719_v17  ;;  %v5009_v17 = vld [vmem:[%s8042_s20 + $0x8] sm:$0xff] }
0x2559   :  { %v4732_v15 = vmul.f32 0.15, %v4728_v4  ;;  %vm4730_vm11 = vcmp.ge.f32.partialorder %v4728_v4, 0.0 }
0x255a   :  { %vm4729_vm10 = vcmp.ge.f32.partialorder %v4727_v21, 0.0  ;;  %v4731_v38 = vmul.f32 0.15, %v4727_v21 }
0x255b   :  { %v4734_v25 = vsel %vm4730_vm11, %v4728_v4, %v4732_v15  ;;  %v6460_v15 = vpack.c.bf16 %v5009_v17, %v5008_v0 }
0x255c   :  { %v4733_v24 = vsel %vm4729_vm10, %v4727_v21, %v4731_v38  ;;  %v4917_v21 = vld [vmem:[#allocation9] sm:$0x3] }
0x255d   :  { %6204 = vmatprep.mubr.msk.f32.mxu0 %vm996_vm13, %v4733_v24  ;;  %v5010_v38 = vld [vmem:[%s8042_s20 + $0x10] sm:$0xff]  ;;  %v5011_v24 = vld [vmem:[%s8042_s20 + $0x18] sm:$0xff] }
0x255e   :  { %6205 = vmatmul.mubr.msk.f32.vlgmr.msra.gmra.mrb[50].mxu0 %vm996_vm13, %v4734_v25  ;;  %v6463_v25 = vpack.c.bf16 %v5011_v24, %v5010_v38 }
0x2631   :  { %v6206_v47 = vpop.f32.mrb[50].mxu0 }
0x2632   :  { %v4830_v26 = vadd.f32 %v6206_v47, %v5530_v57  ;;  %v4824_v53 = vpop.f32.mrb[51].mxu0 }
0x2633   :  { %v4825_v5 = vadd.f32 %v5530_v57, %v4824_v53 }
0x2634   :  { %v4840_v35 = vsel %vm423_vm2, %v4830_v26, 0.0 }
0x2635   :  { %4841 = vadd.xlane.f32.xlu1 %v4840_v35  ;;  %v4837_v27 = vsel %vm423_vm2, %v4825_v5, 0.0  ;;  %v5096_v35 = vld [vmem:[%s7203_s4 + $0x8] sm:$0xff] }
0x2636   :  { %4838 = vadd.xlane.f32.xlu0 %v4837_v27 }
0x26c2   :  { %v4842_v39 = vpop.xlane.xlu1 %4841 }
0x26c3   :  { %v4844_v23 = vmul.f32 0.03125, %v4842_v39  ;;  %v4839_v33 = vpop.xlane.xlu0 %4838  ;;  %v5540_v39 = vld [vmem:[%s8043_s5] ss:$0 sm:$0xff] }
0x26c4   :  { %v4843_v28 = vmul.f32 0.03125, %v4839_v33 }
0x26c5   :  { %v4846_v22 = vsub.f32 %v4830_v26, %v4844_v23 }
0x26c6   :  { %v4845_v6 = vsub.f32 %v4825_v5, %v4843_v28  ;;  %v5095_v5 = vld [vmem:[%s7203_s4] sm:$0xff] }
0x26c7   :  { %v4848_v58 = vmul.f32 %v4846_v22, %v4846_v22  ;;  %v6466_v27 = vpack.c.bf16 %v5096_v35, %v5095_v5 }
0x26c8   :  { %v4847_v20 = vmul.f32 %v4845_v6, %v4845_v6 }
0x26c9   :  { %v4852_v29 = vsel %vm423_vm2, %v4848_v58, 0.0 }
0x26ca   :  { %4853 = vadd.xlane.f32.xlu1 %v4852_v29  ;;  %v4849_v19 = vsel %vm423_vm2, %v4847_v20, 0.0 }
0x26cb   :  { %4850 = vadd.xlane.f32.xlu0 %v4849_v19 }
0x2757   :  { %v4854_v62 = vpop.xlane.xlu1 %4853 }
0x2758   :  { %v4856_v55 = vmul.f32 0.03125, %v4854_v62  ;;  %v4851_v34 = vpop.xlane.xlu0 %4850 }
0x2759   :  { %v4855_v3 = vmul.f32 0.03125, %v4851_v34 }
0x275a   :  { %v4858_v36 = vadd.f32 1e-05, %v4856_v55 }
0x275b   :  { %v4857_v14 = vadd.f32 1e-05, %v4855_v3 }
0x275c   :  { %6710 = vrsqrt.f32 %v4858_v36 }
0x275d   :  { %6712 = vrsqrt.f32 %v4857_v14 }
0x2766   :  { %v6711_v31 = vpop.eup %6710 }
0x2767   :  { %v6713_v40 = vpop.eup %6712  ;;  %v4862_v42 = vmul.f32 %v6711_v31, %v4846_v22 }
0x2768   :  { %v4861_v30 = vmul.f32 %v6713_v40, %v4845_v6 }
0x2769   :  { %v4870_v44 = vmul.f32 %v5535_v37, %v4862_v42 }
0x276a   :  { %v4869_v61 = vmul.f32 %v5535_v37, %v4861_v30 }
0x276b   :  { %v4878_v43 = vadd.f32 %v5536_v32, %v4870_v44 }
0x276c   :  { %v4877_v45 = vadd.f32 %v5536_v32, %v4869_v61 }
0x276d   :  { %4883 = vrot.lane.b32.xlu1 %v4878_v43, %s6984_s16 }
0x276e   :  { %4881 = vrot.lane.b32.xlu0 %v4877_v45, %s6984_s16 }
0x2771   :  { %4895 = vrot.lane.b32.xlu1 %v5537_v18, %s6984_s16 }
0x2772   :  { %4906 = vrot.lane.b32.xlu0 %v5538_v49, %s6984_s16 }
0x2776   :  { %5002 = vperm.xlu0 %6531, %v4999_v11  }
0x27df   :  { %v4884_v50 = vpop.permute.xlu1 %4883 }
0x27e0   :  { %v4882_v10 = vpop.permute.xlu0 %4881  ;;  %v4888_v8 = vadd.f32 %v4884_v50, %v7888_v41 }
0x27e1   :  { %v4887_v12 = vadd.f32 %v4882_v10, %v7891_v2 }
0x27e3   :  { %v4896_v13 = vpop.permute.xlu1 %4895 }
0x27e4   :  { %v4898_v52 = vmul.f32 %v4896_v13, %v4887_v12  ;;  %v4899_v54 = vmul.f32 %v4896_v13, %v4888_v8  ;;  %v4907_v46 = vpop.permute.xlu0 %4906 }
0x27e6   :  { %v4909_v48 = vadd.f32 %v4907_v46, %v4898_v52  ;;  %v4910_v56 = vadd.f32 %v4907_v46, %v4899_v54 }
0x27e8   :  { %vm4911_vm13 = vcmp.ge.f32.partialorder %v4909_v48, 0.0  ;;  %vm4912_vm0 = vcmp.ge.f32.partialorder %v4910_v56, 0.0  ;;  %v4913_v59 = vmul.f32 0.15, %v4909_v48  ;;  %v4914_v7 = vmul.f32 0.15, %v4910_v56 }
0x27ea   :  { %v4915_v9 = vsel %vm4911_vm13, %v4909_v48, %v4913_v59  ;;  %v4916_v60 = vsel %vm4912_vm0, %v4910_v56, %v4914_v7 }
0x27eb   :  { %v6553_v1 = vpack.i.bf16 %v4916_v60, %v4915_v9 }
0x27ed   :  { %6554 = vrot.lane.b32.xlu1 %v6553_v1, %s6986_s23 }
0x27f5   :  { %v5003_v57 = vpop.permute.xlu0 %5002 }
0x285f   :  { %v6555_v41 = vpop.permute.xlu1 %6554 }
0x2860   :  { %v6557_v2 = vunpack.i.h.bf16 %v6555_v41  ;;  %v6556_v16 = vunpack.i.l.bf16 %v6555_v41 }
0x2862   :  { %v6457_v4 = vpack.c.bf16 %v6557_v2, %v6556_v16 }
0x2864   :  { %6458 = vmatpush3.bf16.msra.mxu1 %v6457_v4 }
0x2865   :  { %6459 = vmatprep.subr.bf16.mxu1 %v6987_v51 }
0x2867   :  { %6212 = vmatmul.mubr.msk.f32.vlgmr.msra.gmra.mrb[70].mxu1 %vm748_vm7, %v4917_v21 }
0x2868   :  { %6461 = vmatpush3.bf16.msra.mxu1 %v6460_v15  ;;  %6222 = vmatprep.mubr.msk.f32.mxu1 %vm6982_vm12, %v6981_v63 }
0x2869   :  { %6462 = vmatprep.subr.bf16.mxu1 %v6987_v51 }
0x286c   :  { %6464 = vmatpush3.bf16.msra.mxu1 %v6463_v25 }
0x286d   :  { %6465 = vmatprep.subr.bf16.mxu1 %v6987_v51 }
0x293a   :  { %v4995_v47 = vpop.f32.mrb[70].mxu1 }
0x293b   :  { %v5005_v26 = vmul.f32 %v5003_v57, %v4995_v47  ;;  %v6213_v53 = vpop.f32.mrb[71].mxu1 }
0x293d   :  { %6223 = vmatmul.mubr.msk.f32.vlgmr.msra.gmra.mrb[72].mxu1 %vm423_vm2, %v5005_v26  ;;  %5007 = vst.msk [vmem:[#allocation17] sm:$0x3] %vm5006_vm1, %v5005_v26 }
0x293e   :  { %6229 = vmatprep.mubr.msk.f32.mxu1 %vm6982_vm12, %v6981_v63  ;;  %6467 = vmatpush3.bf16.msra.mxu1 %v6466_v27 }
0x2a10   :  { %v5088_v23 = vpop.f32.mrb[72].mxu1 }
0x2a11   :  { %v5089_v33 = vadd.f32 %v5540_v39, %v5088_v23  ;;  %v6224_v28 = vpop.f32.mrb[73].mxu1 }
0x2a13   :  { %vm5092_vm14 = vcmp.ge.f32.partialorder %v5089_v33, 0.0  ;;  %v5093_v22 = vmul.f32 0.15, %v5089_v33 }
0x2a15   :  { %v5094_v6 = vsel %vm5092_vm14, %v5089_v33, %v5093_v22 }
0x2a16   :  { %6230 = vmatmul.mubr.msk.f32.vlgmr.msra.gmra.mrb[74].mxu1 %vm748_vm7, %v5094_v6 }
0x2a17   :  { %6880 = shalt.err (!%p6877_p13)
}
0x2a18   :  { %s6881_s4 = scalar_lea.hbm %s7218_s27, 32 }
0x2a19   :  { %p6882_p0 = scmp.ne.s32.totalorder %s7218_s27, %s6881_s4  ;;  %p6885_p1 = scmp.lt.u32.totalorder %s6881_s4, %s7218_s27 }
0x2a1b   :  { %p6887_p2 = pnand %p6885_p1, %p6882_p0 }
0x2a1d   :  { %6890 = shalt.err (!%p6887_p2)
}
0x2a1e   :  { %5198 = dma.vmem_to_hbm [thread:$0]  %s5196_s1, 32, %s7218_s27, [#allocation18]   ;;  %v5542_v63 = vld [vmem:[%s7208_s3] ss:$0 sm:$0xff]  ;;  %vm5177_vm2 = vcmask 17408  }
0x2a1f   :  { %s6989_s10 = smov [#allocation16]  }
0x2a20   :  { %s5185_s24 = sshll.u32 %s6989_s10, 4  ;;  %s5186_s24 = int_to_ptr.vmem [resolvable:$true] %s5185_s24 }
0x2a21   :  { %s6891_s7 = scalar_lea.vmem %s5186_s24, 32  ;;  %p6896_p4 = scmp.lt.s32.totalorder %s5186_s24, %s5186_s24 }
0x2a22   :  { %p6892_p3 = scmp.ne.s32.totalorder %s5186_s24, %s6891_s7  ;;  %p6897_p5 = scmp.lt.s32.totalorder %s6891_s7, %s6891_s7 }
0x2a24   :  { %p6898_p6 = por %p6897_p5, %p6896_p4 }
0x2a26   :  { %p6899_p7 = pnand %p6898_p6, %p6892_p3 }
0x2ae9   :  { %v5173_v58 = vpop.f32.mrb[74].mxu1 }
0x2aea   :  { %v5174_v20 = vadd.f32 %v5542_v63, %v5173_v58  ;;  %v6231_v29 = vpop.f32.mrb[75].mxu1 }
0x2aec   :  { %5178 = vst.msk [vmem:[#allocation16] sm:$0x3] %vm5177_vm2, %v5174_v20 }
0x2aed   :  { %6902 = shalt.err (!%p6899_p7)
}
0x2aee   :  { %s6903_s27 = scalar_lea.hbm %s7213_s25, 32 }
0x2aef   :  { %p6904_p8 = scmp.ne.s32.totalorder %s7213_s25, %s6903_s27  ;;  %p6907_p9 = scmp.lt.u32.totalorder %s6903_s27, %s7213_s25 }
0x2af1   :  { %p6909_p10 = pnand %p6907_p9, %p6904_p8 }
0x2af3   :  { %6912 = shalt.err (!%p6909_p10)
}
0x2af4   :  { %5188 = dma.vmem_to_hbm [thread:$0]  %s5186_s24, 32, %s7213_s25, [#allocation5]  }
0x2af5   :  { %6923 = dma.done.wait [#allocation5], 32  }
0x2af6   :  { %6924 = vsyncadd [#allocation5], 4294967264 }
0x2af7   :  { %6925 = dma.done.wait [#allocation18], 32  }
0x2af8   :  { %6926 = vsyncadd [#allocation18], 4294967264 }
0x2af9   :  { %5205 = vsyncpa [#allocation4], 1 }
0x2afa   :  { %5206 = vsyncpa [#allocation8], 1 }
0x2afb   :  { %5207 = vsyncpa [#allocation12], 1 }
0x2afc   :  { %5208 = vsyncpa [#allocation15], 1 }
0x2afd   :  { %5209 = vsyncpa [#allocation5], 1 }
0x2afe   :  { %5210 = vsyncpa [#allocation18], 1 }
0x2aff   :  { %5211 = vsyncpa [#allocation6], 1 }

</bundles_post_ra>
